<compile_context>
chip_gen: v7x
topology: tpu7x:2x2x1
jax: 0.10.0
libtpu: 0.0.40
codegen_flags: <defaults>
</compile_context>

<pallas_src>
import functools

import jax
import jax.numpy as jnp
import numpy as np
from jax.experimental import pallas as pl
from jax.experimental.pallas import tpu as pltpu


def _gelu_exact(x):
    # Exact (erf-based) GELU, matching diffusers' GEGLU default.  erf is
    # evaluated with the Abramowitz & Stegun 7.1.26 rational approximation
    # (|err| < 1.5e-7), built only from ops with guaranteed Mosaic lowerings
    # (exp / mul / add / where) so the kernel never depends on an erf primitive.
    z = x * 0.7071067811865476                      # x / sqrt(2)
    a = jnp.abs(z)
    t = 1.0 / (1.0 + 0.3275911 * a)
    poly = t * (0.254829592 + t * (-0.284496736 + t * (1.421413741
             + t * (-1.453152027 + t * 1.061405429))))
    erf_abs = 1.0 - poly * jnp.exp(-(a * a))
    erf = jnp.where(z >= 0.0, erf_abs, -erf_abs)
    return 0.5 * x * (1.0 + erf)


# -----------------------------------------------------------------------------
# Kernel: one grid step = (row tile i, inner tile j).
# -----------------------------------------------------------------------------
def _ff_kernel(x_ref, w1v_ref, w1g_ref, b1v_ref, b1g_ref, w2_ref, b2_ref,
               o_ref, acc_ref, *, compute_dtype):
    j = pl.program_id(1)

    @pl.when(j == 0)
    def _():
        acc_ref[...] = jnp.zeros_like(acc_ref)

    x = x_ref[...].astype(compute_dtype)                         # (TM, D)
    value = jnp.dot(x, w1v_ref[...],
                    preferred_element_type=jnp.float32) + b1v_ref[...]
    gate = jnp.dot(x, w1g_ref[...],
                   preferred_element_type=jnp.float32) + b1g_ref[...]
    h = value * _gelu_exact(gate)                                # (TM, TN) f32

    # TODO(synk): dropout is treated as identity (p=0.0 / inference mode).
    acc_ref[...] += jnp.dot(h.astype(compute_dtype), w2_ref[...],
                            preferred_element_type=jnp.float32)

    @pl.when(j == pl.num_programs(1) - 1)
    def _():
        o_ref[...] = (acc_ref[...] + b2_ref[...]).astype(o_ref.dtype)


# -----------------------------------------------------------------------------
# Tiling helpers.
# -----------------------------------------------------------------------------
def _round_up(x, m):
    return (x + m - 1) // m * m


def _pick_tile_m(m, requested):
    tm = _round_up(min(requested, _round_up(m, 16)), 16)
    # Keep >= 2 row tiles when worthwhile so the "parallel" row axis can shard
    # across the two TensorCores of a v7x chip.
    if m >= 256 and -(-m // tm) < 2:
        tm = _round_up(-(-m // 2), 16)
    return tm


def _pick_tile_n(inner, requested):
    t = min(requested, inner)
    if t == inner:
        return inner                      # whole inner dim resident (full-dim block)
    t = (t // 128) * 128
    while t >= 128:
        if inner % t == 0:                # must divide inner and be lane-aligned
            return t
        t -= 128
    return inner


# -----------------------------------------------------------------------------
# Wrapper: flatten (B, S) -> M rows, fused pallas_call over a 2D grid.
# -----------------------------------------------------------------------------
def feed_forward(x, params, *, tile_m=512, tile_n=512,
                 compute_dtype=jnp.bfloat16):
    B, S, D = x.shape
    w1, b1, w2, b2 = params['w1'], params['b1'], params['w2'], params['b2']
    inner = w2.shape[0]
    d_out = w2.shape[1]

    M = B * S
    tile_m = _pick_tile_m(M, tile_m)
    tile_n = _pick_tile_n(inner, tile_n)
    n_rows = pl.cdiv(M, tile_m)
    n_inner = inner // tile_n
    grid = (n_rows, n_inner)

    x2 = x.reshape(M, D)                                   # no padding / copy

    # Split W1/b1 into value & gate halves; fuse with the bf16 cast (same total
    # bytes written as casting W1 whole, so no extra HBM pass).
    w1v = w1[:, :inner].astype(compute_dtype)
    w1g = w1[:, inner:].astype(compute_dtype)
    b1v = b1[:, :inner].astype(jnp.float32)
    b1g = b1[:, inner:].astype(jnp.float32)
    w2c = w2.astype(compute_dtype)
    b2c = b2.astype(jnp.float32)

    # VMEM budget: double-buffered blocks + accumulator + f32 intermediates,
    # with headroom; stay well under v7x's 64 MiB physical VMEM.
    xb = jnp.dtype(x.dtype).itemsize
    cb = jnp.dtype(compute_dtype).itemsize
    per_step = (2 * tile_m * D * xb                        # x tile
                + 2 * 2 * D * tile_n * cb                  # W1 value+gate tiles
                + 2 * 2 * tile_n * 4                       # b1 value+gate tiles
                + 2 * tile_n * d_out * cb                  # W2 tile
                + 2 * d_out * 4                            # b2
                + 2 * tile_m * d_out * xb                  # out tile
                + tile_m * d_out * 4)                      # f32 accumulator
    intermediates = 4 * tile_m * tile_n * 4                # value/gate/h temps
    vmem_limit = int(min(max(2 * (per_step + intermediates), 32 << 20),
                         48 << 20))

    out = pl.pallas_call(
        functools.partial(_ff_kernel, compute_dtype=compute_dtype),
        out_shape=jax.ShapeDtypeStruct((M, d_out), x.dtype),
        grid=grid,
        in_specs=[
            pl.BlockSpec((tile_m, D), lambda i, j: (i, 0)),       # x rows
            pl.BlockSpec((D, tile_n), lambda i, j: (0, j)),       # W1 value half
            pl.BlockSpec((D, tile_n), lambda i, j: (0, j)),       # W1 gate half
            pl.BlockSpec((1, tile_n), lambda i, j: (0, j)),       # b1 value half
            pl.BlockSpec((1, tile_n), lambda i, j: (0, j)),       # b1 gate half
            pl.BlockSpec((tile_n, d_out), lambda i, j: (j, 0)),   # W2
            pl.BlockSpec((1, d_out), lambda i, j: (0, 0)),        # b2
        ],
        out_specs=pl.BlockSpec((tile_m, d_out), lambda i, j: (i, 0)),
        scratch_shapes=[pltpu.VMEM((tile_m, d_out), jnp.float32)],
        compiler_params=pltpu.CompilerParams(
            dimension_semantics=("parallel", "arbitrary"),
            vmem_limit_bytes=vmem_limit,
        ),
    )(x2, w1v, w1g, b1v, b1g, w2c, b2c)

    return out.reshape(B, S, d_out)


# -----------------------------------------------------------------------------
# Pure-JAX reference (mirrors the PyTorch FeedForward/GEGLU forward).
# -----------------------------------------------------------------------------
def reference_forward(x, params):
    inner = params['w2'].shape[0]
    hi = jax.lax.Precision.HIGHEST
    proj = jnp.dot(x, params['w1'], precision=hi) + params['b1'][0]
    value, gate = proj[..., :inner], proj[..., inner:]
    h = value * jax.nn.gelu(gate, approximate=False)
    return jnp.dot(h, params['w2'], precision=hi) + params['b2'][0]


def init_params(key, dim, inner, dim_out):
    k1, k2, k3, k4 = jax.random.split(key, 4)
    # torch nn.Linear weights are (out, in); stored transposed here for x @ W.
    return {
        'w1': jax.random.normal(k1, (dim, 2 * inner), jnp.float32) / np.sqrt(dim),
        'b1': 0.1 * jax.random.normal(k2, (1, 2 * inner), jnp.float32),
        'w2': jax.random.normal(k3, (inner, dim_out), jnp.float32) / np.sqrt(inner),
        'b2': 0.1 * jax.random.normal(k4, (1, dim_out), jnp.float32),
    }


if __name__ == "__main__":
    key = jax.random.PRNGKey(0)
    k_p, k_x, k_p2, k_x2 = jax.random.split(key, 4)

    # Main case: lane-aligned dims (dim=128, mult=4 -> inner=512); M=512 rows
    # -> 2 row tiles x 2 inner tiles (exercises megacore split + accumulation).
    DIM, MULT = 128, 4
    INNER = DIM * MULT
    params = init_params(k_p, DIM, INNER, DIM)
    x = jax.random.normal(k_x, (2, 256, DIM), jnp.float32)
    ref = jax.block_until_ready(reference_forward(x, params))

    out_f32 = jax.block_until_ready(
        feed_forward(x, params, tile_n=256, compute_dtype=jnp.float32))
    np.testing.assert_allclose(np.asarray(out_f32), np.asarray(ref),
                               rtol=2e-3, atol=2e-3)

    out_bf16 = jax.block_until_ready(feed_forward(x, params, tile_n=256))
    np.testing.assert_allclose(np.asarray(out_bf16), np.asarray(ref),
                               rtol=5e-2, atol=5e-2)

    # Secondary case: non-128 feature dims (dim=32, inner=128) and a ragged
    # row count (M=300 -> 2 row tiles, last one partially out of bounds).
    params2 = init_params(k_p2, 32, 128, 32)
    x2 = jax.random.normal(k_x2, (3, 100, 32), jnp.float32)
    out2 = jax.block_until_ready(
        feed_forward(x2, params2, compute_dtype=jnp.float32))
    ref2 = jax.block_until_ready(reference_forward(x2, params2))
    np.testing.assert_allclose(np.asarray(out2), np.asarray(ref2),
                               rtol=2e-3, atol=2e-3)

    print("KERNEL_OK")
</pallas_src>

<mosaic_0001>
module attributes {stable_mosaic.version = 11 : i64} {
  func.func @_ff_kernel(%arg0: i32, %arg1: i32, %arg2: memref<256x128xf32, #tpu.memory_space<vmem>>, %arg3: memref<128x256xf32, #tpu.memory_space<vmem>>, %arg4: memref<128x256xf32, #tpu.memory_space<vmem>>, %arg5: memref<1x256xf32, #tpu.memory_space<vmem>>, %arg6: memref<1x256xf32, #tpu.memory_space<vmem>>, %arg7: memref<256x128xf32, #tpu.memory_space<vmem>>, %arg8: memref<1x128xf32, #tpu.memory_space<vmem>>, %arg9: memref<256x128xf32, #tpu.memory_space<vmem>>, %arg10: memref<256x128xf32, #tpu.memory_space<vmem>>) attributes {dimension_semantics = [#tpu.dimension_semantics<parallel>, #tpu.dimension_semantics<arbitrary>], iteration_bounds = array<i64: 2, 2>, scalar_prefetch = 0 : i64, scratch_operands = 1 : i64, tpu.core_type = #tpu.core_type<tc>, window_params = [{transform_indices = @transform_0, window_bounds = array<i64: 256, 128>}, {transform_indices = @transform_1, window_bounds = array<i64: 128, 256>}, {transform_indices = @transform_2, window_bounds = array<i64: 128, 256>}, {transform_indices = @transform_3, window_bounds = array<i64: 1, 256>}, {transform_indices = @transform_4, window_bounds = array<i64: 1, 256>}, {transform_indices = @transform_5, window_bounds = array<i64: 256, 128>}, {pipeline_mode = #tpu.pipeline_mode<synchronous>, transform_indices = @transform_6, window_bounds = array<i64: 1, 128>}, {transform_indices = @transform_7, window_bounds = array<i64: 256, 128>}]} {
    %c0_i32 = arith.constant 0 : i32
    %0 = arith.cmpi eq, %arg1, %c0_i32 : i32
    %1 = arith.extui %0 : i1 to i32
    %c0_i32_0 = arith.constant 0 : i32
    %2 = arith.cmpi ne, %1, %c0_i32_0 : i32
    scf.if %2 {
      %cst_34 = arith.constant 0.000000e+00 : f32
      %63 = vector.broadcast %cst_34 : f32 to vector<256x128xf32>
      %c0_35 = arith.constant 0 : index
      %c0_36 = arith.constant 0 : index
      %64 = vector.load %arg10[%c0_35, %c0_36] : memref<256x128xf32, #tpu.memory_space<vmem>>, vector<256x128xf32>
      tpu.vector_store %arg10[%c0_35, %c0_36], %63 {strides = array<i32>} : memref<256x128xf32, #tpu.memory_space<vmem>>, vector<256x128xf32>,
    } else {
    }
    %c0 = arith.constant 0 : index
    %c0_1 = arith.constant 0 : index
    %3 = vector.load %arg2[%c0, %c0_1] : memref<256x128xf32, #tpu.memory_space<vmem>>, vector<256x128xf32>
    %c0_2 = arith.constant 0 : index
    %c0_3 = arith.constant 0 : index
    %4 = vector.load %arg3[%c0_2, %c0_3] : memref<128x256xf32, #tpu.memory_space<vmem>>, vector<128x256xf32>
    %cst = arith.constant dense<0.000000e+00> : vector<256x256xf32>
    %5 = tpu.matmul %3, %4, %cst {dimension_numbers = #tpu.dot_dimension_numbers<[1], [0], [0], [1], [0, 0, 1, 1], [], []>} : vector<256x128xf32>, vector<128x256xf32>, vector<256x256xf32> -> vector<256x256xf32>
    %c0_4 = arith.constant 0 : index
    %c0_5 = arith.constant 0 : index
    %6 = vector.load %arg5[%c0_4, %c0_5] : memref<1x256xf32, #tpu.memory_space<vmem>>, vector<1x256xf32>
    %7 = vector.broadcast %6 : vector<1x256xf32> to vector<256x256xf32>
    %8 = arith.addf %5, %7 : vector<256x256xf32>
    %c0_6 = arith.constant 0 : index
    %c0_7 = arith.constant 0 : index
    %9 = vector.load %arg4[%c0_6, %c0_7] : memref<128x256xf32, #tpu.memory_space<vmem>>, vector<128x256xf32>
    %cst_8 = arith.constant dense<0.000000e+00> : vector<256x256xf32>
    %10 = tpu.matmul %3, %9, %cst_8 {dimension_numbers = #tpu.dot_dimension_numbers<[1], [0], [0], [1], [0, 0, 1, 1], [], []>} : vector<256x128xf32>, vector<128x256xf32>, vector<256x256xf32> -> vector<256x256xf32>
    %c0_9 = arith.constant 0 : index
    %c0_10 = arith.constant 0 : index
    %11 = vector.load %arg6[%c0_9, %c0_10] : memref<1x256xf32, #tpu.memory_space<vmem>>, vector<1x256xf32>
    %12 = vector.broadcast %11 : vector<1x256xf32> to vector<256x256xf32>
    %13 = arith.addf %10, %12 : vector<256x256xf32>
    %cst_11 = arith.constant 0.707106769 : f32
    %14 = vector.broadcast %cst_11 : f32 to vector<256x256xf32>
    %15 = arith.mulf %13, %14 : vector<256x256xf32>
    %16 = math.absf %15 : vector<256x256xf32>
    %cst_12 = arith.constant 0.327591091 : f32
    %17 = vector.broadcast %cst_12 : f32 to vector<256x256xf32>
    %18 = arith.mulf %17, %16 : vector<256x256xf32>
    %cst_13 = arith.constant 1.000000e+00 : f32
    %19 = vector.broadcast %cst_13 : f32 to vector<256x256xf32>
    %20 = arith.addf %19, %18 : vector<256x256xf32>
    %cst_14 = arith.constant 1.000000e+00 : f32
    %21 = vector.broadcast %cst_14 : f32 to vector<256x256xf32>
    %22 = arith.divf %21, %20 : vector<256x256xf32>
    %cst_15 = arith.constant 1.06140542 : f32
    %23 = vector.broadcast %cst_15 : f32 to vector<256x256xf32>
    %24 = arith.mulf %22, %23 : vector<256x256xf32>
    %cst_16 = arith.constant -1.45315206 : f32
    %25 = vector.broadcast %cst_16 : f32 to vector<256x256xf32>
    %26 = arith.addf %25, %24 : vector<256x256xf32>
    %27 = arith.mulf %22, %26 : vector<256x256xf32>
    %cst_17 = arith.constant 1.42141378 : f32
    %28 = vector.broadcast %cst_17 : f32 to vector<256x256xf32>
    %29 = arith.addf %28, %27 : vector<256x256xf32>
    %30 = arith.mulf %22, %29 : vector<256x256xf32>
    %cst_18 = arith.constant -0.284496725 : f32
    %31 = vector.broadcast %cst_18 : f32 to vector<256x256xf32>
    %32 = arith.addf %31, %30 : vector<256x256xf32>
    %33 = arith.mulf %22, %32 : vector<256x256xf32>
    %cst_19 = arith.constant 0.254829586 : f32
    %34 = vector.broadcast %cst_19 : f32 to vector<256x256xf32>
    %35 = arith.addf %34, %33 : vector<256x256xf32>
    %36 = arith.mulf %22, %35 : vector<256x256xf32>
    %37 = arith.mulf %16, %16 : vector<256x256xf32>
    %cst_20 = arith.constant 0.000000e+00 : f32
    %38 = vector.broadcast %cst_20 : f32 to vector<256x256xf32>
    %39 = arith.subf %38, %37 : vector<256x256xf32>
    %40 = math.exp %39 : vector<256x256xf32>
    %41 = arith.mulf %36, %40 : vector<256x256xf32>
    %cst_21 = arith.constant 1.000000e+00 : f32
    %42 = vector.broadcast %cst_21 : f32 to vector<256x256xf32>
    %43 = arith.subf %42, %41 : vector<256x256xf32>
    %cst_22 = arith.constant 0.000000e+00 : f32
    %44 = vector.broadcast %cst_22 : f32 to vector<256x256xf32>
    %45 = arith.cmpf oge, %15, %44 : vector<256x256xf32>
    %cst_23 = arith.constant 0.000000e+00 : f32
    %46 = vector.broadcast %cst_23 : f32 to vector<256x256xf32>
    %47 = arith.subf %46, %43 : vector<256x256xf32>
    %48 = arith.select %45, %43, %47 : vector<256x256xi1>, vector<256x256xf32>
    %cst_24 = arith.constant 5.000000e-01 : f32
    %49 = vector.broadcast %cst_24 : f32 to vector<256x256xf32>
    %50 = arith.mulf %49, %13 : vector<256x256xf32>
    %cst_25 = arith.constant 1.000000e+00 : f32
    %51 = vector.broadcast %cst_25 : f32 to vector<256x256xf32>
    %52 = arith.addf %51, %48 : vector<256x256xf32>
    %53 = arith.mulf %50, %52 : vector<256x256xf32>
    %54 = arith.mulf %8, %53 : vector<256x256xf32>
    %c0_26 = arith.constant 0 : index
    %c0_27 = arith.constant 0 : index
    %55 = vector.load %arg10[%c0_26, %c0_27] : memref<256x128xf32, #tpu.memory_space<vmem>>, vector<256x128xf32>
    %c0_28 = arith.constant 0 : index
    %c0_29 = arith.constant 0 : index
    %56 = vector.load %arg7[%c0_28, %c0_29] : memref<256x128xf32, #tpu.memory_space<vmem>>, vector<256x128xf32>
    %cst_30 = arith.constant dense<0.000000e+00> : vector<256x128xf32>
    %57 = tpu.matmul %54, %56, %cst_30 {dimension_numbers = #tpu.dot_dimension_numbers<[1], [0], [0], [1], [0, 0, 1, 1], [], []>} : vector<256x256xf32>, vector<256x128xf32>, vector<256x128xf32> -> vector<256x128xf32>
    %58 = arith.addf %55, %57 : vector<256x128xf32>
    %c0_31 = arith.constant 0 : index
    %c0_32 = arith.constant 0 : index
    %59 = vector.load %arg10[%c0_31, %c0_32] : memref<256x128xf32, #tpu.memory_space<vmem>>, vector<256x128xf32>
    tpu.vector_store %arg10[%c0_31, %c0_32], %58 {strides = array<i32>} : memref<256x128xf32, #tpu.memory_space<vmem>>, vector<256x128xf32>,
    %c1_i32 = arith.constant 1 : i32
    %60 = arith.cmpi eq, %arg1, %c1_i32 : i32
    %61 = arith.extui %60 : i1 to i32
    %c0_i32_33 = arith.constant 0 : i32
    %62 = arith.cmpi ne, %61, %c0_i32_33 : i32
    scf.if %62 {
      %c0_34 = arith.constant 0 : index
      %c0_35 = arith.constant 0 : index
      %63 = vector.load %arg10[%c0_34, %c0_35] : memref<256x128xf32, #tpu.memory_space<vmem>>, vector<256x128xf32>
      %c0_36 = arith.constant 0 : index
      %c0_37 = arith.constant 0 : index
      %64 = vector.load %arg8[%c0_36, %c0_37] : memref<1x128xf32, #tpu.memory_space<vmem>>, vector<1x128xf32>
      %65 = vector.broadcast %64 : vector<1x128xf32> to vector<256x128xf32>
      %66 = arith.addf %63, %65 : vector<256x128xf32>
      %c0_38 = arith.constant 0 : index
      %c0_39 = arith.constant 0 : index
      %67 = vector.load %arg9[%c0_38, %c0_39] : memref<256x128xf32, #tpu.memory_space<vmem>>, vector<256x128xf32>
      tpu.vector_store %arg9[%c0_38, %c0_39], %66 {strides = array<i32>} : memref<256x128xf32, #tpu.memory_space<vmem>>, vector<256x128xf32>,
    } else {
    }
    return
  }
  func.func @transform_0(%arg0: i32, %arg1: i32) -> (i32, i32) {
    %c0_i32 = arith.constant 0 : i32
    %c0_i32_0 = arith.constant 0 : i32
    return %arg0, %c0_i32 : i32, i32
  }
  func.func @transform_1(%arg0: i32, %arg1: i32) -> (i32, i32) {
    %c0_i32 = arith.constant 0 : i32
    %c0_i32_0 = arith.constant 0 : i32
    return %c0_i32, %arg1 : i32, i32
  }
  func.func @transform_2(%arg0: i32, %arg1: i32) -> (i32, i32) {
    %c0_i32 = arith.constant 0 : i32
    %c0_i32_0 = arith.constant 0 : i32
    return %c0_i32, %arg1 : i32, i32
  }
  func.func @transform_3(%arg0: i32, %arg1: i32) -> (i32, i32) {
    %c0_i32 = arith.constant 0 : i32
    %c0_i32_0 = arith.constant 0 : i32
    return %c0_i32, %arg1 : i32, i32
  }
  func.func @transform_4(%arg0: i32, %arg1: i32) -> (i32, i32) {
    %c0_i32 = arith.constant 0 : i32
    %c0_i32_0 = arith.constant 0 : i32
    return %c0_i32, %arg1 : i32, i32
  }
  func.func @transform_5(%arg0: i32, %arg1: i32) -> (i32, i32) {
    %c0_i32 = arith.constant 0 : i32
    %c0_i32_0 = arith.constant 0 : i32
    return %arg1, %c0_i32 : i32, i32
  }
  func.func @transform_6(%arg0: i32, %arg1: i32) -> (i32, i32) {
    %c0_i32 = arith.constant 0 : i32
    %c0_i32_0 = arith.constant 0 : i32
    %c0_i32_1 = arith.constant 0 : i32
    return %c0_i32, %c0_i32_0 : i32, i32
  }
  func.func @transform_7(%arg0: i32, %arg1: i32) -> (i32, i32) {
    %c0_i32 = arith.constant 0 : i32
    %c0_i32_0 = arith.constant 0 : i32
    return %arg0, %c0_i32 : i32, i32
  }
}

</mosaic_0001>

<bundles_post_ra>
// kernel: tpu_custom_call.1
= control target key start
LH: loop header
LB: loop body
LE: loop exit
PB: predicated region body
PF: predicated region fallthrough
CT: control target
= control target key end

     0   :  { %s7455_s0 = inlined_call_operand.hbm [shape: f32[512,128], index: 0, kind: input, shape index: {}]   ;;  %s7456_s1 = inlined_call_operand.hbm [shape: f32[128,512], index: 1, kind: input, shape index: {}]   ;;  %s7457_s2 = inlined_call_operand.hbm [shape: f32[128,512], index: 2, kind: input, shape index: {}]   ;;  %s7458_s3 = inlined_call_operand.vmem [shape: f32[1,512], index: 3, kind: input, shape index: {}]   ;;  %s7459_s4 = inlined_call_operand.vmem [shape: f32[1,512], index: 4, kind: input, shape index: {}]   ;;  %s7460_s5 = inlined_call_operand.hbm [shape: f32[512,128], index: 5, kind: input, shape index: {}]   ;;  %s7461_s6 = inlined_call_operand.vmem [shape: f32[1,128], index: 6, kind: input, shape index: {}]   ;;  %s7462_s7 = inlined_call_operand.hbm [shape: f32[512,128], index: 7, kind: output, shape index: {}]  }
   0x1   :  { %7565 = sst [smem:[#allocation153_spill]] %s7455_s0 }
   0x2   :  { %7566 = sst [smem:[#allocation154_spill]] %s7456_s1 }
   0x3   :  { %7567 = sst [smem:[#allocation155_spill]] %s7458_s3 }
   0x4   :  { %7568 = sst [smem:[#allocation156_spill]] %s7459_s4 }
   0x5   :  { %7569 = sst [smem:[#allocation157_spill]] %s7461_s6 }
   0x6   :  { %7570 = sst [smem:[#allocation158_spill]] %s7462_s7 }
   0x7   :  { %12 = vsyncpa [#allocation4], 0 }
   0x8   :  { %14 = vsyncpa [#allocation4 + $0x1], 0 }
   0x9   :  { %15 = vsyncpa [#allocation7], 0 }
   0xa   :  { %17 = vsyncpa [#allocation7 + $0x1], 0 }
   0xb   :  { %18 = vsyncpa [#allocation10], 0 }
   0xc   :  { %20 = vsyncpa [#allocation10 + $0x1], 0 }
   0xd   :  { %21 = vsyncpa [#allocation5], 0 }
   0xe   :  { %23 = vsyncpa [#allocation5 + $0x1], 0  ;;  %s4428_s24 = smov 0   ;;  %s4430_s25 = smov 0  }
   0xf   :  { %s4432_s26 = smov 0   ;;  %s4434_s27 = smov 0  }
  0x10   :  { %s4436_s28 = smov 0   ;;  %s4438_s29 = smov 0  }
  0x11   :  { %s4440_s30 = smov 0   ;;  %s4442_s8 = smov 0  }
  0x12   :  { %s4444_s9 = smov 0   ;;  %s4446_s10 = smov 0  }
  0x13   :  { %s4448_s11 = smov 0  }
  0x14 LB: > { %7571 = sst [smem:[#allocation16_spill]] %s4335_s25  ;;  %s38_s12 = sadd.s32 1, %s4363_s9  ;;  %s4371_s11 = sphi %s4448_s11, %s29_s11   ;;  %s4367_s10 = sphi %s4446_s10, %s7990_s10   ;;  %s4363_s9 = sphi %s4444_s9, %s7996_s9   ;;  %s4359_s8 = sphi %s4442_s8, %s7988_s8   ;;  %s4355_s30 = sphi %s4440_s30, %s7995_s30   ;;  %s4351_s29 = sphi %s4438_s29, %s7987_s29   ;;  %s4347_s28 = sphi %s4436_s28, %s7994_s28   ;;  %s4343_s27 = sphi %s4434_s27, %s7993_s27   ;;  %s4339_s26 = sphi %s4432_s26, %s7992_s26   ;;  %s4335_s25 = sphi %s4430_s25, %s7991_s25   ;;  %s4331_s24 = sphi %s4428_s24, %s7984_s24  }
  0x15   : > { %7572 = sst [smem:[#allocation17_spill]] %s4351_s29  ;;  %p7467_p0 = scmp.eq.s32.totalorder %s4371_s11, 0 }
  0x16   : > { %7573 = sst [smem:[#allocation18_spill]] %s4355_s30  ;;  %p4485_p1 = scmp.ge.s32.totalorder %s38_s12, 2 }
  0x17   : > { %7574 = sst [smem:[#allocation19_spill]] %s4359_s8  ;;  %s74_s14 = sadd.s32 1, %s4339_s26 }
  0x18   : > { %7575 = sst [smem:[#allocation20_spill]] %s4367_s10  ;;  %p81_p2 = scmp.ne.s32.totalorder %s4339_s26, %s4335_s25 }
  0x19   : > { %s7576_s13 = scalar_select %p4485_p1, 1, 0 }
  0x1a   : > { %s7998_s12 = smov (%p4485_p1, %s38_s12), 0  ;;  %p83_p4 = por %p81_p2, %p7467_p0 }
  0x1b   : > { %7577 = sst [smem:[#allocation21_spill]] %s7998_s12  ;;  %s71_s15 = ssub.s32 %s4363_s9, %s7998_s12 }
  0x1c   : > { %p7466_p5 = scmp.lt.s32.totalorder %s4371_s11, 4  ;;  %p72_p6 = scmp.eq.s32.totalorder %s71_s15, 0 }
  0x1d   : > { %s286_s16 = sand.u32 1, %s4371_s11   ;;  %s7464_s17 = sand.u32 1, %s4339_s26  }
  0x1e   : > { %s4506_s18 = scalar_select %p72_p6, %s4339_s26, %s74_s14  }
  0x1f   : > { %s4510_s19 = sshll.u32 %s7464_s17, 8  ;;  %s3606_s20 = sshll.u32 %s4363_s9, 8 }
  0x20   : > { %7578 = sst [smem:[#allocation22_spill]] %s4506_s18  ;;  %s7579_s1 = sld [smem:[#allocation154_spill]] }
  0x21   : > { %s290_s12 = scalar_lea.vmem [#allocation6], %s4510_s19  ;;  %p4521_p7 = pnand %p7466_p5, %p83_p4 }
  0x22   : > { %s297_s15 = sshll.u32 %s290_s12, 4  ;;  %s4530_s21 = scalar_lea.hbm %s7457_s2, %s3606_s20  ;;  %s4525_s15 = int_to_ptr.vmem [resolvable:$true] %s297_s15 }
  0x23   : > { %s7580_s14 = scalar_select %p4521_p7, 1, 0 }
  0x24   : > { %s4532_s22 = scalar_lea.sflag [#allocation7], %s286_s16  ;;  %p4538_p9 = pneg %p4521_p7 }
  0x26   : > { %s4516_s23 = scalar_lea.hbm %s7579_s1, %s3606_s20  ;;  %s4126_s4 = scalar_lea.hbm %s7579_s1, 8192 }
  0x27   : > { %s4121_s7 = scalar_lea.hbm %s4516_s23, 4096  ;;  %p4127_p12 = scmp.lt.u32.totalorder %s4516_s23, %s7579_s1 }
  0x28   : > { %p4122_p8 = scmp.ne.s32.totalorder %s4516_s23, %s4121_s7  ;;  %p4128_p13 = scmp.lt.u32.totalorder %s4126_s4, %s4121_s7 }
  0x29   : > { %p4130_p4 = scmp.lt.u32.totalorder %s4121_s7, %s4516_s23 }
  0x2a   : > { %p4124_p10 = pnand %p4538_p9, %p4122_p8  ;;  %p4129_p2 = por %p4128_p13, %p4127_p12 }
  0x2c   : > { %p4125_p11 = pneg %p4124_p10  ;;  %p4131_p6 = por %p4130_p4, %p4129_p2 }
  0x2e   : > { %p4132_p5 = pnand %p4131_p6, %p4125_p11 }
  0x30   : > { %4135 = shalt.err (!%p4132_p5)
}
  0x31   : > { %s4136_s16 = scalar_lea.vmem %s4525_s15, 4096  ;;  %s4373_s6 = smov [#allocation6]  }
  0x32   : > { %p4137_p8 = scmp.ne.s32.totalorder %s4525_s15, %s4136_s16  ;;  %s4141_s8 = sshll.u32 %s4373_s6, 4  ;;  %s4142_s8 = int_to_ptr.vmem [resolvable:$false] %s4141_s8 }
  0x33   : > { %s4143_s20 = scalar_lea.vmem %s4142_s8, 8192  ;;  %p4144_p0 = scmp.lt.s32.totalorder %s4525_s15, %s4142_s8 }
  0x34   : > { %p4139_p10 = pnand %p4137_p8, %p4538_p9  ;;  %p4145_p1 = scmp.lt.s32.totalorder %s4143_s20, %s4136_s16 }
  0x36   : > { %p4140_p3 = pneg %p4139_p10  ;;  %p4146_p12 = por %p4145_p1, %p4144_p0 }
  0x38   : > { %p4147_p13 = pnand %p4146_p12, %p4140_p3 }
  0x3a   : > { %4150 = shalt.err (!%p4147_p13)
}
  0x3b   : > { %s7469_s4 = smov 512   ;;  %s7470_s7 = smov 256  }
  0x3c   : > { %s7471_s17 = smov 16   ;;  %p3589_p0 = scmp.ge.s32.totalorder %s4371_s11, 1 }
  0x3d   : > { %3754 = dma.hbm_to_vmem [thread:$0]  (!%p4521_p7), %s4516_s23, 4096, %s4525_s15, %s4532_s22, %s7469_s4, %s7470_s7, %s7471_s17  }
  0x3e   : > { %p363_p1 = scmp.lt.s32.totalorder %s4371_s11, 5  ;;  %s4572_s16 = sadd.s32 4294967295, %s4371_s11  }
  0x3f   : > { %s3574_s6 = sadd.s32 4294967294, %s4371_s11   ;;  %s41_s8 = sadd.s32 1, %s4367_s10 }
  0x40   : > { %p4567_p3 = pnand %p3589_p0, %p363_p1  ;;  %p7583_p5 = scmp.ne.s32.totalorder %s7576_s13, 0 }
  0x41   : > { %s48_s23 = sadd.s32 1, %s4351_s29  ;;  %p55_p11 = scmp.ne.s32.totalorder %s4351_s29, %s4347_s28 }
  0x42   : > { %s7582_s18 = scalar_select %p4567_p3, 1, 0 }
  0x43   : > { %s8000_s8 = smov (!%p7583_p5, %s41_s8), %s4367_s10  ;;  %p61_p4 = scmp.ne.s32.totalorder %s4347_s28, %s4343_s27 }
  0x44   : > { %p43_p2 = scmp.ge.s32.totalorder %s8000_s8, 2  ;;  %p7584_p6 = scmp.eq.s32.totalorder %s4371_s11, 0 }
  0x45   : > { %p62_p10 = scmp.eq.s32.totalorder %s4572_s16, 0  ;;  %p7588_p13 = scmp.ne.s32.totalorder %s4335_s25, %s4331_s24 }
  0x46   : > { %p4586_p8 = por %p7584_p6, %p55_p11  ;;  %s8002_s8 = smov (%p43_p2, %s8000_s8), 0 }
  0x47   : > { %7586 = sst [smem:[#allocation23_spill]] %s8002_s8  ;;  %p4596_p12 = por %p62_p10, %p61_p4 }
  0x48   : > { %p4603_p0 = por %p7588_p13, %p62_p10  ;;  %s45_s4 = ssub.s32 %s4367_s10, %s8002_s8 }
  0x49   : > { %s7587_s13 = scalar_select %p4596_p12, 1, 0 }
  0x4a   : > { %s7589_s20 = scalar_select %p4603_p0, 1, 0 }
  0x4b   : > { %p236_p1 = scmp.eq.s32.totalorder %s4572_s16, 3  ;;  %p46_p5 = scmp.eq.s32.totalorder %s45_s4, 0 }
  0x4c   : > { %7590 = sst [smem:[#allocation24_spill]] %s7589_s20  ;;  %p242_p6 = scmp.eq.s32.totalorder %s3574_s6, 3 }
  0x4d   : > { %p4610_p3 = por %p236_p1, %p55_p11  ;;  %s265_s17 = sand.u32 1, %s4351_s29  }
  0x4e   : > { %s4616_s1 = scalar_select %p46_p5, %s4351_s29, %s48_s23  }
  0x4f   : > { %s7591_s7 = scalar_select %p4610_p3, 1, 0 }
  0x50   : > { %7592 = sst [smem:[#allocation25_spill]] %s4616_s1  ;;  %p4621_p2 = por %p242_p6, %p61_p4 }
  0x51   : > { %s3577_s24 = sshll.u32 %s265_s17, 8  ;;  %s3605_s30 = sshll.u32 %s4367_s10, 12 }
  0x52   : > { %s7593_s3 = scalar_select %p4621_p2, 1, 0 }
  0x53   : > { %s7594_s0 = sld [smem:[#allocation153_spill]]  ;;  %s269_s4 = scalar_lea.vmem [#allocation3], %s3577_s24 }
  0x54   : > { %s276_s6 = sshll.u32 %s269_s4, 4  ;;  %p7595_p11 = scmp.lt.s32.totalorder %s4371_s11, 4  ;;  %s4639_s6 = int_to_ptr.vmem [resolvable:$true] %s276_s6 }
  0x55   : > { %s4641_s10 = scalar_lea.sflag [#allocation4], %s265_s17 }
  0x56   : > { %p4635_p10 = pnand %p7595_p11, %p4586_p8 }
  0x58   : > { %p4153_p13 = pneg %p4635_p10 }
  0x59   : > { %s4629_s8 = scalar_lea.hbm %s7594_s0, %s3605_s30  ;;  %s4156_s20 = scalar_lea.hbm %s7594_s0, 8192 }
  0x5a   : > { %s4151_s25 = scalar_lea.hbm %s4629_s8, 4096  ;;  %p4157_p8 = scmp.lt.u32.totalorder %s4629_s8, %s7594_s0 }
  0x5b   : > { %p4152_p4 = scmp.ne.s32.totalorder %s4629_s8, %s4151_s25  ;;  %p4158_p6 = scmp.lt.u32.totalorder %s4156_s20, %s4151_s25 }
  0x5c   : > { %p4160_p2 = scmp.lt.u32.totalorder %s4151_s25, %s4629_s8 }
  0x5d   : > { %p4154_p1 = pnand %p4153_p13, %p4152_p4  ;;  %p4159_p11 = por %p4158_p6, %p4157_p8 }
  0x5f   : > { %p4155_p5 = pneg %p4154_p1  ;;  %p4161_p3 = por %p4160_p2, %p4159_p11 }
  0x61   : > { %p4162_p0 = pnand %p4161_p3, %p4155_p5 }
  0x63   : > { %4165 = shalt.err (!%p4162_p0)
}
  0x64   : > { %s4166_s17 = scalar_lea.vmem %s4639_s6, 4096  ;;  %s4377_s30 = smov [#allocation3]  }
  0x65   : > { %p4167_p4 = scmp.ne.s32.totalorder %s4639_s6, %s4166_s17  ;;  %s4171_s15 = sshll.u32 %s4377_s30, 4  ;;  %s4172_s15 = int_to_ptr.vmem [resolvable:$false] %s4171_s15 }
  0x66   : > { %s4173_s24 = scalar_lea.vmem %s4172_s15, 8192  ;;  %p4174_p7 = scmp.lt.s32.totalorder %s4639_s6, %s4172_s15 }
  0x67   : > { %p4169_p1 = pnand %p4167_p4, %p4153_p13  ;;  %p4175_p8 = scmp.lt.s32.totalorder %s4173_s24, %s4166_s17 }
  0x69   : > { %p4170_p12 = pneg %p4169_p1  ;;  %p4176_p6 = por %p4175_p8, %p4174_p7 }
  0x6b   : > { %p4177_p2 = pnand %p4176_p6, %p4170_p12 }
  0x6d   : > { %4180 = shalt.err (!%p4177_p2)
}
  0x6e   : > { %s7484_s25 = smov 128   ;;  %s4379_s20 = smov 8  }
  0x6f   : > { %3751 = dma.hbm_to_vmem [thread:$0]  (!%p4635_p10), %s4629_s8, 4096, %s4639_s6, %s4641_s10, %s7484_s25, %s7484_s25, %s4379_s20  }
  0x70   : > { %s311_s4 = scalar_lea.vmem [#allocation8], %s4510_s19  ;;  %s3608_s30 = sshll.u32 %s4363_s9, 12 }
  0x71   : > { %s318_s17 = sshll.u32 %s311_s4, 4  ;;  %s4181_s15 = scalar_lea.hbm %s4530_s21, 4096  ;;  %s4673_s17 = int_to_ptr.vmem [resolvable:$true] %s318_s17 }
  0x72   : > { %p4182_p7 = scmp.ne.s32.totalorder %s4530_s21, %s4181_s15  ;;  %s4186_s1 = scalar_lea.hbm %s7457_s2, 8192 }
  0x73   : > { %p4187_p0 = scmp.lt.u32.totalorder %s4530_s21, %s7457_s2  ;;  %p4188_p13 = scmp.lt.u32.totalorder %s4186_s1, %s4181_s15 }
  0x74   : > { %p4184_p3 = pnand %p4182_p7, %p4538_p9  ;;  %p4190_p5 = scmp.lt.u32.totalorder %s4181_s15, %s4530_s21 }
  0x75   : > { %p4189_p10 = por %p4188_p13, %p4187_p0 }
  0x76   : > { %p4185_p12 = pneg %p4184_p3 }
  0x77   : > { %p4191_p11 = por %p4190_p5, %p4189_p10 }
  0x79   : > { %p4192_p4 = pnand %p4191_p11, %p4185_p12 }
  0x7b   : > { %4195 = shalt.err (!%p4192_p4)
}
  0x7c   : > { %s4196_s10 = scalar_lea.vmem %s4673_s17, 4096  ;;  %s4380_s0 = smov [#allocation8]  }
  0x7d   : > { %p4197_p1 = scmp.ne.s32.totalorder %s4673_s17, %s4196_s10  ;;  %s4201_s8 = sshll.u32 %s4380_s0, 4  ;;  %s4202_s8 = int_to_ptr.vmem [resolvable:$false] %s4201_s8 }
  0x7e   : > { %s4203_s29 = scalar_lea.vmem %s4202_s8, 8192  ;;  %p4204_p2 = scmp.lt.s32.totalorder %s4673_s17, %s4202_s8 }
  0x7f   : > { %p4199_p8 = pnand %p4197_p1, %p4538_p9  ;;  %p4205_p7 = scmp.lt.s32.totalorder %s4203_s29, %s4196_s10 }
  0x81   : > { %p4200_p6 = pneg %p4199_p8  ;;  %p4206_p3 = por %p4205_p7, %p4204_p2 }
  0x83   : > { %p4207_p0 = pnand %p4206_p3, %p4200_p6 }
  0x85   : > { %4210 = shalt.err (!%p4207_p0)
}
  0x86   : > { %p7597_p12 = scmp.ne.s32.totalorder %s7580_s14, 0  ;;  %s7598_s1 = smov 16  }
  0x87   : > { %s7599_s6 = smov 256   ;;  %s7600_s4 = smov 512  }
  0x88   : > { %3757 = dma.hbm_to_vmem [thread:$0]  (!%p7597_p12), %s4530_s21, 4096, %s4673_s17, %s4532_s22, %s7600_s4, %s7599_s6, %s7598_s1  }
  0x89   : > { %s4706_s23 = scalar_lea.hbm %s7460_s5, %s3608_s30  ;;  %s348_s10 = scalar_lea.vmem [#allocation9], %s4510_s19 }
  0x8a   : > { %s355_s0 = sshll.u32 %s348_s10, 4  ;;  %s7601_s8 = sand.u32 1, %s4339_s26   ;;  %s4709_s0 = int_to_ptr.vmem [resolvable:$true] %s355_s0 }
  0x8b   : > { %s4713_s29 = scalar_lea.sflag [#allocation10], %s7601_s8  ;;  %s4211_s25 = scalar_lea.hbm %s4706_s23, 4096 }
  0x8c   : > { %p4212_p13 = scmp.ne.s32.totalorder %s4706_s23, %s4211_s25  ;;  %s4216_s17 = scalar_lea.hbm %s7460_s5, 8192 }
  0x8d   : > { %p4217_p11 = scmp.lt.u32.totalorder %s4706_s23, %s7460_s5  ;;  %p4218_p4 = scmp.lt.u32.totalorder %s4216_s17, %s4211_s25 }
  0x8e   : > { %p4214_p10 = pnand %p4212_p13, %p4538_p9  ;;  %p4220_p8 = scmp.lt.u32.totalorder %s4211_s25, %s4706_s23 }
  0x8f   : > { %p4219_p1 = por %p4218_p4, %p4217_p11 }
  0x90   : > { %p4215_p5 = pneg %p4214_p10 }
  0x91   : > { %p4221_p6 = por %p4220_p8, %p4219_p1 }
  0x93   : > { %p4222_p2 = pnand %p4221_p6, %p4215_p5 }
  0x95   : > { %4225 = shalt.err (!%p4222_p2)
}
  0x96   : > { %s4226_s19 = scalar_lea.vmem %s4709_s0, 4096  ;;  %s4381_s6 = smov [#allocation9]  }
  0x97   : > { %p4227_p7 = scmp.ne.s32.totalorder %s4709_s0, %s4226_s19  ;;  %s4231_s4 = sshll.u32 %s4381_s6, 4  ;;  %s4232_s4 = int_to_ptr.vmem [resolvable:$false] %s4231_s4 }
  0x98   : > { %s4233_s15 = scalar_lea.vmem %s4232_s4, 8192  ;;  %p4234_p13 = scmp.lt.s32.totalorder %s4709_s0, %s4232_s4 }
  0x99   : > { %p4229_p3 = pnand %p4227_p7, %p4538_p9  ;;  %p4235_p10 = scmp.lt.s32.totalorder %s4233_s15, %s4226_s19 }
  0x9b   : > { %p4230_p0 = pneg %p4229_p3  ;;  %p4236_p11 = por %p4235_p10, %p4234_p13 }
  0x9d   : > { %p4237_p4 = pnand %p4236_p11, %p4230_p0 }
  0x9f   : > { %4240 = shalt.err (!%p4237_p4)
}
  0xa0   : > { %s7602_s25 = smov 128   ;;  %p7603_p9 = scmp.ne.s32.totalorder %s7582_s18, 0 }
  0xa1   : > { %3760 = dma.hbm_to_vmem [thread:$0]  (!%p7597_p12), %s4706_s23, 4096, %s4709_s0, %s4713_s29, %s7602_s25, %s7602_s25, %s4379_s20  }
  0xa2   : > { %367 = sbr.rel (%p7603_p9) target bundleno = 1271 (0x4f7), region = 48 }
  0xa9   : > { %s4743_s12 = sand.u32 1, %s4347_s28   ;;  %p7604_p5 = scmp.ne.s32.totalorder %s7587_s13, 0 }
  0xaa   : > { %s3590_s24 = sshll.u32 %s4743_s12, 8  ;;  %s370_s10 = scalar_lea.sflag [#allocation4], %s4743_s12 }
  0xab   : > { %s4747_s8 = scalar_lea.vmem [#allocation3], %s3590_s24 }
  0xac   : > { %4314 = dma.done.wait (%p7604_p5), %s370_s10, 4096  }
  0xad   : > { %4316 = vsyncadd (%p7604_p5), %s370_s10, 4294963200  ;;  %s7605_s14 = sld [smem:[#allocation16_spill]]  ;;  %s7606_s20 = sld [smem:[#allocation24_spill]] }
  0xae   : > { %s378_s18 = sand.u32 1, %s4572_s16  }
  0xaf   : > { %s379_s29 = scalar_lea.sflag [#allocation7], %s378_s18 }
  0xb3   : > { %s380_s23 = sand.u32 1, %s7605_s14   ;;  %p7607_p12 = scmp.ne.s32.totalorder %s7606_s20, 0 }
  0xb4   : > { %s3591_s0 = sshll.u32 %s380_s23, 8 }
  0xb5   : > { %s4755_s21 = scalar_lea.vmem [#allocation6], %s3591_s0 }
  0xb6   : > { %4318 = dma.done.wait (%p7607_p12), %s379_s29, 8192  }
  0xb7   : > { %4320 = vsyncadd (%p7607_p12), %s379_s29, 4294959104  ;;  %s4761_s22 = scalar_lea.vmem [#allocation8], %s3591_s0  ;;  %s397_s17 = scalar_lea.sflag [#allocation10], %s380_s23 }
  0xb8   : > { %s4763_s13 = scalar_lea.vmem [#allocation9], %s3591_s0 }
  0xb9   : > { %4322 = dma.done.wait (%p7607_p12), %s397_s17, 4096  }
  0xba   : > { %4324 = vsyncadd (%p7607_p12), %s397_s17, 4294963200  ;;  %s7608_s16 = sld [smem:[#allocation18_spill]]  ;;  %s7609_s6 = sld [smem:[#allocation155_spill]] }
  0xbb   : > { %s7610_s10 = sld [smem:[#allocation156_spill]]  ;;  %s4780_s18 = scalar_lea.vmem [#allocation11], %s3590_s24 }
  0xc0   : > { %s3595_s30 = sshll.u32 %s7608_s16, 1  ;;  %p3597_p8 = scmp.ne.s32.totalorder %s7608_s16, 0 }
  0xc1   : > { %p458_p1 = scmp.lt.s32.totalorder %s3595_s30, 3  ;;  %v4382_v0 = vmov (!%p3597_p8), 0.0  }
  0xc2   : > { %472 = sbr.rel (%p3597_p8) target bundleno = 210 (0xd2), region = 68  ;;  %473 = vst [vmem:[#allocation2] sm:$0xff] (!%p3597_p8), %v4382_v0  ;;  %474 = vst [vmem:[#allocation2 + $0x8] sm:$0xff] (!%p3597_p8), %v4382_v0 }
  0xc3   : > { %s8004_s30 = smov (!%p458_p1, %s3595_s30), 3  ;;  %475 = vst [vmem:[#allocation2 + $0x10] sm:$0xff] (!%p3597_p8), %v4382_v0  ;;  %476 = vst [vmem:[#allocation2 + $0x18] sm:$0xff] (!%p3597_p8), %v4382_v0 }
  0xc4   : > { %s460_s4 = scalar_lea.vmem %s7609_s6, %s8004_s30  ;;  %s465_s14 = scalar_lea.vmem %s7610_s10, %s8004_s30  ;;  %477 = vst [vmem:[#allocation2 + $0x20] sm:$0xff] (!%p3597_p8), %v4382_v0  ;;  %478 = vst [vmem:[#allocation2 + $0x28] sm:$0xff] (!%p3597_p8), %v4382_v0 }
  0xc5   : > { %479 = vst [vmem:[#allocation2 + $0x30] sm:$0xff] (!%p3597_p8), %v4382_v0  ;;  %480 = vst [vmem:[#allocation2 + $0x38] sm:$0xff] (!%p3597_p8), %v4382_v0 }
  0xc6   : > { %481 = vst [vmem:[#allocation2 + $0x40] sm:$0xff] (!%p3597_p8), %v4382_v0  ;;  %482 = vst [vmem:[#allocation2 + $0x48] sm:$0xff] (!%p3597_p8), %v4382_v0 }
  0xc7   : > { %483 = vst [vmem:[#allocation2 + $0x50] sm:$0xff] (!%p3597_p8), %v4382_v0  ;;  %484 = vst [vmem:[#allocation2 + $0x58] sm:$0xff] (!%p3597_p8), %v4382_v0 }
  0xc8   : > { %485 = vst [vmem:[#allocation2 + $0x60] sm:$0xff] (!%p3597_p8), %v4382_v0  ;;  %486 = vst [vmem:[#allocation2 + $0x68] sm:$0xff] (!%p3597_p8), %v4382_v0 }
  0xc9   : > { %487 = vst [vmem:[#allocation2 + $0x70] sm:$0xff] %v4382_v0  ;;  %488 = vst [vmem:[#allocation2 + $0x78] sm:$0xff] %v4382_v0 }
  0xca   : > { %489 = vst [vmem:[#allocation2 + $0x80] sm:$0xff] %v4382_v0  ;;  %490 = vst [vmem:[#allocation2 + $0x88] sm:$0xff] %v4382_v0 }
  0xcb   : > { %491 = vst [vmem:[#allocation2 + $0x90] sm:$0xff] %v4382_v0  ;;  %492 = vst [vmem:[#allocation2 + $0x98] sm:$0xff] %v4382_v0 }
  0xcc   : > { %493 = vst [vmem:[#allocation2 + $0xa0] sm:$0xff] %v4382_v0  ;;  %494 = vst [vmem:[#allocation2 + $0xa8] sm:$0xff] %v4382_v0 }
  0xcd   : > { %495 = vst [vmem:[#allocation2 + $0xb0] sm:$0xff] %v4382_v0  ;;  %496 = vst [vmem:[#allocation2 + $0xb8] sm:$0xff] %v4382_v0 }
  0xce   : > { %497 = vst [vmem:[#allocation2 + $0xc0] sm:$0xff] %v4382_v0  ;;  %498 = vst [vmem:[#allocation2 + $0xc8] sm:$0xff] %v4382_v0 }
  0xcf   : > { %499 = vst [vmem:[#allocation2 + $0xd0] sm:$0xff] %v4382_v0  ;;  %500 = vst [vmem:[#allocation2 + $0xd8] sm:$0xff] %v4382_v0 }
  0xd0   : > { %501 = vst [vmem:[#allocation2 + $0xe0] sm:$0xff] %v4382_v0  ;;  %502 = vst [vmem:[#allocation2 + $0xe8] sm:$0xff] %v4382_v0 }
  0xd1   : > { %503 = vst [vmem:[#allocation2 + $0xf0] sm:$0xff] %v4382_v0  ;;  %504 = vst [vmem:[#allocation2 + $0xf8] sm:$0xff] %v4382_v0 }
  0xd2 PF: > { %v538_v1 = vld [vmem:[%s4755_s21 + $0x8] sm:$0xff]  ;;  %v540_v2 = vld [vmem:[%s4755_s21 + $0x18] sm:$0xff]  ;;  %v537_v3 = vld [vmem:[%s4755_s21] sm:$0xff]  ;;  %v4383_v8 = vmov 0.0  }
  0xd3   : > { %v3610_v4 = vpack.c.bf16 %v540_v2, %v538_v1  ;;  %v539_v5 = vld [vmem:[%s4755_s21 + $0x10] sm:$0xff]  ;;  %v542_v6 = vld [vmem:[%s4755_s21 + $0x28] sm:$0xff]  ;;  %v544_v7 = vld [vmem:[%s4755_s21 + $0x38] sm:$0xff]  ;;  %741 = vmatprep.mubr.f32.mxu1 %v4383_v8  ;;  %645 = vmatprep.mubr.f32.mxu0 %v4383_v8 }
  0xd4   : > { %v3612_v9 = vpack.c.bf16 %v539_v5, %v537_v3  ;;  %v3614_v10 = vpack.c.bf16 %v544_v7, %v542_v6  ;;  %v541_v11 = vld [vmem:[%s4755_s21 + $0x20] sm:$0xff]  ;;  %v543_v12 = vld [vmem:[%s4755_s21 + $0x30] sm:$0xff]  ;;  %v546_v13 = vld [vmem:[%s4755_s21 + $0x48] sm:$0xff] }
  0xd5   : > { %3722 = vmatprep.subr.bf16.mxu1 %v3610_v4  ;;  %v548_v14 = vld [vmem:[%s4755_s21 + $0x58] sm:$0xff]  ;;  %3611 = vmatprep.subr.bf16.mxu0 %v3610_v4  ;;  %v3616_v15 = vpack.c.bf16 %v543_v12, %v541_v11  ;;  %v545_v17 = vld [vmem:[%s4755_s21 + $0x40] sm:$0xff]  ;;  %v547_v18 = vld [vmem:[%s4755_s21 + $0x50] sm:$0xff] }
  0xd6   : > { %3730 = vmatpush1.bf16.msra.mxu1 %v3612_v9  ;;  %3613 = vmatpush1.bf16.msra.mxu0 %v3612_v9  ;;  %v3618_v16 = vpack.c.bf16 %v548_v14, %v546_v13  ;;  %v550_v19 = vld [vmem:[%s4755_s21 + $0x68] sm:$0xff]  ;;  %v552_v20 = vld [vmem:[%s4755_s21 + $0x78] sm:$0xff]  ;;  %v3620_v21 = vpack.c.bf16 %v547_v18, %v545_v17  ;;  %v549_v23 = vld [vmem:[%s4755_s21 + $0x60] sm:$0xff] }
  0xd7   : > { %3723 = vmatprep.subr.bf16.mxu1 %v3614_v10  ;;  %3615 = vmatprep.subr.bf16.mxu0 %v3614_v10  ;;  %v3622_v22 = vpack.c.bf16 %v552_v20, %v550_v19  ;;  %v551_v24 = vld [vmem:[%s4755_s21 + $0x70] sm:$0xff]  ;;  %v554_v25 = vld [vmem:[%s4755_s21 + $0x88] sm:$0xff]  ;;  %v556_v26 = vld [vmem:[%s4755_s21 + $0x98] sm:$0xff] }
  0xd8   : > { %v3624_v27 = vpack.c.bf16 %v551_v24, %v549_v23  ;;  %v3626_v28 = vpack.c.bf16 %v556_v26, %v554_v25  ;;  %v553_v29 = vld [vmem:[%s4755_s21 + $0x80] sm:$0xff]  ;;  %v555_v30 = vld [vmem:[%s4755_s21 + $0x90] sm:$0xff]  ;;  %v558_v31 = vld [vmem:[%s4755_s21 + $0xa8] sm:$0xff] }
  0xd9   : > { %v560_v32 = vld [vmem:[%s4755_s21 + $0xb8] sm:$0xff]  ;;  %v3628_v33 = vpack.c.bf16 %v555_v30, %v553_v29  ;;  %v557_v35 = vld [vmem:[%s4755_s21 + $0xa0] sm:$0xff]  ;;  %v559_v36 = vld [vmem:[%s4755_s21 + $0xb0] sm:$0xff] }
  0xda   : > { %3731 = vmatpush1.bf16.msra.mxu1 %v3616_v15  ;;  %3617 = vmatpush1.bf16.msra.mxu0 %v3616_v15  ;;  %v3630_v34 = vpack.c.bf16 %v560_v32, %v558_v31  ;;  %v562_v37 = vld [vmem:[%s4755_s21 + $0xc8] sm:$0xff]  ;;  %v564_v38 = vld [vmem:[%s4755_s21 + $0xd8] sm:$0xff]  ;;  %v3632_v39 = vpack.c.bf16 %v559_v36, %v557_v35  ;;  %v561_v41 = vld [vmem:[%s4755_s21 + $0xc0] sm:$0xff] }
  0xdb   : > { %3724 = vmatprep.subr.bf16.mxu1 %v3618_v16  ;;  %3619 = vmatprep.subr.bf16.mxu0 %v3618_v16  ;;  %v3634_v40 = vpack.c.bf16 %v564_v38, %v562_v37  ;;  %v563_v42 = vld [vmem:[%s4755_s21 + $0xd0] sm:$0xff]  ;;  %v566_v43 = vld [vmem:[%s4755_s21 + $0xe8] sm:$0xff]  ;;  %v568_v44 = vld [vmem:[%s4755_s21 + $0xf8] sm:$0xff] }
  0xdc   : > { %v3636_v45 = vpack.c.bf16 %v563_v42, %v561_v41  ;;  %v3638_v46 = vpack.c.bf16 %v568_v44, %v566_v43  ;;  %v565_v47 = vld [vmem:[%s4755_s21 + $0xe0] sm:$0xff]  ;;  %v567_v48 = vld [vmem:[%s4755_s21 + $0xf0] sm:$0xff]  ;;  %v839_v49 = vld [vmem:[%s4761_s22 + $0x8] sm:$0xff]  ;;  %s7978_s21 = sld [smem:[#allocation18_spill]] }
  0xdd   : > { %v841_v50 = vld [vmem:[%s4761_s22 + $0x18] sm:$0xff]  ;;  %v3640_v51 = vpack.c.bf16 %v567_v48, %v565_v47  ;;  %v838_v53 = vld [vmem:[%s4761_s22] sm:$0xff]  ;;  %v840_v54 = vld [vmem:[%s4761_s22 + $0x10] sm:$0xff] }
  0xde   : > { %3732 = vmatpush1.bf16.msra.mxu1 %v3620_v21  ;;  %3621 = vmatpush1.bf16.msra.mxu0 %v3620_v21  ;;  %v3642_v52 = vpack.c.bf16 %v841_v50, %v839_v49  ;;  %v843_v55 = vld [vmem:[%s4761_s22 + $0x28] sm:$0xff]  ;;  %v845_v56 = vld [vmem:[%s4761_s22 + $0x38] sm:$0xff]  ;;  %v4824_v57 = vld [vmem:[%s4747_s8 + $0x80] sm:$0xff]  ;;  %v3644_v58 = vpack.c.bf16 %v840_v54, %v838_v53 }
  0xdf   : > { %3725 = vmatprep.subr.bf16.mxu1 %v3622_v22  ;;  %3623 = vmatprep.subr.bf16.mxu0 %v3622_v22  ;;  %v3646_v59 = vpack.c.bf16 %v845_v56, %v843_v55  ;;  %v842_v60 = vld [vmem:[%s4761_s22 + $0x20] sm:$0xff]  ;;  %v844_v61 = vld [vmem:[%s4761_s22 + $0x30] sm:$0xff]  ;;  %v847_v62 = vld [vmem:[%s4761_s22 + $0x48] sm:$0xff] }
  0xe0   : > { %v849_v63 = vld [vmem:[%s4761_s22 + $0x58] sm:$0xff]  ;;  %v4831_v0 = vld [vmem:[%s4747_s8] sm:$0xff]  ;;  %v4837_v1 = vld [vmem:[%s4747_s8 + $0x88] sm:$0xff]  ;;  %v3648_v2 = vpack.c.bf16 %v844_v61, %v842_v60 }
  0xe1   : > { %v3650_v3 = vpack.c.bf16 %v849_v63, %v847_v62  ;;  %v846_v4 = vld [vmem:[%s4761_s22 + $0x40] sm:$0xff]  ;;  %v848_v5 = vld [vmem:[%s4761_s22 + $0x50] sm:$0xff]  ;;  %v851_v6 = vld [vmem:[%s4761_s22 + $0x68] sm:$0xff] }
  0xe2   : > { %3733 = vmatpush1.bf16.msra.mxu1 %v3624_v27  ;;  %3625 = vmatpush1.bf16.msra.mxu0 %v3624_v27  ;;  %v853_v7 = vld [vmem:[%s4761_s22 + $0x78] sm:$0xff]  ;;  %v4845_v9 = vld [vmem:[%s4747_s8 + $0x8] sm:$0xff]  ;;  %v4851_v10 = vld [vmem:[%s4747_s8 + $0x90] sm:$0xff]  ;;  %v3652_v11 = vpack.c.bf16 %v848_v5, %v846_v4  ;;  %p3598_p6 = scmp.ne.s32.totalorder %s7978_s21, 1 }
  0xe3   : > { %3726 = vmatprep.subr.bf16.mxu1 %v3626_v28  ;;  %3627 = vmatprep.subr.bf16.mxu0 %v3626_v28  ;;  %v3654_v12 = vpack.c.bf16 %v853_v7, %v851_v6  ;;  %v850_v13 = vld [vmem:[%s4761_s22 + $0x60] sm:$0xff]  ;;  %v852_v14 = vld [vmem:[%s4761_s22 + $0x70] sm:$0xff]  ;;  %v855_v15 = vld [vmem:[%s4761_s22 + $0x88] sm:$0xff] }
  0xe4   : > { %v857_v16 = vld [vmem:[%s4761_s22 + $0x98] sm:$0xff]  ;;  %v4859_v17 = vld [vmem:[%s4747_s8 + $0x10] sm:$0xff]  ;;  %v3656_v19 = vpack.c.bf16 %v852_v14, %v850_v13  ;;  %v854_v21 = vld [vmem:[%s4761_s22 + $0x80] sm:$0xff] }
  0xe5   : > { %v4865_v18 = vld [vmem:[%s4747_s8 + $0x98] sm:$0xff]  ;;  %v3658_v20 = vpack.c.bf16 %v857_v16, %v855_v15  ;;  %v856_v22 = vld [vmem:[%s4761_s22 + $0x90] sm:$0xff]  ;;  %v859_v23 = vld [vmem:[%s4761_s22 + $0xa8] sm:$0xff] }
  0xe6   : > { %3734 = vmatpush1.bf16.msra.mxu1 %v3628_v33  ;;  %3629 = vmatpush1.bf16.msra.mxu0 %v3628_v33  ;;  %v861_v24 = vld [vmem:[%s4761_s22 + $0xb8] sm:$0xff]  ;;  %v4879_v26 = vld [vmem:[%s4747_s8 + $0xa0] sm:$0xff]  ;;  %v3660_v27 = vpack.c.bf16 %v856_v22, %v854_v21  ;;  %v860_v30 = vld [vmem:[%s4761_s22 + $0xb0] sm:$0xff] }
  0xe7   : > { %3727 = vmatprep.subr.bf16.mxu1 %v3630_v34  ;;  %3631 = vmatprep.subr.bf16.mxu0 %v3630_v34  ;;  %v4873_v25 = vld [vmem:[%s4747_s8 + $0x18] sm:$0xff]  ;;  %v3662_v28 = vpack.c.bf16 %v861_v24, %v859_v23  ;;  %v858_v29 = vld [vmem:[%s4761_s22 + $0xa0] sm:$0xff]  ;;  %v863_v31 = vld [vmem:[%s4761_s22 + $0xc8] sm:$0xff] }
  0xe8   : > { %v865_v32 = vld [vmem:[%s4761_s22 + $0xd8] sm:$0xff]  ;;  %v4887_v33 = vld [vmem:[%s4747_s8 + $0x20] sm:$0xff]  ;;  %v4893_v34 = vld [vmem:[%s4747_s8 + $0xa8] sm:$0xff]  ;;  %v3664_v35 = vpack.c.bf16 %v860_v30, %v858_v29 }
  0xe9   : > { %v3666_v36 = vpack.c.bf16 %v865_v32, %v863_v31  ;;  %v862_v37 = vld [vmem:[%s4761_s22 + $0xc0] sm:$0xff]  ;;  %v864_v38 = vld [vmem:[%s4761_s22 + $0xd0] sm:$0xff]  ;;  %v4901_v41 = vld [vmem:[%s4747_s8 + $0x28] sm:$0xff] }
  0xea   : > { %3735 = vmatpush1.bf16.msra.mxu1 %v3632_v39  ;;  %3633 = vmatpush1.bf16.msra.mxu0 %v3632_v39  ;;  %v867_v39 = vld [vmem:[%s4761_s22 + $0xe8] sm:$0xff]  ;;  %v4907_v42 = vld [vmem:[%s4747_s8 + $0xb0] sm:$0xff]  ;;  %v3668_v43 = vpack.c.bf16 %v864_v38, %v862_v37  ;;  %v4919_v48 = vld [vmem:[%s4747_s8 + $0xb8] sm:$0xff] }
  0xeb   : > { %3728 = vmatprep.subr.bf16.mxu1 %v3634_v40  ;;  %3635 = vmatprep.subr.bf16.mxu0 %v3634_v40  ;;  %v869_v40 = vld [vmem:[%s4761_s22 + $0xf8] sm:$0xff]  ;;  %v4913_v47 = vld [vmem:[%s4747_s8 + $0x30] sm:$0xff]  ;;  %v4936_v53 = vld [vmem:[%s4747_s8 + $0xc8] sm:$0xff] }
  0xec   : > { %v3670_v44 = vpack.c.bf16 %v869_v40, %v867_v39  ;;  %v4923_v50 = vld [vmem:[%s4747_s8 + $0x38] sm:$0xff]  ;;  %v514_v54 = vld [vmem:[%s4747_s8 + $0x48] sm:$0xff]  ;;  %v4943_v55 = vld [vmem:[%s4747_s8 + $0xd0] sm:$0xff] }
  0xed   : > { %v515_v56 = vld [vmem:[%s4747_s8 + $0x50] sm:$0xff]  ;;  %v4957_v60 = vld [vmem:[%s4747_s8 + $0xe0] sm:$0xff]  ;;  %v4964_v62 = vld [vmem:[%s4747_s8 + $0xe8] sm:$0xff] }
  0xee   : > { %3736 = vmatpush1.bf16.msra.mxu1 %v3636_v45  ;;  %3637 = vmatpush1.bf16.msra.mxu0 %v3636_v45  ;;  %v866_v45 = vld [vmem:[%s4761_s22 + $0xe0] sm:$0xff]  ;;  %v518_v63 = vld [vmem:[%s4747_s8 + $0x68] sm:$0xff]  ;;  %v4978_v4 = vld [vmem:[%s4747_s8 + $0xf8] sm:$0xff] }
  0xef   : > { %3729 = vmatprep.subr.bf16.mxu1 %v3638_v46  ;;  %3639 = vmatprep.subr.bf16.mxu0 %v3638_v46  ;;  %v868_v46 = vld [vmem:[%s4761_s22 + $0xf0] sm:$0xff]  ;;  %v517_v61 = vld [vmem:[%s4747_s8 + $0x60] sm:$0xff]  ;;  %v520_v5 = vld [vmem:[%s4747_s8 + $0x78] sm:$0xff] }
  0xf0   : > { %v3672_v49 = vpack.c.bf16 %v868_v46, %v866_v45  ;;  %v2964_v6 = vld [vmem:[%s4763_s13 + $0x8] sm:$0xff]  ;;  %v2969_v14 = vld [vmem:[%s4763_s13 + $0x30] sm:$0xff]  ;;  %v2970_v15 = vld [vmem:[%s4763_s13 + $0x38] sm:$0xff] }
  0xf1   : > { %v3684_v16 = vpack.c.bf16 %v2970_v15, %v2969_v14  ;;  %v2974_v21 = vld [vmem:[%s4763_s13 + $0x58] sm:$0xff]  ;;  %v2975_v23 = vld [vmem:[%s4763_s13 + $0x60] sm:$0xff]  ;;  %v2976_v24 = vld [vmem:[%s4763_s13 + $0x68] sm:$0xff] }
  0xf2   : > { %3737 = vmatpush1.bf16.msra.mxu1 %v3640_v51  ;;  %3641 = vmatpush1.bf16.msra.mxu0 %v3640_v51  ;;  %v4929_v51 = vld [vmem:[%s4747_s8 + $0xc0] sm:$0xff]  ;;  %v2980_v30 = vld [vmem:[%s4763_s13 + $0x88] sm:$0xff]  ;;  %v2981_v32 = vld [vmem:[%s4763_s13 + $0x90] sm:$0xff] }
  0xf3   : > { %3643 = vmatprep.subr.bf16.mxu1 %v3642_v52  ;;  %v513_v52 = vld [vmem:[%s4747_s8 + $0x40] sm:$0xff]  ;;  %v2985_v38 = vld [vmem:[%s4763_s13 + $0xb0] sm:$0xff]  ;;  %v2986_v39 = vld [vmem:[%s4763_s13 + $0xb8] sm:$0xff] }
  0xf4   : > { %v2979_v29 = vld [vmem:[%s4763_s13 + $0x80] sm:$0xff]  ;;  %v3708_v40 = vpack.c.bf16 %v2986_v39, %v2985_v38 }
  0xf5   : > { %742 = vmatmul.mubr.f32.vlgmr.msra.gmra.mrb[0].mxu1 %v4824_v57  ;;  %646 = vmatmul.mubr.f32.vlgmr.msra.gmra.mrb[0].mxu0 %v4831_v0  ;;  %v3699_v31 = vpack.c.bf16 %v2980_v30, %v2979_v29 }
  0xf6   : > { %3645 = vmatpush1.bf16.msra.mxu1 %v3644_v58  ;;  %747 = vmatprep.mubr.f32.mxu1 %v4383_v8  ;;  %v4950_v58 = vld [vmem:[%s4747_s8 + $0xd8] sm:$0xff] }
  0xf7   : > { %3647 = vmatprep.subr.bf16.mxu1 %v3646_v59  ;;  %651 = vmatprep.mubr.f32.mxu0 %v4383_v8  ;;  %v516_v59 = vld [vmem:[%s4747_s8 + $0x58] sm:$0xff] }
  0xf9   : > { %748 = vmatmul.mubr.f32.gmra.mrb[2].mxu1 %v4837_v1  ;;  %652 = vmatmul.mubr.f32.gmra.mrb[2].mxu0 %v4845_v9 }
  0xfa   : > { %753 = vmatprep.mubr.f32.mxu1 %v4383_v8  ;;  %3649 = vmatpush1.bf16.msra.mxu1 %v3648_v2  ;;  %v4971_v2 = vld [vmem:[%s4747_s8 + $0xf0] sm:$0xff] }
  0xfb   : > { %3651 = vmatprep.subr.bf16.mxu1 %v3650_v3  ;;  %657 = vmatprep.mubr.f32.mxu0 %v4383_v8  ;;  %v519_v3 = vld [vmem:[%s4747_s8 + $0x70] sm:$0xff] }
  0xfd   : > { %754 = vmatmul.mubr.f32.gmra.mrb[4].mxu1 %v4851_v10  ;;  %658 = vmatmul.mubr.f32.gmra.mrb[4].mxu0 %v4859_v17 }
  0xfe   : > { %759 = vmatprep.mubr.f32.mxu1 %v4383_v8  ;;  %3653 = vmatpush1.bf16.msra.mxu1 %v3652_v11  ;;  %v2967_v11 = vld [vmem:[%s4763_s13 + $0x20] sm:$0xff] }
  0xff   : > { %3655 = vmatprep.subr.bf16.mxu1 %v3654_v12  ;;  %663 = vmatprep.mubr.f32.mxu0 %v4383_v8  ;;  %v2968_v12 = vld [vmem:[%s4763_s13 + $0x28] sm:$0xff] }
 0x100   : > { %v3681_v13 = vpack.c.bf16 %v2968_v12, %v2967_v11 }
 0x101   : > { %760 = vmatmul.mubr.f32.gmra.mrb[6].mxu1 %v4865_v18  ;;  %664 = vmatmul.mubr.f32.gmra.mrb[6].mxu0 %v4873_v25 }
 0x102   : > { %765 = vmatprep.mubr.f32.mxu1 %v4383_v8  ;;  %3657 = vmatpush1.bf16.msra.mxu1 %v3656_v19 }
 0x103   : > { %3659 = vmatprep.subr.bf16.mxu1 %v3658_v20  ;;  %669 = vmatprep.mubr.f32.mxu0 %v4383_v8  ;;  %v2973_v20 = vld [vmem:[%s4763_s13 + $0x50] sm:$0xff] }
 0x104   : > { %v3690_v22 = vpack.c.bf16 %v2974_v21, %v2973_v20 }
 0x105   : > { %766 = vmatmul.mubr.f32.gmra.mrb[8].mxu1 %v4879_v26  ;;  %670 = vmatmul.mubr.f32.gmra.mrb[8].mxu0 %v4887_v33 }
 0x106   : > { %771 = vmatprep.mubr.f32.mxu1 %v4383_v8  ;;  %3661 = vmatpush1.bf16.msra.mxu1 %v3660_v27  ;;  %v2978_v27 = vld [vmem:[%s4763_s13 + $0x78] sm:$0xff] }
 0x107   : > { %3663 = vmatprep.subr.bf16.mxu1 %v3662_v28  ;;  %675 = vmatprep.mubr.f32.mxu0 %v4383_v8 }
 0x109   : > { %772 = vmatmul.mubr.f32.gmra.mrb[10].mxu1 %v4893_v34  ;;  %676 = vmatmul.mubr.f32.gmra.mrb[10].mxu0 %v4901_v41 }
 0x10a   : > { %777 = vmatprep.mubr.f32.mxu1 %v4383_v8  ;;  %3665 = vmatpush1.bf16.msra.mxu1 %v3664_v35  ;;  %v2983_v35 = vld [vmem:[%s4763_s13 + $0xa0] sm:$0xff] }
 0x10b   : > { %3667 = vmatprep.subr.bf16.mxu1 %v3666_v36  ;;  %681 = vmatprep.mubr.f32.mxu0 %v4383_v8  ;;  %v2984_v36 = vld [vmem:[%s4763_s13 + $0xa8] sm:$0xff] }
 0x10c   : > { %v3705_v37 = vpack.c.bf16 %v2984_v36, %v2983_v35  ;;  %v569_v35 = vld [vmem:[%s460_s4] sm:$0x3] }
 0x10d   : > { %778 = vmatmul.mubr.f32.gmra.mrb[12].mxu1 %v4907_v42  ;;  %682 = vmatmul.mubr.f32.gmra.mrb[12].mxu0 %v4913_v47 }
 0x10e   : > { %783 = vmatprep.mubr.f32.mxu1 %v4383_v8  ;;  %3669 = vmatpush1.bf16.msra.mxu1 %v3668_v43  ;;  %v2989_v43 = vld [vmem:[%s4763_s13 + $0xd0] sm:$0xff] }
 0x10f   : > { %3671 = vmatprep.subr.bf16.mxu1 %v3670_v44  ;;  %687 = vmatprep.mubr.f32.mxu0 %v4383_v8  ;;  %v2990_v44 = vld [vmem:[%s4763_s13 + $0xd8] sm:$0xff] }
 0x110   : > { %v3714_v45 = vpack.c.bf16 %v2990_v44, %v2989_v43 }
 0x111   : > { %784 = vmatmul.mubr.f32.gmra.mrb[14].mxu1 %v4919_v48  ;;  %688 = vmatmul.mubr.f32.gmra.mrb[14].mxu0 %v4923_v50 }
 0x112   : > { %789 = vmatprep.mubr.f32.mxu1 %v4383_v8  ;;  %3673 = vmatpush1.bf16.msra.mxu1 %v3672_v49 }
 0x113   : > { %693 = vmatprep.mubr.f32.mxu0 %v4383_v8 }
 0x115   : > { %790 = vmatmul.mubr.f32.gmra.mrb[16].mxu1 %v4929_v51  ;;  %694 = vmatmul.mubr.f32.gmra.mrb[16].mxu0 %v513_v52 }
 0x116   : > { %795 = vmatprep.mubr.f32.mxu1 %v4383_v8  ;;  %699 = vmatprep.mubr.f32.mxu0 %v4383_v8 }
 0x119   : > { %796 = vmatmul.mubr.f32.gmra.mrb[18].mxu1 %v4936_v53  ;;  %700 = vmatmul.mubr.f32.gmra.mrb[18].mxu0 %v514_v54 }
 0x11a   : > { %801 = vmatprep.mubr.f32.mxu1 %v4383_v8  ;;  %705 = vmatprep.mubr.f32.mxu0 %v4383_v8 }
 0x11d   : > { %802 = vmatmul.mubr.f32.gmra.mrb[20].mxu1 %v4943_v55  ;;  %706 = vmatmul.mubr.f32.gmra.mrb[20].mxu0 %v515_v56 }
 0x11e   : > { %807 = vmatprep.mubr.f32.mxu1 %v4383_v8  ;;  %711 = vmatprep.mubr.f32.mxu0 %v4383_v8 }
 0x121   : > { %808 = vmatmul.mubr.f32.gmra.mrb[22].mxu1 %v4950_v58  ;;  %712 = vmatmul.mubr.f32.gmra.mrb[22].mxu0 %v516_v59 }
 0x122   : > { %813 = vmatprep.mubr.f32.mxu1 %v4383_v8  ;;  %717 = vmatprep.mubr.f32.mxu0 %v4383_v8 }
 0x125   : > { %814 = vmatmul.mubr.f32.gmra.mrb[24].mxu1 %v4957_v60  ;;  %718 = vmatmul.mubr.f32.gmra.mrb[24].mxu0 %v517_v61 }
 0x126   : > { %819 = vmatprep.mubr.f32.mxu1 %v4383_v8  ;;  %723 = vmatprep.mubr.f32.mxu0 %v4383_v8 }
 0x129   : > { %820 = vmatmul.mubr.f32.gmra.mrb[26].mxu1 %v4964_v62  ;;  %724 = vmatmul.mubr.f32.gmra.mrb[26].mxu0 %v518_v63 }
 0x12a   : > { %825 = vmatprep.mubr.f32.mxu1 %v4383_v8  ;;  %729 = vmatprep.mubr.f32.mxu0 %v4383_v8 }
 0x12d   : > { %826 = vmatmul.mubr.f32.gmra.mrb[28].mxu1 %v4971_v2  ;;  %730 = vmatmul.mubr.f32.gmra.mrb[28].mxu0 %v519_v3 }
 0x12e   : > { %831 = vmatprep.mubr.f32.mxu1 %v4383_v8  ;;  %735 = vmatprep.mubr.f32.mxu0 %v4383_v8 }
 0x131   : > { %832 = vmatmul.mubr.f32.gmra.mrb[30].mxu1 %v4978_v4  ;;  %736 = vmatmul.mubr.f32.gmra.mrb[30].mxu0 %v520_v5 }
 0x132   : > { %946 = vmatprep.mubr.f32.mxu1 %v4383_v8 }
 0x135   : > { %947 = vmatmul.mubr.f32.vlgmr.msra.gmra.mrb[32].mxu1 %v4831_v0  ;;  %v2963_v0 = vld [vmem:[%s4763_s13] sm:$0xff] }
 0x136   : > { %952 = vmatprep.mubr.f32.mxu1 %v4383_v8  ;;  %v3675_v7 = vpack.c.bf16 %v2964_v6, %v2963_v0 }
 0x139   : > { %953 = vmatmul.mubr.f32.gmra.mrb[34].mxu1 %v4845_v9  ;;  %v4384_v9 = vmov 0.0|0.0  }
 0x13a   : > { %958 = vmatprep.mubr.f32.mxu1 %v4383_v8  ;;  %3674 = vmatprep.subr.bf16.mxu0 %v4384_v9 }
 0x13b   : > { %3676 = vmatpush1.bf16.msra.mxu0 %v3675_v7 }
 0x13c   : > { %3677 = vmatprep.subr.bf16.mxu0 %v4384_v9 }
 0x13d   : > { %959 = vmatmul.mubr.f32.gmra.mrb[36].mxu1 %v4859_v17  ;;  %v2971_v17 = vld [vmem:[%s4763_s13 + $0x40] sm:$0xff] }
 0x13e   : > { %964 = vmatprep.mubr.f32.mxu1 %v4383_v8 }
 0x141   : > { %965 = vmatmul.mubr.f32.gmra.mrb[38].mxu1 %v4873_v25  ;;  %v3693_v25 = vpack.c.bf16 %v2976_v24, %v2975_v23 }
 0x142   : > { %970 = vmatprep.mubr.f32.mxu1 %v4383_v8 }
 0x145   : > { %971 = vmatmul.mubr.f32.gmra.mrb[40].mxu1 %v4887_v33  ;;  %v2982_v33 = vld [vmem:[%s4763_s13 + $0x98] sm:$0xff] }
 0x146   : > { %976 = vmatprep.mubr.f32.mxu1 %v4383_v8 }
 0x149   : > { %977 = vmatmul.mubr.f32.gmra.mrb[42].mxu1 %v4901_v41  ;;  %v2988_v41 = vld [vmem:[%s4763_s13 + $0xc8] sm:$0xff] }
 0x14a   : > { %982 = vmatprep.mubr.f32.mxu1 %v4383_v8 }
 0x14d   : > { %983 = vmatmul.mubr.f32.gmra.mrb[44].mxu1 %v4913_v47 }
 0x14e   : > { %988 = vmatprep.mubr.f32.mxu1 %v4383_v8 }
 0x151   : > { %989 = vmatmul.mubr.f32.gmra.mrb[46].mxu1 %v4923_v50 }
 0x152   : > { %994 = vmatprep.mubr.f32.mxu1 %v4383_v8 }
 0x155   : > { %995 = vmatmul.mubr.f32.gmra.mrb[48].mxu1 %v513_v52 }
 0x156   : > { %1000 = vmatprep.mubr.f32.mxu1 %v4383_v8 }
 0x159   : > { %1001 = vmatmul.mubr.f32.gmra.mrb[50].mxu1 %v514_v54 }
 0x15a   : > { %1006 = vmatprep.mubr.f32.mxu1 %v4383_v8 }
 0x15d   : > { %1007 = vmatmul.mubr.f32.gmra.mrb[52].mxu1 %v515_v56 }
 0x15e   : > { %1012 = vmatprep.mubr.f32.mxu1 %v4383_v8 }
 0x161   : > { %1013 = vmatmul.mubr.f32.gmra.mrb[54].mxu1 %v516_v59 }
 0x162   : > { %1018 = vmatprep.mubr.f32.mxu1 %v4383_v8 }
 0x165   : > { %1019 = vmatmul.mubr.f32.gmra.mrb[56].mxu1 %v517_v61 }
 0x166   : > { %1024 = vmatprep.mubr.f32.mxu1 %v4383_v8 }
 0x169   : > { %1025 = vmatmul.mubr.f32.gmra.mrb[58].mxu1 %v518_v63 }
 0x16a   : > { %1030 = vmatprep.mubr.f32.mxu1 %v4383_v8 }
 0x16d   : > { %1031 = vmatmul.mubr.f32.gmra.mrb[60].mxu1 %v519_v3  ;;  %v2991_v3 = vld [vmem:[%s4763_s13 + $0xe0] sm:$0xff] }
 0x16e   : > { %1036 = vmatprep.mubr.f32.mxu1 %v4383_v8 }
 0x171   : > { %1037 = vmatmul.mubr.f32.gmra.mrb[62].mxu1 %v520_v5 }
 0x172   : > { %1042 = vmatprep.mubr.f32.mxu1 %v4383_v8 }
 0x175   : > { %1043 = vmatmul.mubr.f32.gmra.mrb[64].mxu1 %v4824_v57  ;;  %v2965_v57 = vld [vmem:[%s4763_s13 + $0x10] sm:$0xff] }
 0x176   : > { %1048 = vmatprep.mubr.f32.mxu1 %v4383_v8 }
 0x179   : > { %1049 = vmatmul.mubr.f32.gmra.mrb[66].mxu1 %v4837_v1  ;;  %v2966_v1 = vld [vmem:[%s4763_s13 + $0x18] sm:$0xff] }
 0x17a   : > { %1054 = vmatprep.mubr.f32.mxu1 %v4383_v8 }
 0x17d   : > { %1055 = vmatmul.mubr.f32.gmra.mrb[68].mxu1 %v4851_v10  ;;  %v3678_v10 = vpack.c.bf16 %v2966_v1, %v2965_v57  ;;  %v2993_v1 = vld [vmem:[%s4763_s13 + $0xf0] sm:$0xff] }
 0x17e   : > { %1060 = vmatprep.mubr.f32.mxu1 %v4383_v8 }
 0x17f   : > { %3679 = vmatpush1.bf16.msra.mxu0 %v3678_v10  ;;  %v2994_v10 = vld [vmem:[%s4763_s13 + $0xf8] sm:$0xff] }
 0x180   : > { %3680 = vmatprep.subr.bf16.mxu0 %v4384_v9  ;;  %v3720_v11 = vpack.c.bf16 %v2994_v10, %v2993_v1 }
 0x181   : > { %1061 = vmatmul.mubr.f32.gmra.mrb[70].mxu1 %v4865_v18  ;;  %v2972_v18 = vld [vmem:[%s4763_s13 + $0x48] sm:$0xff] }
 0x182   : > { %1066 = vmatprep.mubr.f32.mxu1 %v4383_v8  ;;  %v3687_v19 = vpack.c.bf16 %v2972_v18, %v2971_v17 }
 0x183   : > { %3682 = vmatpush1.bf16.msra.mxu0 %v3681_v13 }
 0x184   : > { %3683 = vmatprep.subr.bf16.mxu0 %v4384_v9 }
 0x185   : > { %1067 = vmatmul.mubr.f32.gmra.mrb[72].mxu1 %v4879_v26  ;;  %v2977_v26 = vld [vmem:[%s4763_s13 + $0x70] sm:$0xff] }
 0x186   : > { %1072 = vmatprep.mubr.f32.mxu1 %v4383_v8  ;;  %v3696_v28 = vpack.c.bf16 %v2978_v27, %v2977_v26 }
 0x187   : > { %3685 = vmatpush1.bf16.msra.mxu0 %v3684_v16 }
 0x188   : > { %3686 = vmatprep.subr.bf16.mxu0 %v4384_v9 }
 0x189   : > { %1073 = vmatmul.mubr.f32.gmra.mrb[74].mxu1 %v4893_v34  ;;  %v3702_v34 = vpack.c.bf16 %v2982_v33, %v2981_v32 }
 0x18a   : > { %1078 = vmatprep.mubr.f32.mxu1 %v4383_v8 }
 0x18b   : > { %3688 = vmatpush1.bf16.msra.mxu0 %v3687_v19 }
 0x18c   : > { %3689 = vmatprep.subr.bf16.mxu0 %v4384_v9 }
 0x18d   : > { %1079 = vmatmul.mubr.f32.gmra.mrb[76].mxu1 %v4907_v42 }
 0x18e   : > { %1084 = vmatprep.mubr.f32.mxu1 %v4383_v8 }
 0x18f   : > { %3691 = vmatpush1.bf16.msra.mxu0 %v3690_v22 }
 0x190   : > { %3692 = vmatprep.subr.bf16.mxu0 %v4384_v9 }
 0x191   : > { %1085 = vmatmul.mubr.f32.gmra.mrb[78].mxu1 %v4919_v48 }
 0x192   : > { %1090 = vmatprep.mubr.f32.mxu1 %v4383_v8 }
 0x193   : > { %3694 = vmatpush1.bf16.msra.mxu0 %v3693_v25  ;;  %v571_v25 = vlaneseq }
 0x194   : > { %3695 = vmatprep.subr.bf16.mxu0 %v4384_v9 }
 0x195   : > { %1091 = vmatmul.mubr.f32.gmra.mrb[80].mxu1 %v4929_v51 }
 0x196   : > { %1096 = vmatprep.mubr.f32.mxu1 %v4383_v8 }
 0x197   : > { %3697 = vmatpush1.bf16.msra.mxu0 %v3696_v28  ;;  %v572_v28 = vshrl.u32 %v571_v25, 7 }
 0x198   : > { %3698 = vmatprep.subr.bf16.mxu0 %v4384_v9 }
 0x199   : > { %1097 = vmatmul.mubr.f32.gmra.mrb[82].mxu1 %v4936_v53  ;;  %v573_v32 = vsub.s32 0, %v572_v28  ;;  %v577_v33 = vsub.s32 1, %v572_v28 }
 0x19a   : > { %1102 = vmatprep.mubr.f32.mxu1 %v4383_v8 }
 0x19b   : > { %3700 = vmatpush1.bf16.msra.mxu0 %v3699_v31  ;;  %v870_v31 = vld [vmem:[%s465_s14] sm:$0x3] }
 0x19c   : > { %3701 = vmatprep.subr.bf16.mxu0 %v4384_v9  ;;  %v5173_v36 = vrot.slane %v870_v31, %v573_v32  ;;  %v5177_v39 = vrot.slane %v870_v31, %v577_v33 }
 0x19d   : > { %1103 = vmatmul.mubr.f32.gmra.mrb[84].mxu1 %v4943_v55 }
 0x19e   : > { %1108 = vmatprep.mubr.f32.mxu1 %v4383_v8 }
 0x19f   : > { %3703 = vmatpush1.bf16.msra.mxu0 %v3702_v34 }
 0x1a0   : > { %3704 = vmatprep.subr.bf16.mxu0 %v4384_v9 }
 0x1a1   : > { %1109 = vmatmul.mubr.f32.gmra.mrb[86].mxu1 %v4950_v58 }
 0x1a2   : > { %1114 = vmatprep.mubr.f32.mxu1 %v4383_v8 }
 0x1a3   : > { %3706 = vmatpush1.bf16.msra.mxu0 %v3705_v37 }
 0x1a4   : > { %3707 = vmatprep.subr.bf16.mxu0 %v4384_v9 }
 0x1a5   : > { %1115 = vmatmul.mubr.f32.gmra.mrb[88].mxu1 %v4957_v60 }
 0x1a6   : > { %1120 = vmatprep.mubr.f32.mxu1 %v4383_v8 }
 0x1a7   : > { %3709 = vmatpush1.bf16.msra.mxu0 %v3708_v40 }
 0x1a8   : > { %3710 = vmatprep.subr.bf16.mxu0 %v4384_v9 }
 0x1a9   : > { %1121 = vmatmul.mubr.f32.gmra.mrb[90].mxu1 %v4964_v62 }
 0x1aa   : > { %1126 = vmatprep.mubr.f32.mxu1 %v4383_v8 }
 0x1ad   : > { %1127 = vmatmul.mubr.f32.gmra.mrb[92].mxu1 %v4971_v2 }
 0x1ae   : > { %1132 = vmatprep.mubr.f32.mxu1 %v4383_v8  ;;  %v2987_v8 = vld [vmem:[%s4763_s13 + $0xc0] sm:$0xff] }
 0x1af   : > { %v3711_v42 = vpack.c.bf16 %v2988_v41, %v2987_v8  ;;  %v5181_v8 = vrot.slane %v569_v35, %v573_v32  ;;  %v5183_v41 = vrot.slane %v569_v35, %v577_v33 }
 0x1b1   : > { %1133 = vmatmul.mubr.f32.gmra.mrb[94].mxu1 %v4978_v4  ;;  %3712 = vmatpush1.bf16.msra.mxu0 %v3711_v42  ;;  %v2992_v4 = vld [vmem:[%s4763_s13 + $0xe8] sm:$0xff]  ;;  %7618 = vst [vmem:[#allocation31_spill] sm:$0xff] %v5181_v8  ;;  %7619 = vst [vmem:[#allocation32_spill] sm:$0xff] %v5183_v41  ;;  %s7979_s13 = sld [smem:[#allocation157_spill]] (!%p3598_p6) }
 0x1b2   : > { %3713 = vmatprep.subr.bf16.mxu0 %v4384_v9  ;;  %v3717_v0 = vpack.c.bf16 %v2992_v4, %v2991_v3 }
 0x1b5   : > { %3715 = vmatpush1.bf16.msra.mxu0 %v3714_v45 }
 0x1b6   : > { %3716 = vmatprep.subr.bf16.mxu0 %v4384_v9 }
 0x1b9   : > { %3718 = vmatpush1.bf16.msra.mxu0 %v3717_v0 }
 0x1ba   : > { %3719 = vmatprep.subr.bf16.mxu0 %v4384_v9 }
 0x1bd   : > { %3721 = vmatpush1.bf16.msra.mxu0 %v3720_v11 }
 0x1c8   : > { %v5081_v46 = vpop.f32.mrb[0].mxu1  ;;  %v5086_v48 = vpop.f32.mrb[0].mxu0 }
 0x1c9   : > { %v5083_v47 = vpop.f32.mrb[1].mxu1  ;;  %v5122_v6 = vpop.f32.mrb[1].mxu0  ;;  %v5193_v3 = vadd.f32 %v5081_v46, %v5181_v8 }
 0x1ca   : > { %v5197_v4 = vadd.f32 %v5083_v47, %v5183_v41  ;;  %v5216_v47 = vadd.f32 %v5086_v48, %v5181_v8 }
 0x1cb   : > { %7620 = vst [vmem:[#allocation33_spill] sm:$0xff] %v5193_v3 }
 0x1cc   : > { %v5088_v49 = vpop.f32.mrb[2].mxu1  ;;  %v5131_v12 = vpop.f32.mrb[2].mxu0  ;;  %7621 = vst [vmem:[#allocation34_spill] sm:$0xff] %v5197_v4 }
 0x1cd   : > { %v5090_v50 = vpop.f32.mrb[3].mxu1  ;;  %v5135_v14 = vpop.f32.mrb[3].mxu0  ;;  %v5201_v0 = vadd.f32 %v5088_v49, %v5181_v8 }
 0x1ce   : > { %v5205_v10 = vadd.f32 %v5090_v50, %v5183_v41 }
 0x1cf   : > { %7622 = vst [vmem:[#allocation35_spill] sm:$0xff] %v5201_v0 }
 0x1d0   : > { %v5092_v51 = vpop.f32.mrb[4].mxu1  ;;  %v5151_v21 = vpop.f32.mrb[4].mxu0  ;;  %7623 = vst [vmem:[#allocation36_spill] sm:$0xff] %v5205_v10 }
 0x1d1   : > { %v5094_v52 = vpop.f32.mrb[5].mxu1  ;;  %v5153_v22 = vpop.f32.mrb[5].mxu0  ;;  %v5209_v11 = vadd.f32 %v5092_v51, %v5181_v8 }
 0x1d2   : > { %v5220_v49 = vadd.f32 %v5094_v52, %v5183_v41 }
 0x1d3   : > { %7624 = vst [vmem:[#allocation37_spill] sm:$0xff] %v5209_v11 }
 0x1d4   : > { %v5096_v53 = vpop.f32.mrb[6].mxu1  ;;  %v5175_v38 = vpop.f32.mrb[6].mxu0  ;;  %7625 = vst [vmem:[#allocation38_spill] sm:$0xff] %v5220_v49 }
 0x1d5   : > { %v5098_v54 = vpop.f32.mrb[7].mxu1  ;;  %7616 = vst [vmem:[#allocation29_spill] sm:$0xff] %v5175_v38  ;;  %v5179_v40 = vpop.f32.mrb[7].mxu0  ;;  %v5224_v50 = vadd.f32 %v5096_v53, %v5181_v8 }
 0x1d6   : > { %7617 = vst [vmem:[#allocation30_spill] sm:$0xff] %v5179_v40  ;;  %v5228_v51 = vadd.f32 %v5098_v54, %v5183_v41 }
 0x1d7   : > { %7626 = vst [vmem:[#allocation39_spill] sm:$0xff] %v5224_v50 }
 0x1d8   : > { %v5100_v55 = vpop.f32.mrb[8].mxu1  ;;  %7627 = vst [vmem:[#allocation40_spill] sm:$0xff] %v5228_v51 }
 0x1d9   : > { %v5102_v56 = vpop.f32.mrb[9].mxu1 }
 0x1da   : > { %v5239_v48 = vadd.f32 %v5102_v56, %v5183_v41 }
 0x1dc   : > { %v5104_v58 = vpop.f32.mrb[10].mxu1  ;;  %7629 = vst [vmem:[#allocation42_spill] sm:$0xff] %v5239_v48 }
 0x1dd   : > { %v5106_v59 = vpop.f32.mrb[11].mxu1  ;;  %v5249_v54 = vadd.f32 %v5104_v58, %v5181_v8 }
 0x1df   : > { %7630 = vst [vmem:[#allocation43_spill] sm:$0xff] %v5249_v54 }
 0x1e0   : > { %v5108_v60 = vpop.f32.mrb[12].mxu1 }
 0x1e1   : > { %v5110_v61 = vpop.f32.mrb[13].mxu1 }
 0x1e2   : > { %v5261_v56 = vadd.f32 %v5110_v61, %v5183_v41 }
 0x1e4   : > { %v5112_v62 = vpop.f32.mrb[14].mxu1  ;;  %7633 = vst [vmem:[#allocation46_spill] sm:$0xff] %v5261_v56 }
 0x1e5   : > { %v5114_v63 = vpop.f32.mrb[15].mxu1  ;;  %v5267_v32 = vadd.f32 %v5112_v62, %v5181_v8 }
 0x1e6   : > { %v5271_v58 = vadd.f32 %v5114_v63, %v5183_v41  ;;  %v5292_v63 = vadd.f32 %v5122_v6, %v5183_v41 }
 0x1e7   : > { %7634 = vst [vmem:[#allocation47_spill] sm:$0xff] %v5267_v32 }
 0x1e8   : > { %v5116_v2 = vpop.f32.mrb[16].mxu1  ;;  %7635 = vst [vmem:[#allocation48_spill] sm:$0xff] %v5271_v58 }
 0x1e9   : > { %v5120_v5 = vpop.f32.mrb[17].mxu1 }
 0x1ea   : > { %v5282_v61 = vadd.f32 %v5120_v5, %v5183_v41 }
 0x1ec   : > { %v5124_v7 = vpop.f32.mrb[18].mxu1  ;;  %7637 = vst [vmem:[#allocation50_spill] sm:$0xff] %v5282_v61 }
 0x1ed   : > { %v5127_v57 = vpop.f32.mrb[19].mxu1 }
 0x1ee   : > { %v5300_v35 = vadd.f32 %v5127_v57, %v5183_v41  ;;  %v5321_v57 = vadd.f32 %v5135_v14, %v5183_v41 }
 0x1f0   : > { %v5133_v13 = vpop.f32.mrb[20].mxu1  ;;  %7639 = vst [vmem:[#allocation52_spill] sm:$0xff] %v5300_v35  ;;  %7641 = vst [vmem:[#allocation54_spill] sm:$0xff] %v5321_v57 }
 0x1f1   : > { %v5137_v15 = vpop.f32.mrb[21].mxu1 }
 0x1f4   : > { %v5139_v16 = vpop.f32.mrb[22].mxu1 }
 0x1f5   : > { %v5141_v17 = vpop.f32.mrb[23].mxu1 }
 0x1f8   : > { %v5143_v9 = vpop.f32.mrb[24].mxu1 }
 0x1f9   : > { %v5145_v18 = vpop.f32.mrb[25].mxu1 }
 0x1fc   : > { %v5147_v19 = vpop.f32.mrb[26].mxu1 }
 0x1fd   : > { %v5149_v20 = vpop.f32.mrb[27].mxu1 }
 0x200   : > { %v5155_v23 = vpop.f32.mrb[28].mxu1 }
 0x201   : > { %v5157_v24 = vpop.f32.mrb[29].mxu1 }
 0x202   : > { %7611 = vst [vmem:[#allocation26_spill] sm:$0xff] %v5157_v24 }
 0x204   : > { %v5159_v26 = vpop.f32.mrb[30].mxu1 }
 0x205   : > { %7612 = vst [vmem:[#allocation27_spill] sm:$0xff] %v5159_v26  ;;  %v5161_v27 = vpop.f32.mrb[31].mxu1  ;;  %v5325_v26 = vadd.f32 %v5137_v15, %v5183_v41 }
 0x206   : > { %7613 = vst [vmem:[#allocation28_spill] sm:$0xff] %v5161_v27 }
 0x207   : > { %7642 = vst [vmem:[#allocation55_spill] sm:$0xff] %v5325_v26  ;;  %v5345_v26 = vpop.f32.mrb[8].mxu0 }
 0x208   : > { %v948_v29 = vpop.f32.mrb[32].mxu1  ;;  %7646 = vst [vmem:[#allocation59_spill] sm:$0xff] %v5345_v26 }
 0x209   : > { %v950_v30 = vpop.f32.mrb[33].mxu1  ;;  %v5186_v43 = vadd.f32 %v948_v29, %v5173_v36  ;;  %v5235_v29 = vadd.f32 %v5100_v55, %v5181_v8  ;;  %v5257_v55 = vadd.f32 %v5108_v60, %v5181_v8 }
 0x20a   : > { %v5189_v45 = vadd.f32 %v950_v30, %v5177_v39  ;;  %v5253_v30 = vadd.f32 %v5106_v59, %v5183_v41  ;;  %v5275_v59 = vadd.f32 %v5116_v2, %v5181_v8  ;;  %v5296_v2 = vadd.f32 %v5124_v7, %v5181_v8 }
 0x20b   : > { %v5212_v46 = vmul.f32 0.70710677, %v5186_v43  ;;  %7628 = vst [vmem:[#allocation41_spill] sm:$0xff] %v5235_v29  ;;  %7632 = vst [vmem:[#allocation45_spill] sm:$0xff] %v5257_v55  ;;  %v5317_v7 = vadd.f32 %v5131_v12, %v5181_v8  ;;  %v5339_v12 = vadd.f32 %v5143_v9, %v5181_v8  ;;  %v5355_v9 = vpop.f32.mrb[9].mxu0 }
 0x20c   : > { %v954_v34 = vpop.f32.mrb[34].mxu1  ;;  %v5242_v52 = vmul.f32 0.70710677, %v5189_v45  ;;  %7631 = vst [vmem:[#allocation44_spill] sm:$0xff] %v5253_v30  ;;  %7636 = vst [vmem:[#allocation49_spill] sm:$0xff] %v5275_v59 }
 0x20d   : > { %v956_v37 = vpop.f32.mrb[35].mxu1  ;;  %v5231_v28 = vadd.f32 %v954_v34, %v5173_v36  ;;  %v1203_v60 = vand.u32 2147483647, %v5212_v46  ;;  %7638 = vst [vmem:[#allocation51_spill] sm:$0xff] %v5296_v2  ;;  %7645 = vst [vmem:[#allocation58_spill] sm:$0xff] %v5339_v12  ;;  %v5363_v12 = vadd.f32 %v5149_v20, %v5183_v41  ;;  %v5381_v20 = vadd.f32 %v5153_v22, %v5183_v41 }
 0x20e   : > { %v5245_v53 = vadd.f32 %v956_v37, %v5177_v39  ;;  %v1204_v5 = vand.u32 2147483647, %v5242_v52  ;;  %7648 = vst [vmem:[#allocation61_spill] sm:$0xff] %v5355_v9  ;;  %v5395_v22 = vmul.f32 0.5, %v5189_v45  ;;  %vm2483_vm0 = vcmp.ge.f32.partialorder %v5212_v46, 0.0 }
 0x20f   : > { %v5285_v34 = vmul.f32 0.70710677, %v5231_v28  ;;  %v1267_v24 = vmul.f32 0.3275911, %v1203_v60  ;;  %v2099_v14 = vmul.f32 %v1203_v60, %v1203_v60  ;;  %v5359_v60 = vadd.f32 %v5147_v19, %v5181_v8  ;;  %7650 = vst [vmem:[#allocation63_spill] sm:$0xff] %v5363_v12  ;;  %7653 = vst [vmem:[#allocation66_spill] sm:$0xff] %v5381_v20 }
 0x210   : > { %v960_v42 = vpop.f32.mrb[36].mxu1  ;;  %v5304_v37 = vmul.f32 0.70710677, %v5245_v53  ;;  %v1268_v59 = vmul.f32 0.3275911, %v1204_v5  ;;  %v5377_v19 = vadd.f32 %v5151_v21, %v5181_v8  ;;  %v5384_v12 = vmul.f32 0.5, %v5186_v43 }
 0x211   : > { %v962_v44 = vpop.f32.mrb[37].mxu1  ;;  %v5288_v62 = vadd.f32 %v960_v42, %v5173_v36  ;;  %v5308_v42 = vadd.f32 %v5133_v13, %v5181_v8  ;;  %v5329_v13 = vadd.f32 %v5139_v16, %v5181_v8  ;;  %v1205_v2 = vand.u32 2147483647, %v5285_v34  ;;  %7649 = vst [vmem:[#allocation62_spill] sm:$0xff] %v5359_v60 }
 0x212   : > { %v5311_v6 = vadd.f32 %v962_v44, %v5177_v39  ;;  %v5333_v44 = vadd.f32 %v5141_v17, %v5183_v41  ;;  %v5349_v16 = vadd.f32 %v5145_v18, %v5183_v41  ;;  %v2100_v17 = vmul.f32 %v1204_v5, %v1204_v5  ;;  %7652 = vst [vmem:[#allocation65_spill] sm:$0xff] %v5377_v19 }
 0x213   : > { %7640 = vst [vmem:[#allocation53_spill] sm:$0xff] %v5308_v42  ;;  %7643 = vst [vmem:[#allocation56_spill] sm:$0xff] %v5329_v13  ;;  %v5343_v15 = vmul.f32 0.70710677, %v5288_v62  ;;  %v1206_v13 = vand.u32 2147483647, %v5304_v37  ;;  %v5392_v21 = vadd.f32 %v5155_v23, %v5181_v8 }
 0x214   : > { %v966_v1 = vpop.f32.mrb[38].mxu1  ;;  %7644 = vst [vmem:[#allocation57_spill] sm:$0xff] %v5333_v44  ;;  %7647 = vst [vmem:[#allocation60_spill] sm:$0xff] %v5349_v16  ;;  %v5366_v35 = vmul.f32 0.70710677, %v5311_v6  ;;  %v2163_v60 = vsub.f32 0.0, %v2099_v14 }
 0x215   : > { %v968_v25 = vpop.f32.mrb[39].mxu1  ;;  %v5353_v44 = vadd.f32 %v966_v1, %v5173_v36  ;;  %v1331_v1 = vadd.f32 1.0, %v1267_v24  ;;  %v1207_v32 = vand.u32 2147483647, %v5343_v15  ;;  %v2164_v58 = vsub.f32 0.0, %v2100_v17  ;;  %7655 = vst [vmem:[#allocation68_spill] sm:$0xff] %v5392_v21 }
 0x216   : > { %7651 = vst [vmem:[#allocation64_spill] sm:$0xff] %v5366_v35  ;;  %v5369_v18 = vadd.f32 %v968_v25, %v5177_v39  ;;  %v2101_v25 = vmul.f32 %v1205_v2, %v1205_v2  ;;  %v1269_v24 = vmul.f32 0.3275911, %v1205_v2  ;;  %v2102_v5 = vmul.f32 %v1206_v13, %v1206_v13 }
 0x217   : > { %v5388_v55 = vmul.f32 0.70710677, %v5353_v44  ;;  %v1208_v14 = vand.u32 2147483647, %v5366_v35  ;;  %3865 = vrcp.f32 %v1331_v1  ;;  %v1332_v2 = vadd.f32 1.0, %v1268_v59 }
 0x218   : > { %v5263_v31 = vpop.f32.mrb[40].mxu1  ;;  %v5399_v43 = vmul.f32 0.70710677, %v5369_v18  ;;  %v5404_v17 = vmul.f32 0.5, %v5231_v28  ;;  %v1270_v54 = vmul.f32 0.3275911, %v1206_v13  ;;  %v2103_v29 = vmul.f32 %v1207_v32, %v1207_v32 }
 0x219   : > { %v5278_v33 = vpop.f32.mrb[41].mxu1  ;;  %7654 = vst [vmem:[#allocation67_spill] sm:$0xff] %v5388_v55  ;;  %v2227_v23 = vmul.f32 1.442695, %v2163_v60  ;;  %v2165_v21 = vsub.f32 0.0, %v2101_v25  ;;  %v5410_v45 = vadd.f32 %v5263_v31, %v5173_v36  ;;  %v2166_v50 = vsub.f32 0.0, %v2102_v5 }
 0x21a   : > { %7656 = vst [vmem:[#allocation69_spill] sm:$0xff] %v5399_v43  ;;  %v2229_v48 = vmul.f32 1.442695, %v2164_v58  ;;  %v1209_v51 = vand.u32 2147483647, %v5388_v55  ;;  %v5415_v59 = vadd.f32 %v5278_v33, %v5177_v39  ;;  %v1333_v28 = vadd.f32 1.0, %v1269_v24 }
 0x21b   : > { %v1271_v1 = vmul.f32 0.3275911, %v1207_v32  ;;  %v2104_v13 = vmul.f32 %v1208_v14, %v1208_v14  ;;  %v1210_v11 = vand.u32 2147483647, %v5399_v43  ;;  %3867 = vrcp.f32 %v1332_v2  ;;  %v5428_v32 = vpop.f32.mrb[10].mxu0 }
 0x21c   : > { %v5313_v27 = vpop.f32.mrb[42].mxu1  ;;  %v1334_v25 = vadd.f32 1.0, %v1270_v54  ;;  %v5421_v31 = vmul.f32 0.5, %v5245_v53  ;;  %v1272_v58 = vmul.f32 0.3275911, %v1208_v14  ;;  %3869 = vpow2.f32 %v2227_v23  ;;  %7659 = vst [vmem:[#allocation72_spill] sm:$0xff] %v5428_v32 }
 0x21d   : > { %v5335_v42 = vpop.f32.mrb[43].mxu1  ;;  %v2231_v49 = vmul.f32 1.442695, %v2165_v21  ;;  %v2167_v0 = vsub.f32 0.0, %v2103_v29  ;;  %v5426_v33 = vmul.f32 0.70710677, %v5410_v45  ;;  %3871 = vpow2.f32 %v2229_v48 }
 0x21e   : > { %7657 = vst [vmem:[#allocation70_spill] sm:$0xff] %v5421_v31  ;;  %v2233_v24 = vmul.f32 1.442695, %v2166_v50  ;;  %v2105_v10 = vmul.f32 %v1209_v51, %v1209_v51  ;;  %v5431_v2 = vmul.f32 0.70710677, %v5415_v59  ;;  %3873 = vrcp.f32 %v1333_v28  ;;  %v5435_v23 = vpop.f32.mrb[11].mxu0 }
 0x21f   : > { %7658 = vst [vmem:[#allocation71_spill] sm:$0xff] %v5426_v33  ;;  %v1335_v53 = vadd.f32 1.0, %v1271_v1  ;;  %v2168_v54 = vsub.f32 0.0, %v2104_v13  ;;  %v2106_v14 = vmul.f32 %v1210_v11, %v1210_v11  ;;  %7661 = vst [vmem:[#allocation74_spill] sm:$0xff] %v5435_v23  ;;  %3875 = vrcp.f32 %v1334_v25 }
 0x220   : > { %v5371_v16 = vpop.f32.mrb[44].mxu1  ;;  %7660 = vst [vmem:[#allocation73_spill] sm:$0xff] %v5431_v2  ;;  %v1336_v29 = vadd.f32 1.0, %v1272_v58  ;;  %v1273_v21 = vmul.f32 0.3275911, %v1209_v51  ;;  %v5439_v4 = vadd.f32 %v5313_v27, %v5173_v36  ;;  %3877 = vpow2.f32 %v2231_v49 }
 0x221   : > { %v5373_v61 = vpop.f32.mrb[45].mxu1  ;;  %v2235_v48 = vmul.f32 1.442695, %v2167_v0  ;;  %v1211_v28 = vand.u32 2147483647, %v5426_v33  ;;  %v5446_v1 = vadd.f32 %v5335_v42, %v5177_v39  ;;  %v5448_v13 = vpop.eup %3865  ;;  %3879 = vpow2.f32 %v2233_v24 }
 0x222   : > { %v2169_v25 = vsub.f32 0.0, %v2105_v10  ;;  %v1274_v58 = vmul.f32 0.3275911, %v1210_v11  ;;  %v1212_v51 = vand.u32 2147483647, %v5431_v2  ;;  %3881 = vrcp.f32 %v1335_v53 }
 0x223   : > { %v5452_v27 = vmul.f32 0.5, %v5288_v62  ;;  %v2237_v23 = vmul.f32 1.442695, %v2168_v54  ;;  %v2170_v49 = vsub.f32 0.0, %v2106_v14  ;;  %3883 = vrcp.f32 %v1336_v29 }
 0x224   : > { %v5401_v56 = vpop.f32.mrb[46].mxu1  ;;  %v5457_v32 = vmul.f32 0.5, %v5311_v6  ;;  %v1337_v42 = vadd.f32 1.0, %v1273_v21  ;;  %v5460_v9 = vmul.f32 0.70710677, %v5439_v4  ;;  %3885 = vpow2.f32 %v2235_v48 }
 0x225   : > { %v5406_v30 = vpop.f32.mrb[47].mxu1  ;;  %7662 = vst [vmem:[#allocation75_spill] sm:$0xff] %v5452_v27  ;;  %v2107_v11 = vmul.f32 %v1211_v28, %v1211_v28  ;;  %v5465_v24 = vmul.f32 0.70710677, %v5446_v1  ;;  %v5469_v62 = vadd.f32 %v5371_v16, %v5173_v36  ;;  %v5471_v53 = vpop.eup %3867  ;;  %v2239_v54 = vmul.f32 1.442695, %v2169_v25 }
 0x226   : > { %7663 = vst [vmem:[#allocation76_spill] sm:$0xff] %v5457_v32  ;;  %7664 = vst [vmem:[#allocation77_spill] sm:$0xff] %v5460_v9  ;;  %v1338_v6 = vadd.f32 1.0, %v1274_v58  ;;  %v2108_v14 = vmul.f32 %v1212_v51, %v1212_v51  ;;  %v5475_v29 = vadd.f32 %v5373_v61, %v5177_v39  ;;  %v5477_v21 = vpop.eup %3869  ;;  %3887 = vpow2.f32 %v2237_v23 }
 0x227   : > { %7665 = vst [vmem:[#allocation78_spill] sm:$0xff] %v5465_v24  ;;  %v5480_v48 = vmul.f32 0.5, %v5353_v44  ;;  %v2241_v2 = vmul.f32 1.442695, %v2170_v49  ;;  %v1275_v26 = vmul.f32 0.3275911, %v1211_v28  ;;  %v5484_v16 = vpop.eup %3871  ;;  %3889 = vrcp.f32 %v1337_v42 }
 0x228   : > { %v5418_v60 = vpop.f32.mrb[48].mxu1  ;;  %v5487_v25 = vmul.f32 0.5, %v5369_v18  ;;  %v1276_v58 = vmul.f32 0.3275911, %v1212_v51  ;;  %v1213_v61 = vand.u32 2147483647, %v5460_v9  ;;  %v5492_v33 = vpop.eup %3873  ;;  %3891 = vrcp.f32 %v1338_v6 }
 0x229   : > { %v5423_v5 = vpop.f32.mrb[49].mxu1  ;;  %7666 = vst [vmem:[#allocation79_spill] sm:$0xff] %v5480_v48  ;;  %v2171_v23 = vsub.f32 0.0, %v2107_v11  ;;  %v5495_v44 = vmul.f32 0.5, %v5410_v45  ;;  %v1214_v28 = vand.u32 2147483647, %v5465_v24  ;;  %v5501_v42 = vpop.eup %3875  ;;  %v5508_v9 = vadd.f32 %v5401_v56, %v5173_v36 }
 0x22a   : > { %7667 = vst [vmem:[#allocation80_spill] sm:$0xff] %v5487_v25  ;;  %v5499_v49 = vmul.f32 0.70710677, %v5469_v62  ;;  %v2172_v18 = vsub.f32 0.0, %v2108_v14  ;;  %v5504_v51 = vmul.f32 0.70710677, %v5475_v29  ;;  %v5510_v11 = vpop.eup %3877  ;;  %3893 = vpow2.f32 %v2239_v54 }
 0x22b   : > { %7668 = vst [vmem:[#allocation81_spill] sm:$0xff] %v5495_v44  ;;  %v1339_v45 = vadd.f32 1.0, %v1275_v26  ;;  %v5513_v24 = vmul.f32 0.5, %v5415_v59  ;;  %v5517_v44 = vadd.f32 %v5406_v30, %v5177_v39  ;;  %v5521_v14 = vpop.f32.mrb[12].mxu0  ;;  %v5523_v25 = vpop.eup %3879  ;;  %3895 = vpow2.f32 %v2241_v2 }
 0x22c   : > { %v5433_v3 = vpop.f32.mrb[50].mxu1  ;;  %7669 = vst [vmem:[#allocation82_spill] sm:$0xff] %v5499_v49  ;;  %7670 = vst [vmem:[#allocation83_spill] sm:$0xff] %v5504_v51  ;;  %v1340_v56 = vadd.f32 1.0, %v1276_v58  ;;  %v1277_v20 = vmul.f32 0.3275911, %v1213_v61  ;;  %v2109_v43 = vmul.f32 %v1213_v61, %v1213_v61  ;;  %v5527_v26 = vpop.eup %3881  ;;  %v2110_v30 = vmul.f32 %v1214_v28, %v1214_v28 }
 0x22d   : > { %v5441_v50 = vpop.f32.mrb[51].mxu1  ;;  %7671 = vst [vmem:[#allocation84_spill] sm:$0xff] %v5513_v24  ;;  %7672 = vst [vmem:[#allocation85_spill] sm:$0xff] %v5521_v14  ;;  %v2243_v59 = vmul.f32 1.442695, %v2171_v23  ;;  %v5530_v54 = vmul.f32 0.5, %v5439_v4  ;;  %v5533_v32 = vpop.eup %3883  ;;  %v5541_v58 = vadd.f32 %v5418_v60, %v5173_v36  ;;  %3897 = vrcp.f32 %v1339_v45 }
 0x22e   : > { %v1215_v24 = vand.u32 2147483647, %v5499_v49  ;;  %v2245_v14 = vmul.f32 1.442695, %v2172_v18  ;;  %v1216_v38 = vand.u32 2147483647, %v5504_v51  ;;  %v5543_v61 = vpop.eup %3885  ;;  %v5550_v49 = vadd.f32 %v5423_v5, %v5177_v39 }
 0x22f   : > { %7673 = vst [vmem:[#allocation86_spill] sm:$0xff] %v5530_v54  ;;  %v5537_v2 = vmul.f32 0.70710677, %v5508_v9  ;;  %7675 = vst [vmem:[#allocation88_spill] sm:$0xff] %v5543_v61  ;;  %v1278_v4 = vmul.f32 0.3275911, %v1214_v28  ;;  %3899 = vrcp.f32 %v1340_v56 }
 0x230   : > { %v5454_v0 = vpop.f32.mrb[52].mxu1  ;;  %v5546_v23 = vmul.f32 0.70710677, %v5517_v44  ;;  %v1341_v51 = vadd.f32 1.0, %v1277_v20  ;;  %v2173_v54 = vsub.f32 0.0, %v2109_v43  ;;  %v5555_v8 = vmul.f32 0.5, %v5446_v1  ;;  %v5559_v19 = vpop.eup %3887 }
 0x231   : > { %v5462_v10 = vpop.f32.mrb[53].mxu1  ;;  %7674 = vst [vmem:[#allocation87_spill] sm:$0xff] %v5537_v2  ;;  %7678 = vst [vmem:[#allocation91_spill] sm:$0xff] %v5559_v19  ;;  %3901 = vpow2.f32 %v2243_v59  ;;  %v2174_v28 = vsub.f32 0.0, %v2110_v30  ;;  %v1279_v45 = vmul.f32 0.3275911, %v1215_v24  ;;  %v2111_v55 = vmul.f32 %v1215_v24, %v1215_v24  ;;  %v5561_v35 = vpop.eup %3889 }
 0x232   : > { %7676 = vst [vmem:[#allocation89_spill] sm:$0xff] %v5546_v23  ;;  %7677 = vst [vmem:[#allocation90_spill] sm:$0xff] %v5555_v8  ;;  %3903 = vpow2.f32 %v2245_v14  ;;  %v2112_v5 = vmul.f32 %v1216_v38, %v1216_v38  ;;  %v1217_v27 = vand.u32 2147483647, %v5537_v2  ;;  %v5565_v20 = vmul.f32 0.70710677, %v5541_v58  ;;  %v5577_v30 = vpop.eup %3891 }
 0x233   : > { %v1342_v43 = vadd.f32 1.0, %v1278_v4  ;;  %v1218_v1 = vand.u32 2147483647, %v5546_v23  ;;  %v5569_v56 = vmul.f32 0.70710677, %v5550_v49  ;;  %v5573_v59 = vadd.f32 %v5433_v3, %v5173_v36  ;;  %7681 = vst [vmem:[#allocation94_spill] sm:$0xff] %v5577_v30 }
 0x234   : > { %v5482_v40 = vpop.f32.mrb[54].mxu1  ;;  %7679 = vst [vmem:[#allocation92_spill] sm:$0xff] %v5565_v20  ;;  %3905 = vrcp.f32 %v1341_v51  ;;  %v2247_v14 = vmul.f32 1.442695, %v2173_v54  ;;  %v5580_v2 = vmul.f32 0.5, %v5469_v62  ;;  %v5584_v23 = vpop.eup %3893  ;;  %v1343_v57 = vadd.f32 1.0, %v1279_v45 }
 0x235   : > { %v5490_v41 = vpop.f32.mrb[55].mxu1  ;;  %7680 = vst [vmem:[#allocation93_spill] sm:$0xff] %v5569_v56  ;;  %v1280_v8 = vmul.f32 0.3275911, %v1216_v38  ;;  %7683 = vst [vmem:[#allocation96_spill] sm:$0xff] %v5584_v23  ;;  %v2175_v31 = vsub.f32 0.0, %v2111_v55  ;;  %v5588_v3 = vadd.f32 %v5441_v50, %v5177_v39  ;;  %v5592_v30 = vpop.eup %3895  ;;  %v2113_v62 = vmul.f32 %v1217_v27, %v1217_v27 }
 0x236   : > { %7682 = vst [vmem:[#allocation95_spill] sm:$0xff] %v5580_v2  ;;  %v2249_v19 = vmul.f32 1.442695, %v2174_v28  ;;  %v5590_v61 = vpop.f32.mrb[13].mxu0  ;;  %7685 = vst [vmem:[#allocation98_spill] sm:$0xff] %v5592_v30  ;;  %v2176_v51 = vsub.f32 0.0, %v2112_v5  ;;  %3907 = vrcp.f32 %v1342_v43  ;;  %v2114_v2 = vmul.f32 %v1218_v1, %v1218_v1 }
 0x237   : > { %7684 = vst [vmem:[#allocation97_spill] sm:$0xff] %v5590_v61  ;;  %v1281_v54 = vmul.f32 0.3275911, %v1217_v27  ;;  %v1219_v38 = vand.u32 2147483647, %v5565_v20  ;;  %3909 = vpow2.f32 %v2247_v14  ;;  %v1344_v50 = vadd.f32 1.0, %v1280_v8  ;;  %v5606_v27 = vpop.eup %3897 }
 0x238   : > { %v5519_v6 = vpop.f32.mrb[56].mxu1  ;;  %v1220_v23 = vand.u32 2147483647, %v5569_v56  ;;  %v5597_v28 = vmul.f32 0.70710677, %v5573_v59  ;;  %v5602_v45 = vmul.f32 0.5, %v5475_v29  ;;  %3911 = vpow2.f32 %v2249_v19 }
 0x239   : > { %v5525_v48 = vpop.f32.mrb[57].mxu1  ;;  %v1282_v61 = vmul.f32 0.3275911, %v1218_v1  ;;  %7690 = vst [vmem:[#allocation103_spill] sm:$0xff] %v5606_v27  ;;  %v2251_v43 = vmul.f32 1.442695, %v2175_v31  ;;  %v5614_v30 = vpop.eup %3899  ;;  %3913 = vrcp.f32 %v1343_v57  ;;  %v2115_v29 = vmul.f32 %v1219_v38, %v1219_v38 }
 0x23a   : > { %7686 = vst [vmem:[#allocation99_spill] sm:$0xff] %v5597_v28  ;;  %7688 = vst [vmem:[#allocation101_spill] sm:$0xff] %v5602_v45  ;;  %v5609_v20 = vmul.f32 0.5, %v5508_v9  ;;  %v5612_v56 = vmul.f32 0.70710677, %v5588_v3  ;;  %v2177_v14 = vsub.f32 0.0, %v2113_v62  ;;  %3915 = vrcp.f32 %v1344_v50 }
 0x23b   : > { %v2253_v8 = vmul.f32 1.442695, %v2176_v51  ;;  %v5616_v45 = vpop.eup %3901  ;;  %v1345_v1 = vadd.f32 1.0, %v1281_v54  ;;  %v1221_v19 = vand.u32 2147483647, %v5597_v28  ;;  %v1009_v57 = vadd.f32 %v5454_v0, %v5173_v36 }
 0x23c   : > { %v5552_v18 = vpop.f32.mrb[58].mxu1  ;;  %7691 = vst [vmem:[#allocation104_spill] sm:$0xff] %v5609_v20  ;;  %7692 = vst [vmem:[#allocation105_spill] sm:$0xff] %v5612_v56  ;;  %v5621_v9 = vpop.eup %3903  ;;  %v1346_v20 = vadd.f32 1.0, %v1282_v61  ;;  %v1283_v27 = vmul.f32 0.3275911, %v1219_v38  ;;  %3917 = vpow2.f32 %v2251_v43  ;;  %v5635_v61 = vadd.f32 %v5462_v10, %v5177_v39 }
 0x23d   : > { %v5557_v60 = vpop.f32.mrb[59].mxu1  ;;  %7693 = vst [vmem:[#allocation106_spill] sm:$0xff] %v5616_v45  ;;  %7694 = vst [vmem:[#allocation107_spill] sm:$0xff] %v5621_v9  ;;  %v5628_v62 = vmul.f32 0.5, %v5517_v44  ;;  %v1222_v54 = vand.u32 2147483647, %v5612_v56  ;;  %3919 = vpow2.f32 %v2253_v8  ;;  %v2117_v50 = vmul.f32 %v1221_v19, %v1221_v19 }
 0x23e   : > { %v5631_v28 = vpop.eup %3905  ;;  %v2255_v45 = vmul.f32 1.442695, %v2177_v14  ;;  %v2179_v9 = vsub.f32 0.0, %v2115_v29  ;;  %3921 = vrcp.f32 %v1345_v1  ;;  %v1347_v44 = vadd.f32 1.0, %v1283_v27 }
 0x23f   : > { %7695 = vst [vmem:[#allocation108_spill] sm:$0xff] %v5628_v62  ;;  %3923 = vrcp.f32 %v1346_v20  ;;  %v5642_v56 = vmul.f32 0.70710677, %v1009_v57  ;;  %v5649_v10 = vmul.f32 0.5, %v5550_v49  ;;  %v5654_v27 = vmul.f32 0.5, %v5573_v59 }
 0x240   : > { %v5575_v24 = vpop.f32.mrb[60].mxu1  ;;  %v5646_v14 = vpop.eup %3907  ;;  %3925 = vpow2.f32 %v2255_v45  ;;  %v2259_v20 = vmul.f32 1.442695, %v2179_v9  ;;  %v2181_v49 = vsub.f32 0.0, %v2117_v50  ;;  %v5668_v45 = vmul.f32 0.5, %v5588_v3 }
 0x241   : > { %v5582_v4 = vpop.f32.mrb[61].mxu1  ;;  %7697 = vst [vmem:[#allocation110_spill] sm:$0xff] %v5642_v56  ;;  %7699 = vst [vmem:[#allocation112_spill] sm:$0xff] %v5649_v10  ;;  %v5651_v1 = vpop.eup %3909  ;;  %v1286_v10 = vmul.f32 0.3275911, %v1222_v54  ;;  %vm2484_vm1 = vcmp.ge.f32.partialorder %v5242_v52, 0.0 }
 0x242   : > { %7700 = vst [vmem:[#allocation113_spill] sm:$0xff] %v5654_v27  ;;  %v5661_v62 = vpop.eup %3911  ;;  %7705 = vst [vmem:[#allocation118_spill] sm:$0xff] %v5668_v45  ;;  %v1223_v59 = vand.u32 2147483647, %v5642_v56  ;;  %v1523_v9 = vmul.f32 1.0614054, %v5448_v13 }
 0x243   : > { %7703 = vst [vmem:[#allocation116_spill] sm:$0xff] %v5661_v62  ;;  %v1524_v3 = vmul.f32 1.0614054, %v5471_v53  ;;  %v2263_v56 = vmul.f32 1.442695, %v2181_v49  ;;  %v1350_v62 = vadd.f32 1.0, %v1286_v10 }
 0x244   : > { %v5599_v55 = vpop.f32.mrb[62].mxu1  ;;  %vm2485_vm2 = vcmp.ge.f32.partialorder %v5285_v34, 0.0  ;;  %vm2486_vm3 = vcmp.ge.f32.partialorder %v5304_v37, 0.0  ;;  %vm2487_vm4 = vcmp.ge.f32.partialorder %v5343_v15, 0.0  ;;  %v7742_v37 = vld [vmem:[#allocation70_spill] sm:$0xff] }
 0x245   : > { %7687 = vst [vmem:[#allocation100_spill] sm:$0xff] %v5599_v55  ;;  %v5604_v5 = vpop.f32.mrb[63].mxu1  ;;  %v2116_v55 = vmul.f32 %v1220_v23, %v1220_v23 }
 0x246   : > { %7689 = vst [vmem:[#allocation102_spill] sm:$0xff] %v5604_v5  ;;  %v2178_v5 = vsub.f32 0.0, %v2114_v2  ;;  %v1284_v2 = vmul.f32 0.3275911, %v1220_v23  ;;  %v5640_v23 = vmul.f32 0.5, %v5541_v58 }
 0x247   : > { %v2180_v38 = vsub.f32 0.0, %v2116_v55  ;;  %v2118_v55 = vmul.f32 %v1222_v54, %v1222_v54  ;;  %v5657_v58 = vmul.f32 0.70710677, %v5635_v61  ;;  %v1015_v54 = vadd.f32 %v5482_v40, %v5173_v36 }
 0x248   : > { %v5619_v31 = vpop.f32.mrb[64].mxu1  ;;  %v2257_v0 = vmul.f32 1.442695, %v2178_v5  ;;  %7696 = vst [vmem:[#allocation109_spill] sm:$0xff] %v5640_v23  ;;  %v1348_v29 = vadd.f32 1.0, %v1284_v2  ;;  %v5659_v23 = vpop.f32.mrb[14].mxu0 }
 0x249   : > { %v5625_v51 = vpop.f32.mrb[65].mxu1  ;;  %v1285_v5 = vmul.f32 0.3275911, %v1221_v19  ;;  %7701 = vst [vmem:[#allocation114_spill] sm:$0xff] %v5657_v58  ;;  %7702 = vst [vmem:[#allocation115_spill] sm:$0xff] %v5659_v23  ;;  %v5686_v40 = vmul.f32 0.5, %v1009_v57 }
 0x24a   : > { %3927 = vpow2.f32 %v2257_v0  ;;  %v2261_v2 = vmul.f32 1.442695, %v2180_v38  ;;  %v2182_v0 = vsub.f32 0.0, %v2118_v55  ;;  %v1224_v50 = vand.u32 2147483647, %v5657_v58 }
 0x24b   : > { %3929 = vrcp.f32 %v1347_v44  ;;  %v1349_v23 = vadd.f32 1.0, %v1285_v5  ;;  %v1587_v44 = vadd.f32 -1.4531521, %v1523_v9  ;;  %v2119_v55 = vmul.f32 %v1223_v59, %v1223_v59  ;;  %7710 = vst [vmem:[#allocation123_spill] sm:$0xff] %v5686_v40 }
 0x24c   : > { %v5637_v43 = vpop.f32.mrb[66].mxu1  ;;  %3931 = vrcp.f32 %v1348_v29  ;;  %v1017_v29 = vadd.f32 %v5490_v41, %v5177_v39  ;;  %v1287_v9 = vmul.f32 0.3275911, %v1223_v59  ;;  %v2265_v49 = vmul.f32 1.442695, %v2182_v0 }
 0x24d   : > { %v5644_v8 = vpop.f32.mrb[67].mxu1  ;;  %3933 = vpow2.f32 %v2259_v20  ;;  %v1651_v20 = vmul.f32 %v5448_v13, %v1587_v44  ;;  %v1288_v41 = vmul.f32 0.3275911, %v1224_v50  ;;  %v2120_v57 = vmul.f32 %v1224_v50, %v1224_v50 }
 0x24e   : > { %7698 = vst [vmem:[#allocation111_spill] sm:$0xff] %v5644_v8  ;;  %v5665_v8 = vpop.eup %3913  ;;  %3935 = vpow2.f32 %v2261_v2  ;;  %v1525_v2 = vmul.f32 1.0614054, %v5492_v33  ;;  %v5697_v40 = vmul.f32 0.70710677, %v1017_v29  ;;  %v5702_v59 = vmul.f32 0.5, %v5635_v61 }
 0x24f   : > { %v5676_v38 = vpop.eup %3915  ;;  %3937 = vrcp.f32 %v1349_v23  ;;  %v2183_v23 = vsub.f32 0.0, %v2119_v55  ;;  %v1352_v61 = vadd.f32 1.0, %v1288_v41 }
 0x250   : > { %v5663_v19 = vpop.f32.mrb[68].mxu1  ;;  %7707 = vst [vmem:[#allocation120_spill] sm:$0xff] %v5676_v38  ;;  %v5680_v45 = vpop.eup %3917  ;;  %v5691_v38 = vmul.f32 0.70710677, %v1015_v54  ;;  %3939 = vrcp.f32 %v1350_v62  ;;  %7714 = vst [vmem:[#allocation127_spill] sm:$0xff] %v5697_v40 }
 0x251   : > { %7704 = vst [vmem:[#allocation117_spill] sm:$0xff] %v5663_v19  ;;  %v5672_v27 = vpop.f32.mrb[69].mxu1  ;;  %7708 = vst [vmem:[#allocation121_spill] sm:$0xff] %v5680_v45  ;;  %v5684_v5 = vpop.eup %3919  ;;  %v1715_v45 = vadd.f32 1.4214138, %v1651_v20  ;;  %3941 = vpow2.f32 %v2263_v56 }
 0x252   : > { %7706 = vst [vmem:[#allocation119_spill] sm:$0xff] %v5672_v27  ;;  %7709 = vst [vmem:[#allocation122_spill] sm:$0xff] %v5684_v5  ;;  %v1588_v27 = vadd.f32 -1.4531521, %v1524_v3  ;;  %v5689_v58 = vpop.eup %3921  ;;  %v1589_v44 = vadd.f32 -1.4531521, %v1525_v2  ;;  %3943 = vpow2.f32 %v2265_v49 }
 0x253   : > { %7711 = vst [vmem:[#allocation124_spill] sm:$0xff] %v5689_v58  ;;  %7712 = vst [vmem:[#allocation125_spill] sm:$0xff] %v5691_v38  ;;  %v5694_v10 = vpop.eup %3923  ;;  %v1779_v58 = vmul.f32 %v5448_v13, %v1715_v45  ;;  %v1225_v62 = vand.u32 2147483647, %v5691_v38  ;;  %v5711_v20 = vpop.f32.mrb[15].mxu0 }
 0x254   : > { %7713 = vst [vmem:[#allocation126_spill] sm:$0xff] %v5694_v10  ;;  %v1652_v5 = vmul.f32 %v5471_v53, %v1588_v27  ;;  %v5699_v3 = vpop.eup %3925  ;;  %7716 = vst [vmem:[#allocation129_spill] sm:$0xff] %v5702_v59  ;;  %v5705_v10 = vpop.f32.mrb[70].mxu1  ;;  %v1351_v27 = vadd.f32 1.0, %v1287_v9  ;;  %v1653_v50 = vmul.f32 %v5492_v33, %v1589_v44  ;;  %v2184_v59 = vsub.f32 0.0, %v2120_v57 }
 0x255   : > { %7715 = vst [vmem:[#allocation128_spill] sm:$0xff] %v5699_v3  ;;  %v5707_v0 = vpop.eup %3927  ;;  %7718 = vst [vmem:[#allocation131_spill] sm:$0xff] %v5711_v20  ;;  %v1843_v55 = vadd.f32 -0.28449672, %v1779_v58  ;;  %v5718_v3 = vmul.f32 0.5, %v1015_v54 }
 0x256   : > { %v1716_v19 = vadd.f32 1.4214138, %v1652_v5  ;;  %7717 = vst [vmem:[#allocation130_spill] sm:$0xff] %v5707_v0  ;;  %v5713_v2 = vpop.eup %3929  ;;  %v1226_v56 = vand.u32 2147483647, %v5697_v40  ;;  %v5723_v0 = vmul.f32 0.5, %v1017_v29  ;;  %3945 = vrcp.f32 %v1351_v27 }
 0x257   : > { %v5716_v5 = vpop.eup %3931  ;;  %7719 = vst [vmem:[#allocation132_spill] sm:$0xff] %v5718_v3  ;;  %v1717_v9 = vadd.f32 1.4214138, %v1653_v50  ;;  %v2267_v44 = vmul.f32 1.442695, %v2183_v23  ;;  %v1907_v20 = vmul.f32 %v5448_v13, %v1843_v55  ;;  %3947 = vrcp.f32 %v1352_v61 }
 0x258   : > { %v1780_v45 = vmul.f32 %v5471_v53, %v1716_v19  ;;  %v5721_v38 = vpop.eup %3933  ;;  %7720 = vst [vmem:[#allocation133_spill] sm:$0xff] %v5723_v0  ;;  %v1289_v58 = vmul.f32 0.3275911, %v1225_v62  ;;  %v2121_v19 = vmul.f32 %v1225_v62, %v1225_v62  ;;  %v5731_v50 = vadd.f32 %v5519_v6, %v5173_v36 }
 0x259   : > { %v5726_v41 = vpop.eup %3935  ;;  %v1781_v57 = vmul.f32 %v5492_v33, %v1717_v9  ;;  %v1971_v54 = vadd.f32 0.2548296, %v1907_v20  ;;  %v2269_v55 = vmul.f32 1.442695, %v2184_v59  ;;  %v2122_v0 = vmul.f32 %v1226_v56, %v1226_v56 }
 0x25a   : > { %v1844_v49 = vadd.f32 -0.28449672, %v1780_v45  ;;  %7721 = vst [vmem:[#allocation134_spill] sm:$0xff] %v5726_v41  ;;  %v5734_v29 = vpop.eup %3937  ;;  %v1290_v45 = vmul.f32 0.3275911, %v1226_v56  ;;  %3949 = vpow2.f32 %v2267_v44  ;;  %v5740_v20 = vadd.f32 %v5525_v48, %v5177_v39 }
 0x25b   : > { %7722 = vst [vmem:[#allocation135_spill] sm:$0xff] %v5734_v29  ;;  %v1845_v27 = vadd.f32 -0.28449672, %v1781_v57  ;;  %v2035_v62 = vmul.f32 %v5448_v13, %v1971_v54  ;;  %v5742_v6 = vpop.eup %3939  ;;  %v1353_v61 = vadd.f32 1.0, %v1289_v58  ;;  %v1526_v59 = vmul.f32 1.0614054, %v5501_v42 }
 0x25c   : > { %v1908_v23 = vmul.f32 %v5471_v53, %v1844_v49  ;;  %7723 = vst [vmem:[#allocation136_spill] sm:$0xff] %v5742_v6  ;;  %v2185_v49 = vsub.f32 0.0, %v2121_v19  ;;  %v5749_v44 = vmul.f32 0.70710677, %v5731_v50  ;;  %v1527_v48 = vmul.f32 1.0614054, %v5527_v26  ;;  %v5755_v54 = vpop.eup %3941 }
 0x25d   : > { %v1909_v3 = vmul.f32 %v5492_v33, %v1845_v27  ;;  %v2355_v56 = vmul.f32 %v5477_v21, %v2035_v62  ;;  %v5753_v57 = vpop.f32.mrb[71].mxu1  ;;  %7725 = vst [vmem:[#allocation138_spill] sm:$0xff] %v5755_v54  ;;  %3951 = vpow2.f32 %v2269_v55  ;;  %v1354_v58 = vadd.f32 1.0, %v1290_v45  ;;  %v5757_v27 = vpop.eup %3943 }
 0x25e   : > { %v1972_v9 = vadd.f32 0.2548296, %v1908_v23  ;;  %7724 = vst [vmem:[#allocation137_spill] sm:$0xff] %v5749_v44  ;;  %v1590_v23 = vadd.f32 -1.4531521, %v1526_v59  ;;  %7726 = vst [vmem:[#allocation139_spill] sm:$0xff] %v5757_v27  ;;  %3953 = vrcp.f32 %v1353_v61 }
 0x25f   : > { %v1973_v19 = vadd.f32 0.2548296, %v1909_v3  ;;  %v2419_v21 = vsub.f32 1.0, %v2355_v56  ;;  %v5762_v40 = vmul.f32 0.70710677, %v5740_v20  ;;  %v2186_v55 = vsub.f32 0.0, %v2122_v0 }
 0x260   : > { %v2036_v13 = vmul.f32 %v5471_v53, %v1972_v9  ;;  %v5766_v53 = vadd.f32 %v5552_v18, %v5173_v36  ;;  %v5768_v9 = vpop.f32.mrb[16].mxu0  ;;  %v1654_v45 = vmul.f32 %v5501_v42, %v1590_v23  ;;  %v1591_v59 = vadd.f32 -1.4531521, %v1527_v48 }
 0x261   : > { %7727 = vst [vmem:[#allocation140_spill] sm:$0xff] %v5762_v40  ;;  %v2037_v3 = vmul.f32 %v5492_v33, %v1973_v19  ;;  %v2547_v27 = vsub.f32 0.0, %v2419_v21  ;;  %v1227_v56 = vand.u32 2147483647, %v5749_v44  ;;  %v2271_v54 = vmul.f32 1.442695, %v2185_v49 }
 0x262   : > { %v2356_v62 = vmul.f32 %v5484_v16, %v2036_v13  ;;  %v5773_v13 = vpop.eup %3945  ;;  %v1718_v18 = vadd.f32 1.4214138, %v1654_v45  ;;  %v1655_v41 = vmul.f32 %v5527_v26, %v1591_v59  ;;  %v1228_v61 = vand.u32 2147483647, %v5762_v40 }
 0x263   : > { %v2357_v6 = vmul.f32 %v5510_v11, %v2037_v3  ;;  %v5777_v29 = vpop.eup %3947  ;;  %v2611_v33 = vsel %vm2483_vm0, %v2419_v21, %v2547_v27  ;;  %v5783_v48 = vmul.f32 0.70710677, %v5766_v53  ;;  %3955 = vrcp.f32 %v1354_v58 }
 0x264   : > { %v2420_v16 = vsub.f32 1.0, %v2356_v62  ;;  %7728 = vst [vmem:[#allocation141_spill] sm:$0xff] %v5777_v29  ;;  %v2739_v19 = vadd.f32 1.0, %v2611_v33  ;;  %v1782_v49 = vmul.f32 %v5501_v42, %v1718_v18  ;;  %v1719_v62 = vadd.f32 1.4214138, %v1655_v41  ;;  %v5786_v11 = vpop.eup %3949  ;;  %v5793_v41 = vpop.f32.mrb[72].mxu1 }
 0x265   : > { %7729 = vst [vmem:[#allocation142_spill] sm:$0xff] %v5783_v48  ;;  %v2421_v23 = vsub.f32 1.0, %v2357_v6  ;;  %7730 = vst [vmem:[#allocation143_spill] sm:$0xff] %v5786_v11  ;;  %v2273_v3 = vmul.f32 1.442695, %v2186_v55  ;;  %v2123_v45 = vmul.f32 %v1227_v56, %v1227_v56  ;;  %v2124_v29 = vmul.f32 %v1228_v61, %v1228_v61  ;;  %v5795_v33 = vpop.f32.mrb[17].mxu0 }
 0x266   : > { %v2548_v0 = vsub.f32 0.0, %v2420_v16  ;;  %v2803_v27 = vmul.f32 %v2739_v19, %v5384_v12  ;;  %v1846_v40 = vadd.f32 -0.28449672, %v1782_v49  ;;  %v1291_v44 = vmul.f32 0.3275911, %v1227_v56 }
 0x267   : > { %v2549_v59 = vsub.f32 0.0, %v2421_v23  ;;  %v1229_v6 = vand.u32 2147483647, %v5783_v48  ;;  %v1783_v18 = vmul.f32 %v5527_v26, %v1719_v62  ;;  %v5797_v58 = vpop.eup %3951  ;;  %3957 = vpow2.f32 %v2271_v54 }
 0x268   : > { %v2612_v46 = vsel %vm2484_vm1, %v2420_v16, %v2548_v0  ;;  %7731 = vst [vmem:[#allocation144_spill] sm:$0xff] %v5797_v58  ;;  %v2867_v52 = vmul.f32 %v2803_v27, %v5216_v47  ;;  %v1910_v56 = vmul.f32 %v5501_v42, %v1846_v40  ;;  %v5806_v0 = vadd.f32 %v5557_v60, %v5177_v39  ;;  %v5809_v47 = vpop.eup %3953 }
 0x269   : > { %v2740_v21 = vadd.f32 1.0, %v2612_v46  ;;  %v2613_v12 = vsel %vm2485_vm2, %v2421_v23, %v2549_v59  ;;  %v1847_v19 = vadd.f32 -0.28449672, %v1783_v18  ;;  %3959 = vpow2.f32 %v2273_v3  ;;  %7732 = vst [vmem:[#allocation145_spill] sm:$0xff] %v5809_v47 }
 0x26a   : > { %v2741_v16 = vadd.f32 1.0, %v2613_v12  ;;  %v2187_v49 = vsub.f32 0.0, %v2123_v45  ;;  %v1974_v46 = vadd.f32 0.2548296, %v1910_v56  ;;  %v1355_v34 = vadd.f32 1.0, %v1291_v44 }
 0x26b   : > { %v2804_v55 = vmul.f32 %v2740_v21, %v5395_v22  ;;  %v1292_v22 = vmul.f32 0.3275911, %v1228_v61  ;;  %v1911_v54 = vmul.f32 %v5527_v26, %v1847_v19  ;;  %v2188_v23 = vsub.f32 0.0, %v2124_v29 }
 0x26c   : > { %v2805_v40 = vmul.f32 %v2741_v16, %v5404_v17  ;;  %v2125_v27 = vmul.f32 %v1229_v6, %v1229_v6  ;;  %v2038_v60 = vmul.f32 %v5501_v42, %v1974_v46  ;;  %v1528_v3 = vmul.f32 1.0614054, %v5533_v32 }
 0x26d   : > { %v2868_v62 = vmul.f32 %v2804_v55, %v5292_v63  ;;  %v5820_v45 = vmul.f32 0.70710677, %v5806_v0  ;;  %v1975_v44 = vadd.f32 0.2548296, %v1911_v54  ;;  %v1529_v61 = vmul.f32 1.0614054, %v5561_v35  ;;  %v5829_v59 = vpop.eup %3955 }
 0x26e   : > { %v5817_v63 = vmul.f32 %v2805_v40, %v5317_v7  ;;  %v2275_v17 = vmul.f32 1.442695, %v2187_v49  ;;  %v2358_v29 = vmul.f32 %v5523_v25, %v2038_v60  ;;  %v5827_v42 = vadd.f32 %v5575_v24, %v5173_v36  ;;  %7734 = vst [vmem:[#allocation147_spill] sm:$0xff] %v5829_v59  ;;  %v7735_v49 = vld [vmem:[#allocation88_spill] sm:$0xff] }
 0x26f   : > { %3059 = vmatprep.mubr.f32.mxu0 %v2868_v62  ;;  %7733 = vst [vmem:[#allocation146_spill] sm:$0xff] %v5820_v45  ;;  %v1592_v21 = vadd.f32 -1.4531521, %v1528_v3  ;;  %3961 = vrcp.f32 %v1355_v34  ;;  %v1356_v7 = vadd.f32 1.0, %v1292_v22  ;;  %v2039_v18 = vmul.f32 %v5527_v26, %v1975_v44 }
 0x270   : > { %3060 = vmatmul.mubr.f32.vlgmr.msra.gmra.mrb[32].mxu0 %v2867_v52  ;;  %v1593_v52 = vadd.f32 -1.4531521, %v1529_v61  ;;  %v1293_v55 = vmul.f32 0.3275911, %v1229_v6  ;;  %v2189_v12 = vsub.f32 0.0, %v2125_v27  ;;  %v2422_v56 = vsub.f32 1.0, %v2358_v29 }
 0x271   : > { %v1656_v16 = vmul.f32 %v5533_v32, %v1592_v21  ;;  %v2277_v19 = vmul.f32 1.442695, %v2188_v23  ;;  %v1230_v25 = vand.u32 2147483647, %v5820_v45  ;;  %v2359_v62 = vmul.f32 %v7735_v49, %v2039_v18  ;;  %v5839_v26 = vpop.eup %3957  ;;  %v5850_v18 = vpop.f32.mrb[73].mxu1 }
 0x272   : > { %v1657_v24 = vmul.f32 %v5561_v35, %v1593_v52  ;;  %3963 = vpow2.f32 %v2275_v17  ;;  %v2550_v46 = vsub.f32 0.0, %v2422_v56  ;;  %v5837_v34 = vmul.f32 0.70710677, %v5827_v42  ;;  %7737 = vst [vmem:[#allocation148_spill] sm:$0xff] %v5839_v26  ;;  %v5862_v49 = vpop.f32.mrb[18].mxu0 }
 0x273   : > { %v1720_v22 = vadd.f32 1.4214138, %v1656_v16  ;;  %v5842_v6 = vmul.f32 0.5, %v5731_v50  ;;  %3965 = vrcp.f32 %v1356_v7  ;;  %v2423_v40 = vsub.f32 1.0, %v2359_v62  ;;  %v5844_v23 = vpop.eup %3959 }
 0x274   : > { %7736 = vst [vmem:[#allocation88_spill] sm:$0xff] %v5837_v34  ;;  %v1721_v54 = vadd.f32 1.4214138, %v1657_v24  ;;  %7739 = vst [vmem:[#allocation150_spill] sm:$0xff] %v5844_v23  ;;  %v1357_v27 = vadd.f32 1.0, %v1293_v55  ;;  %v2614_v3 = vsel %vm2486_vm3, %v2422_v56, %v2550_v46  ;;  %v2126_v17 = vmul.f32 %v1230_v25, %v1230_v25  ;;  %v7744_v46 = vld [vmem:[#allocation54_spill] sm:$0xff] }
 0x275   : > { %7738 = vst [vmem:[#allocation149_spill] sm:$0xff] %v5842_v6  ;;  %v2279_v60 = vmul.f32 1.442695, %v2189_v12  ;;  %v1784_v44 = vmul.f32 %v5533_v32, %v1720_v22  ;;  %v2742_v61 = vadd.f32 1.0, %v2614_v3  ;;  %v2551_v29 = vsub.f32 0.0, %v2423_v40  ;;  %v7745_v3 = vld [vmem:[#allocation75_spill] sm:$0xff] }
 0x276   : > { %v1785_v21 = vmul.f32 %v5561_v35, %v1721_v54  ;;  %3967 = vpow2.f32 %v2277_v19  ;;  %v5853_v50 = vmul.f32 0.5, %v5740_v20  ;;  %v1231_v7 = vand.u32 2147483647, %v5837_v34 }
 0x277   : > { %v1848_v52 = vadd.f32 -0.28449672, %v1784_v44  ;;  %v5857_v55 = vmul.f32 0.5, %v5766_v53  ;;  %v2806_v12 = vmul.f32 %v2742_v61, %v7742_v37  ;;  %v2615_v56 = vsel %vm2487_vm4, %v2423_v40, %v2551_v29  ;;  %v7746_v61 = vld [vmem:[#allocation94_spill] sm:$0xff] }
 0x278   : > { %7740 = vst [vmem:[#allocation151_spill] sm:$0xff] %v5853_v50  ;;  %v1849_v16 = vadd.f32 -0.28449672, %v1785_v21  ;;  %3969 = vrcp.f32 %v1357_v27  ;;  %v1294_v62 = vmul.f32 0.3275911, %v1230_v25  ;;  %v2743_v19 = vadd.f32 1.0, %v2615_v56 }
 0x279   : > { %7741 = vst [vmem:[#allocation152_spill] sm:$0xff] %v5857_v55  ;;  %v1912_v20 = vmul.f32 %v5533_v32, %v1848_v52  ;;  %v5865_v24 = vpop.eup %3961  ;;  %3971 = vpow2.f32 %v2279_v60  ;;  %v2870_v22 = vmul.f32 %v2806_v12, %v7744_v46  ;;  %v2190_v53 = vsub.f32 0.0, %v2126_v17  ;;  %v7747_v21 = vld [vmem:[#allocation64_spill] sm:$0xff]  ;;  %v7749_v17 = vld [vmem:[#allocation103_spill] sm:$0xff]  ;;  %v7765_v50 = vld [vmem:[#allocation29_spill] sm:$0xff] }
 0x27a   : > { %7743 = vst [vmem:[#allocation70_spill] sm:$0xff] %v5865_v24  ;;  %v1913_v54 = vmul.f32 %v5561_v35, %v1849_v16  ;;  %v2807_v44 = vmul.f32 %v2743_v19, %v7745_v3  ;;  %v1295_v15 = vmul.f32 0.3275911, %v1231_v7  ;;  %v1530_v29 = vmul.f32 1.0614054, %v7746_v61  ;;  %v7751_v12 = vld [vmem:[#allocation67_spill] sm:$0xff] }
 0x27b   : > { %v1976_v40 = vadd.f32 0.2548296, %v1912_v20  ;;  %vm2488_vm5 = vcmp.ge.f32.partialorder %v7747_v21, 0.0  ;;  %v5873_v25 = vmul.f32 0.5, %v5806_v0  ;;  %v5877_v27 = vadd.f32 %v5582_v4, %v5177_v39  ;;  %3064 = vmatprep.mubr.f32.mxu0 %v2870_v22  ;;  %v7752_v16 = vld [vmem:[#allocation65_spill] sm:$0xff] }
 0x27c   : > { %v1977_v60 = vadd.f32 0.2548296, %v1913_v54  ;;  %v1531_v52 = vmul.f32 1.0614054, %v7749_v17  ;;  %v5880_v37 = vpop.eup %3963  ;;  %vm2489_vm6 = vcmp.ge.f32.partialorder %v7751_v12, 0.0  ;;  %v1358_v56 = vadd.f32 1.0, %v1294_v62  ;;  %3065 = vmatmul.mubr.f32.gmra.mrb[34].mxu0 %v5817_v63 }
 0x27d   : > { %7748 = vst [vmem:[#allocation54_spill] sm:$0xff] %v5873_v25  ;;  %7750 = vst [vmem:[#allocation75_spill] sm:$0xff] %v5880_v37  ;;  %v5884_v19 = vmul.f32 %v2807_v44, %v7752_v16  ;;  %v2040_v20 = vmul.f32 %v5533_v32, %v1976_v40  ;;  %v1594_v0 = vadd.f32 -1.4531521, %v1530_v29  ;;  %v5888_v46 = vpop.eup %3965  ;;  %v2281_v4 = vmul.f32 1.442695, %v2190_v53 }
 0x27e   : > { %7753 = vst [vmem:[#allocation94_spill] sm:$0xff] %v5888_v46  ;;  %v2127_v22 = vmul.f32 %v1231_v7, %v1231_v7  ;;  %v2041_v54 = vmul.f32 %v5561_v35, %v1977_v60  ;;  %v1595_v3 = vadd.f32 -1.4531521, %v1531_v52  ;;  %v1359_v34 = vadd.f32 1.0, %v1295_v15  ;;  %v7754_v25 = vld [vmem:[#allocation91_spill] sm:$0xff]  ;;  %v7756_v63 = vld [vmem:[#allocation96_spill] sm:$0xff] }
 0x27f   : > { %v2360_v55 = vmul.f32 %v7754_v25, %v2040_v20  ;;  %v1658_v62 = vmul.f32 %v7746_v61, %v1594_v0  ;;  %v5895_v44 = vadd.f32 %v5619_v31, %v5173_v36  ;;  %v5898_v32 = vmul.f32 0.70710677, %v5877_v27  ;;  %v7757_v53 = vld [vmem:[#allocation100_spill] sm:$0xff]  ;;  %v5911_v20 = vpop.f32.mrb[74].mxu1  ;;  %v7768_v12 = vld [vmem:[#allocation69_spill] sm:$0xff] }
 0x280   : > { %v2361_v40 = vmul.f32 %v7756_v63, %v2041_v54  ;;  %v5903_v7 = vadd.f32 %v7757_v53, %v5173_v36  ;;  %v1659_v35 = vmul.f32 %v7749_v17, %v1595_v3  ;;  %v5906_v15 = vpop.eup %3967  ;;  %3973 = vrcp.f32 %v1358_v56 }
 0x281   : > { %7755 = vst [vmem:[#allocation64_spill] sm:$0xff] %v5898_v32  ;;  %7758 = vst [vmem:[#allocation103_spill] sm:$0xff] %v5906_v15  ;;  %v2424_v29 = vsub.f32 1.0, %v2360_v55  ;;  %v1722_v25 = vadd.f32 1.4214138, %v1658_v62  ;;  %3975 = vpow2.f32 %v2281_v4  ;;  %v2191_v31 = vsub.f32 0.0, %v2127_v22 }
 0x282   : > { %v5909_v60 = vmul.f32 0.70710677, %v5895_v44  ;;  %v2425_v52 = vsub.f32 1.0, %v2361_v40  ;;  %v1723_v16 = vadd.f32 1.4214138, %v1659_v35  ;;  %v5913_v0 = vpop.eup %3969  ;;  %3977 = vrcp.f32 %v1359_v34  ;;  %v5919_v55 = vpop.f32.mrb[19].mxu0 }
 0x283   : > { %7759 = vst [vmem:[#allocation67_spill] sm:$0xff] %v5913_v0  ;;  %v2552_v54 = vsub.f32 0.0, %v2424_v29  ;;  %v1786_v3 = vmul.f32 %v7746_v61, %v1722_v25  ;;  %7760 = vst [vmem:[#allocation65_spill] sm:$0xff] %v5919_v55  ;;  %v5921_v56 = vpop.eup %3971  ;;  %v1232_v4 = vand.u32 2147483647, %v5898_v32  ;;  %v5929_v34 = vmul.f32 0.5, %v5827_v42 }
 0x284   : > { %v5917_v63 = vand.u32 2147483647, %v5909_v60  ;;  %7761 = vst [vmem:[#allocation91_spill] sm:$0xff] %v5921_v56  ;;  %v2553_v22 = vsub.f32 0.0, %v2425_v52  ;;  %v5925_v62 = vmul.f32 0.70710677, %v5903_v7  ;;  %v1787_v40 = vmul.f32 %v7749_v17, %v1723_v16 }
 0x285   : > { %7763 = vst [vmem:[#allocation100_spill] sm:$0xff] %v5929_v34  ;;  %v2616_v53 = vsel %vm2488_vm5, %v2424_v29, %v2552_v54  ;;  %v1850_v35 = vadd.f32 -0.28449672, %v1786_v3  ;;  %v2283_v45 = vmul.f32 1.442695, %v2191_v31  ;;  %v7764_v56 = vld [vmem:[#allocation31_spill] sm:$0xff]  ;;  %v2128_v21 = vmul.f32 %v1232_v4, %v1232_v4 }
 0x286   : > { %7762 = vst [vmem:[#allocation96_spill] sm:$0xff] %v5925_v62  ;;  %v1299_v25 = vmul.f32 0.3275911, %v5917_v63  ;;  %v2744_v48 = vadd.f32 1.0, %v2616_v53  ;;  %v666_v32 = vadd.f32 %v7765_v50, %v7764_v56  ;;  %v2617_v15 = vsel %vm2489_vm6, %v2425_v52, %v2553_v22  ;;  %v7766_v34 = vld [vmem:[#allocation76_spill] sm:$0xff]  ;;  %v7767_v54 = vld [vmem:[#allocation79_spill] sm:$0xff] }
 0x287   : > { %v2745_v6 = vadd.f32 1.0, %v2617_v15  ;;  %v1914_v16 = vmul.f32 %v7746_v61, %v1850_v35  ;;  %v1851_v0 = vadd.f32 -0.28449672, %v1787_v40  ;;  %v5941_v29 = vand.u32 2147483647, %v5925_v62  ;;  %v7769_v15 = vld [vmem:[#allocation66_spill] sm:$0xff] }
 0x288   : > { %v1363_v42 = vadd.f32 1.0, %v1299_v25  ;;  %v2808_v37 = vmul.f32 %v2744_v48, %v7766_v34  ;;  %v1532_v31 = vmul.f32 1.0614054, %v5614_v30  ;;  %vm2490_vm7 = vcmp.ge.f32.partialorder %v7768_v12, 0.0  ;;  %v5952_v34 = vpop.f32.mrb[75].mxu1  ;;  %v7777_v62 = vld [vmem:[#allocation106_spill] sm:$0xff] }
 0x289   : > { %v2809_v3 = vmul.f32 %v2745_v6, %v7767_v54  ;;  %v1978_v53 = vadd.f32 0.2548296, %v1914_v16  ;;  %v1915_v50 = vmul.f32 %v7749_v17, %v1851_v0  ;;  %v1296_v22 = vmul.f32 0.3275911, %v1232_v4 }
 0x28a   : > { %3979 = vrcp.f32 %v1363_v42  ;;  %v2872_v52 = vmul.f32 %v2808_v37, %v7769_v15  ;;  %v1596_v40 = vadd.f32 -1.4531521, %v1532_v31  ;;  %v5950_v48 = vadd.f32 %v5625_v51, %v5177_v39  ;;  %v5954_v35 = vpop.eup %3973  ;;  %v7773_v37 = vld [vmem:[#allocation71_spill] sm:$0xff] }
 0x28b   : > { %7770 = vst [vmem:[#allocation29_spill] sm:$0xff] %v5954_v35  ;;  %v5957_v6 = vmul.f32 0.5, %v5877_v27  ;;  %v5959_v25 = vmul.f32 %v2809_v3, %v666_v32  ;;  %v2042_v0 = vmul.f32 %v7746_v61, %v1978_v53  ;;  %v1979_v16 = vadd.f32 0.2548296, %v1915_v50  ;;  %v5962_v42 = vpop.eup %3975  ;;  %v5970_v27 = vpop.f32.mrb[20].mxu0  ;;  %v7776_v3 = vld [vmem:[#allocation98_spill] sm:$0xff] }
 0x28c   : > { %7772 = vst [vmem:[#allocation79_spill] sm:$0xff] %v5962_v42  ;;  %vm2491_vm8 = vcmp.ge.f32.partialorder %v7773_v37, 0.0  ;;  %v2192_v4 = vsub.f32 0.0, %v2128_v21  ;;  %v1297_v51 = vmul.f32 0.3275911, %v5941_v29  ;;  %3069 = vmatprep.mubr.f32.mxu0 %v2872_v52  ;;  %v1660_v31 = vmul.f32 %v5614_v30, %v1596_v40  ;;  %7774 = vst [vmem:[#allocation69_spill] sm:$0xff] %v5970_v27  ;;  %v5972_v32 = vpop.eup %3977 }
 0x28d   : > { %7771 = vst [vmem:[#allocation76_spill] sm:$0xff] %v5957_v6  ;;  %v5968_v54 = vmul.f32 0.70710677, %v5950_v48  ;;  %7775 = vst [vmem:[#allocation66_spill] sm:$0xff] %v5972_v32  ;;  %v2362_v61 = vmul.f32 %v7776_v3, %v2042_v0  ;;  %3070 = vmatmul.mubr.f32.gmra.mrb[36].mxu0 %v5884_v19  ;;  %v2043_v53 = vmul.f32 %v7749_v17, %v1979_v16  ;;  %v1533_v21 = vmul.f32 1.0614054, %v5631_v28 }
 0x28e   : > { %v5980_v50 = vadd.f32 %v5637_v43, %v5173_v36  ;;  %3981 = vpow2.f32 %v2283_v45  ;;  %v1360_v15 = vadd.f32 1.0, %v1296_v22  ;;  %v1724_v52 = vadd.f32 1.4214138, %v1660_v31  ;;  %v7779_v35 = vld [vmem:[#allocation30_spill] sm:$0xff]  ;;  %v6020_v37 = vpop.f32.mrb[76].mxu1 }
 0x28f   : > { %v5983_v40 = vand.u32 2147483647, %v5968_v54  ;;  %v2426_v6 = vsub.f32 1.0, %v2362_v61  ;;  %v2363_v42 = vmul.f32 %v7777_v62, %v2043_v53  ;;  %v1597_v0 = vadd.f32 -1.4531521, %v1533_v21  ;;  %v7778_v61 = vld [vmem:[#allocation32_spill] sm:$0xff] }
 0x290   : > { %v5987_v19 = vmul.f32 0.70710677, %v5980_v50  ;;  %v2285_v17 = vmul.f32 1.442695, %v2192_v4  ;;  %v1361_v16 = vadd.f32 1.0, %v1297_v51  ;;  %v1788_v3 = vmul.f32 %v5614_v30, %v1724_v52  ;;  %v7780_v53 = vld [vmem:[#allocation102_spill] sm:$0xff] }
 0x291   : > { %v1300_v43 = vmul.f32 0.3275911, %v5983_v40  ;;  %v2554_v32 = vsub.f32 0.0, %v2426_v6  ;;  %v2427_v45 = vsub.f32 1.0, %v2363_v42  ;;  %v1661_v22 = vmul.f32 %v5631_v28, %v1597_v0 }
 0x292   : > { %v5993_v31 = vand.u32 2147483647, %v5987_v19  ;;  %v668_v62 = vadd.f32 %v7779_v35, %v7778_v61  ;;  %v5999_v21 = vadd.f32 %v7780_v53, %v5177_v39  ;;  %v1852_v4 = vadd.f32 -0.28449672, %v1788_v3  ;;  %v7781_v53 = vld [vmem:[#allocation59_spill] sm:$0xff] }
 0x293   : > { %v1364_v51 = vadd.f32 1.0, %v1300_v43  ;;  %v2618_v52 = vsel %vm2490_vm7, %v2426_v6, %v2554_v32  ;;  %v2555_v42 = vsub.f32 0.0, %v2427_v45  ;;  %v1725_v23 = vadd.f32 1.4214138, %v1661_v22  ;;  %v7782_v6 = vld [vmem:[#allocation80_spill] sm:$0xff] }
 0x294   : > { %v6001_v46 = vpop.eup %3979  ;;  %v1301_v0 = vmul.f32 0.3275911, %v5993_v31  ;;  %v2746_v24 = vadd.f32 1.0, %v2618_v52  ;;  %v1916_v35 = vmul.f32 %v5614_v30, %v1852_v4  ;;  %v672_v59 = vadd.f32 %v7781_v53, %v7764_v56  ;;  %v7783_v52 = vld [vmem:[#allocation73_spill] sm:$0xff] }
 0x295   : > { %v1555_v26 = vmul.f32 1.0614054, %v6001_v46  ;;  %3983 = vrcp.f32 %v1364_v51  ;;  %v2619_v3 = vsel %vm2491_vm8, %v2427_v45, %v2555_v42  ;;  %v1789_v43 = vmul.f32 %v5631_v28, %v1725_v23  ;;  %v6022_v45 = vpop.f32.mrb[21].mxu0  ;;  %v7786_v42 = vld [vmem:[#allocation81_spill] sm:$0xff] }
 0x296   : > { %v1365_v12 = vadd.f32 1.0, %v1301_v0  ;;  %v2810_v32 = vmul.f32 %v2746_v24, %v7782_v6  ;;  %v2747_v22 = vadd.f32 1.0, %v2619_v3  ;;  %v1980_v27 = vadd.f32 0.2548296, %v1916_v35  ;;  %7784 = vst [vmem:[#allocation71_spill] sm:$0xff] %v6022_v45  ;;  %v7788_v45 = vld [vmem:[#allocation107_spill] sm:$0xff] }
 0x297   : > { %v1619_v58 = vadd.f32 -1.4531521, %v1555_v26  ;;  %vm2492_vm9 = vcmp.ge.f32.partialorder %v7783_v52, 0.0  ;;  %3985 = vrcp.f32 %v1360_v15  ;;  %v6017_v4 = vmul.f32 %v5941_v29, %v5941_v29 }
 0x298   : > { %v1853_v51 = vadd.f32 -0.28449672, %v1789_v43  ;;  %v1534_v53 = vmul.f32 1.0614054, %v5646_v14  ;;  %v6024_v23 = vpop.eup %3981  ;;  %v2874_v24 = vmul.f32 %v2810_v32, %v668_v62  ;;  %v2811_v26 = vmul.f32 %v2747_v22, %v7786_v42  ;;  %v7789_v62 = vld [vmem:[#allocation111_spill] sm:$0xff] }
 0x299   : > { %7785 = vst [vmem:[#allocation98_spill] sm:$0xff] %v6024_v23  ;;  %v1683_v0 = vmul.f32 %v6001_v46, %v1619_v58  ;;  %v2044_v15 = vmul.f32 %v5614_v30, %v1980_v27  ;;  %v6030_v35 = vmul.f32 0.70710677, %v5999_v21  ;;  %3987 = vrcp.f32 %v1365_v12  ;;  %v7791_v12 = vld [vmem:[#allocation77_spill] sm:$0xff] }
 0x29a   : > { %v1917_v29 = vmul.f32 %v5631_v28, %v1853_v51  ;;  %v1598_v3 = vadd.f32 -1.4531521, %v1534_v53  ;;  %v6033_v43 = vmul.f32 %v2811_v26, %v672_v59  ;;  %3074 = vmatprep.mubr.f32.mxu0 %v2874_v24  ;;  %v6038_v32 = vadd.f32 %v7789_v62, %v5177_v39 }
 0x29b   : > { %7787 = vst [vmem:[#allocation106_spill] sm:$0xff] %v6030_v35  ;;  %v1747_v6 = vadd.f32 1.4214138, %v1683_v0  ;;  %v2364_v47 = vmul.f32 %v7788_v45, %v2044_v15  ;;  %3989 = vpow2.f32 %v2285_v17  ;;  %v6041_v30 = vmul.f32 0.5, %v5903_v7  ;;  %3075 = vmatmul.mubr.f32.gmra.mrb[38].mxu0 %v5959_v25  ;;  %v7792_v15 = vld [vmem:[#allocation61_spill] sm:$0xff] }
 0x29c   : > { %v1981_v58 = vadd.f32 0.2548296, %v1917_v29  ;;  %v1662_v27 = vmul.f32 %v5646_v14, %v1598_v3  ;;  %vm2493_vm10 = vcmp.ge.f32.partialorder %v7791_v12, 0.0  ;;  %v2193_v59 = vsub.f32 0.0, %v6017_v4  ;;  %v7801_v12 = vld [vmem:[#allocation117_spill] sm:$0xff] }
 0x29d   : > { %7790 = vst [vmem:[#allocation32_spill] sm:$0xff] %v6041_v30  ;;  %v2131_v22 = vmul.f32 %v5917_v63, %v5917_v63  ;;  %v2428_v51 = vsub.f32 1.0, %v2364_v47  ;;  %v6050_v53 = vmul.f32 0.70710677, %v6038_v32  ;;  %3991 = vrcp.f32 %v1361_v16 }
 0x29e   : > { %v2045_v7 = vmul.f32 %v5631_v28, %v1981_v58  ;;  %v1726_v17 = vadd.f32 1.4214138, %v1662_v27  ;;  %v1535_v25 = vmul.f32 1.0614054, %v5665_v8  ;;  %v1234_v24 = vand.u32 2147483647, %v6030_v35 }
 0x29f   : > { %v6054_v45 = vpop.eup %3983  ;;  %v1811_v42 = vmul.f32 %v6001_v46, %v1747_v6  ;;  %v2556_v4 = vsub.f32 0.0, %v2428_v51  ;;  %v6059_v26 = vand.u32 2147483647, %v6050_v53  ;;  %v2195_v0 = vsub.f32 0.0, %v2131_v22 }
 0x2a0   : > { %v1556_v47 = vmul.f32 1.0614054, %v6054_v45  ;;  %v2365_v63 = vmul.f32 %v5651_v1, %v2045_v7  ;;  %v1790_v16 = vmul.f32 %v5646_v14, %v1726_v17  ;;  %v1599_v28 = vadd.f32 -1.4531521, %v1535_v25  ;;  %v6071_v25 = vpop.f32.mrb[77].mxu1 }
 0x2a1   : > { %v674_v29 = vadd.f32 %v7792_v15, %v7778_v61  ;;  %v2620_v3 = vsel %vm2492_vm9, %v2428_v51, %v2556_v4  ;;  %v1302_v6 = vmul.f32 0.3275911, %v6059_v26  ;;  %v6069_v62 = vpop.eup %3985  ;;  %v1298_v23 = vmul.f32 0.3275911, %v1234_v24  ;;  %7794 = vst [vmem:[#allocation102_spill] sm:$0xff] %v6071_v25  ;;  %v7795_v15 = vld [vmem:[#allocation84_spill] sm:$0xff] }
 0x2a2   : > { %7793 = vst [vmem:[#allocation30_spill] sm:$0xff] %v6069_v62  ;;  %v2748_v58 = vadd.f32 1.0, %v2620_v3  ;;  %v1620_v27 = vadd.f32 -1.4531521, %v1556_v47  ;;  %v2429_v30 = vsub.f32 1.0, %v2365_v63  ;;  %v2130_v1 = vmul.f32 %v1234_v24, %v1234_v24  ;;  %v6078_v62 = vpop.f32.mrb[22].mxu0 }
 0x2a3   : > { %v1854_v35 = vadd.f32 -0.28449672, %v1790_v16  ;;  %v1875_v7 = vadd.f32 -0.28449672, %v1811_v42  ;;  %v1366_v17 = vadd.f32 1.0, %v1302_v6  ;;  %v6073_v22 = vpop.eup %3987  ;;  %v1663_v4 = vmul.f32 %v5665_v8, %v1599_v28  ;;  %7796 = vst [vmem:[#allocation59_spill] sm:$0xff] %v6078_v62 }
 0x2a4   : > { %v2812_v11 = vmul.f32 %v2748_v58, %v7795_v15  ;;  %v2557_v52 = vsub.f32 0.0, %v2429_v30  ;;  %v2291_v47 = vmul.f32 1.442695, %v2195_v0  ;;  %v1684_v63 = vmul.f32 %v6054_v45, %v1620_v27  ;;  %v7798_v3 = vld [vmem:[#allocation72_spill] sm:$0xff]  ;;  %v7799_v15 = vld [vmem:[#allocation78_spill] sm:$0xff] }
 0x2a5   : > { %v1918_v51 = vmul.f32 %v5646_v14, %v1854_v35  ;;  %v1557_v24 = vmul.f32 1.0614054, %v6073_v22  ;;  %3993 = vrcp.f32 %v1366_v17  ;;  %v6082_v42 = vpop.eup %3989  ;;  %v678_v6 = vadd.f32 %v7798_v3, %v7764_v56 }
 0x2a6   : > { %7797 = vst [vmem:[#allocation80_spill] sm:$0xff] %v6082_v42  ;;  %v2876_v16 = vmul.f32 %v2812_v11, %v674_v29  ;;  %v2621_v58 = vsel %vm2493_vm10, %v2429_v30, %v2557_v52  ;;  %vm2494_vm11 = vcmp.ge.f32.partialorder %v7799_v15, 0.0  ;;  %v1939_v28 = vmul.f32 %v6001_v46, %v1875_v7  ;;  %v7802_v7 = vld [vmem:[#allocation86_spill] sm:$0xff] }
 0x2a7   : > { %v1982_v35 = vadd.f32 0.2548296, %v1918_v51  ;;  %v2132_v0 = vmul.f32 %v5983_v40, %v5983_v40  ;;  %v2749_v27 = vadd.f32 1.0, %v2621_v58  ;;  %v1621_v62 = vadd.f32 -1.4531521, %v1557_v24  ;;  %v6092_v17 = vpop.eup %3991  ;;  %v7803_v24 = vld [vmem:[#allocation116_spill] sm:$0xff] }
 0x2a8   : > { %7800 = vst [vmem:[#allocation73_spill] sm:$0xff] %v6092_v17  ;;  %v2287_v42 = vmul.f32 1.442695, %v2193_v59  ;;  %3079 = vmatprep.mubr.f32.mxu0 %v2876_v16  ;;  %v1727_v29 = vadd.f32 1.4214138, %v1663_v4  ;;  %v6097_v30 = vadd.f32 %v7801_v12, %v5173_v36  ;;  %v1362_v52 = vadd.f32 1.0, %v1298_v23 }
 0x2a9   : > { %v2046_v11 = vmul.f32 %v5646_v14, %v1982_v35  ;;  %3995 = vpow2.f32 %v2291_v47  ;;  %v1748_v51 = vadd.f32 1.4214138, %v1684_v63  ;;  %v2813_v3 = vmul.f32 %v2749_v27, %v7802_v7  ;;  %3080 = vmatmul.mubr.f32.gmra.mrb[40].mxu0 %v6033_v43  ;;  %v6110_v43 = vpop.f32.mrb[78].mxu1 }
 0x2aa   : > { %v1685_v40 = vmul.f32 %v6073_v22, %v1621_v62  ;;  %v1791_v59 = vmul.f32 %v5665_v8, %v1727_v29  ;;  %v6105_v14 = vmul.f32 0.70710677, %v6097_v30  ;;  %v2194_v4 = vsub.f32 0.0, %v2130_v1  ;;  %7804 = vst [vmem:[#allocation81_spill] sm:$0xff] %v6110_v43  ;;  %v6117_v1 = vpop.f32.mrb[23].mxu0  ;;  %v7809_v43 = vld [vmem:[#allocation82_spill] sm:$0xff] }
 0x2ab   : > { %v2366_v58 = vmul.f32 %v7803_v24, %v2046_v11  ;;  %v2003_v16 = vadd.f32 0.2548296, %v1939_v28  ;;  %v2196_v35 = vsub.f32 0.0, %v2132_v0  ;;  %v2877_v12 = vmul.f32 %v2813_v3, %v678_v6  ;;  %v7806_v11 = vld [vmem:[#allocation120_spill] sm:$0xff]  ;;  %7807 = vst [vmem:[#allocation111_spill] sm:$0xff] %v6117_v1 }
 0x2ac   : > { %3997 = vpow2.f32 %v2287_v42  ;;  %v1855_v47 = vadd.f32 -0.28449672, %v1791_v59  ;;  %v6108_v63 = vand.u32 2147483647, %v6105_v14  ;;  %v6113_v62 = vmul.f32 0.5, %v5999_v21 }
 0x2ad   : > { %v2430_v23 = vsub.f32 1.0, %v2366_v58  ;;  %3999 = vrcp.f32 %v1362_v52  ;;  %v1812_v27 = vmul.f32 %v6054_v45, %v1748_v51  ;;  %v1536_v29 = vmul.f32 1.0614054, %v7806_v11  ;;  %v7808_v52 = vld [vmem:[#allocation74_spill] sm:$0xff] }
 0x2ae   : > { %7805 = vst [vmem:[#allocation107_spill] sm:$0xff] %v6113_v62  ;;  %v1749_v28 = vadd.f32 1.4214138, %v1685_v40  ;;  %v2133_v42 = vmul.f32 %v5993_v31, %v5993_v31  ;;  %v1919_v0 = vmul.f32 %v5665_v8, %v1855_v47  ;;  %v2289_v3 = vmul.f32 1.442695, %v2194_v4 }
 0x2af   : > { %v2558_v6 = vsub.f32 0.0, %v2430_v23  ;;  %v6122_v7 = vpop.eup %3993  ;;  %v680_v21 = vadd.f32 %v7808_v52, %v7778_v61  ;;  %v1303_v24 = vmul.f32 0.3275911, %v6108_v63  ;;  %v1600_v51 = vadd.f32 -1.4531521, %v1536_v29 }
 0x2b0   : > { %v2067_v58 = vmul.f32 %v6001_v46, %v2003_v16  ;;  %v2293_v59 = vmul.f32 1.442695, %v2196_v35  ;;  %v1558_v31 = vmul.f32 1.0614054, %v6122_v7  ;;  %v1876_v62 = vadd.f32 -0.28449672, %v1812_v27 }
 0x2b1   : > { %v2622_v40 = vsel %vm2494_vm11, %v2430_v23, %v2558_v6  ;;  %v1983_v47 = vadd.f32 0.2548296, %v1919_v0  ;;  %v1367_v1 = vadd.f32 1.0, %v1303_v24  ;;  %vm2495_vm12 = vcmp.ge.f32.partialorder %v7809_v43, 0.0  ;;  %v7810_v46 = vld [vmem:[#allocation90_spill] sm:$0xff]  ;;  %v7811_v0 = vld [vmem:[#allocation121_spill] sm:$0xff] }
 0x2b2   : > { %v2750_v17 = vadd.f32 1.0, %v2622_v40  ;;  %v1813_v4 = vmul.f32 %v6073_v22, %v1749_v28  ;;  %v2197_v52 = vsub.f32 0.0, %v2133_v42  ;;  %v1622_v25 = vadd.f32 -1.4531521, %v1558_v31 }
 0x2b3   : > { %v1664_v29 = vmul.f32 %v7806_v11, %v1600_v51  ;;  %v3996_v55 = vpop.eup %3995  ;;  %v2134_v15 = vmul.f32 %v6059_v26, %v6059_v26  ;;  %v2047_v35 = vmul.f32 %v5665_v8, %v1983_v47  ;;  %4001 = vrcp.f32 %v1367_v1  ;;  %v7812_v51 = vld [vmem:[#allocation119_spill] sm:$0xff] }
 0x2b4   : > { %v2814_v16 = vmul.f32 %v2750_v17, %v7810_v46  ;;  %v2387_v23 = vmul.f32 %v3996_v55, %v2067_v58  ;;  %v6139_v27 = vmul.f32 0.5, %v5895_v44  ;;  %4003 = vpow2.f32 %v2293_v59  ;;  %v6157_v59 = vpop.f32.mrb[79].mxu1 }
 0x2b5   : > { %v1728_v6 = vadd.f32 1.4214138, %v1664_v29  ;;  %v1940_v28 = vmul.f32 %v6054_v45, %v1876_v62  ;;  %v2367_v24 = vmul.f32 %v7811_v0, %v2047_v35  ;;  %v6145_v17 = vadd.f32 %v7812_v51, %v5177_v39 }
 0x2b6   : > { %v2878_v42 = vmul.f32 %v2814_v16, %v680_v21  ;;  %v6147_v40 = vpop.eup %3997  ;;  %v1877_v26 = vadd.f32 -0.28449672, %v1813_v4  ;;  %v2295_v8 = vmul.f32 1.442695, %v2197_v52  ;;  %v1686_v55 = vmul.f32 %v6122_v7, %v1622_v25  ;;  %v7815_v52 = vld [vmem:[#allocation85_spill] sm:$0xff] }
 0x2b7   : > { %7813 = vst [vmem:[#allocation77_spill] sm:$0xff] %v6147_v40  ;;  %v1792_v44 = vmul.f32 %v7806_v11, %v1728_v6  ;;  %v6151_v1 = vpop.eup %3999  ;;  %4005 = vpow2.f32 %v2289_v3  ;;  %vm2515_vm13 = vcmp.ge.f32.partialorder %v5909_v60, 0.0  ;;  %v2198_v62 = vsub.f32 0.0, %v2134_v15  ;;  %v6170_v15 = vpop.f32.mrb[24].mxu0  ;;  %v7817_v6 = vld [vmem:[#allocation124_spill] sm:$0xff] }
 0x2b8   : > { %7814 = vst [vmem:[#allocation61_spill] sm:$0xff] %v6151_v1  ;;  %v2431_v21 = vsub.f32 1.0, %v2367_v24  ;;  %v6155_v58 = vmul.f32 0.70710677, %v6145_v17  ;;  %3084 = vmatprep.mubr.f32.mxu0 %v2878_v42  ;;  %v2451_v31 = vsub.f32 1.0, %v2387_v23  ;;  %v6160_v47 = vmul.f32 0.5, %v5950_v48 }
 0x2b9   : > { %v6163_v25 = vmul.f32 0.5, %v5980_v50  ;;  %v1856_v4 = vadd.f32 -0.28449672, %v1792_v44  ;;  %3085 = vmatmul.mubr.f32.gmra.mrb[42].mxu0 %v2877_v12  ;;  %v2004_v3 = vadd.f32 0.2548296, %v1940_v28  ;;  %v684_v29 = vadd.f32 %v7815_v52, %v7764_v56  ;;  %7816 = vst [vmem:[#allocation84_spill] sm:$0xff] %v6170_v15 }
 0x2ba   : > { %v2559_v46 = vsub.f32 0.0, %v2431_v21  ;;  %v6168_v16 = vand.u32 2147483647, %v6155_v58  ;;  %v1941_v35 = vmul.f32 %v6073_v22, %v1877_v26  ;;  %v1750_v23 = vadd.f32 1.4214138, %v1686_v55 }
 0x2bb   : > { %v1920_v48 = vmul.f32 %v7806_v11, %v1856_v4  ;;  %v1537_v50 = vmul.f32 1.0614054, %v7817_v6  ;;  %4007 = vpow2.f32 %v2295_v8  ;;  %v2297_v42 = vmul.f32 1.442695, %v2198_v62  ;;  %v7818_v62 = vld [vmem:[#allocation83_spill] sm:$0xff] }
 0x2bc   : > { %v2623_v12 = vsel %vm2495_vm12, %v2431_v21, %v2559_v46  ;;  %v1304_v28 = vmul.f32 0.3275911, %v6168_v16  ;;  %v2579_v0 = vsub.f32 0.0, %v2451_v31  ;;  %v2135_v51 = vmul.f32 %v6108_v63, %v6108_v63 }
 0x2bd   : > { %v2751_v24 = vadd.f32 1.0, %v2623_v12  ;;  %v1984_v44 = vadd.f32 0.2548296, %v1920_v48  ;;  %v6180_v52 = vpop.eup %4001  ;;  %v2068_v26 = vmul.f32 %v6054_v45, %v2004_v3  ;;  %v1601_v4 = vadd.f32 -1.4531521, %v1537_v50  ;;  %v7819_v12 = vld [vmem:[#allocation95_spill] sm:$0xff] }
 0x2be   : > { %v1368_v55 = vadd.f32 1.0, %v1304_v28  ;;  %v6185_v8 = vadd.f32 %v5705_v10, %v5173_v36  ;;  %v4004_v43 = vpop.eup %4003  ;;  %vm2496_vm14 = vcmp.ge.f32.partialorder %v7818_v62, 0.0  ;;  %v2005_v21 = vadd.f32 0.2548296, %v1941_v35 }
 0x2bf   : > { %v1814_v46 = vmul.f32 %v6122_v7, %v1750_v23  ;;  %v2815_v40 = vmul.f32 %v2751_v24, %v7819_v12  ;;  %v1559_v63 = vmul.f32 1.0614054, %v6180_v52  ;;  %v6192_v48 = vmul.f32 0.5, %v6038_v32  ;;  %v7821_v12 = vld [vmem:[#allocation122_spill] sm:$0xff] }
 0x2c0   : > { %v2048_v45 = vmul.f32 %v7806_v11, %v1984_v44  ;;  %4009 = vrcp.f32 %v1368_v55  ;;  %v1665_v3 = vmul.f32 %v7817_v6, %v1601_v4  ;;  %v2643_v10 = vsel %vm2515_vm13, %v2451_v31, %v2579_v0  ;;  %v6208_v31 = vpop.f32.mrb[80].mxu1 }
 0x2c1   : > { %v6198_v50 = vmul.f32 %v2815_v40, %v684_v29  ;;  %v1623_v35 = vadd.f32 -1.4531521, %v1559_v63  ;;  %v2199_v28 = vsub.f32 0.0, %v2135_v51  ;;  %v6200_v23 = vpop.eup %4005  ;;  %v2388_v24 = vmul.f32 %v4004_v43, %v2068_v26  ;;  %v6210_v40 = vpop.f32.mrb[25].mxu0  ;;  %v7823_v43 = vld [vmem:[#allocation97_spill] sm:$0xff] }
 0x2c2   : > { %7820 = vst [vmem:[#allocation72_spill] sm:$0xff] %v6200_v23  ;;  %v2368_v1 = vmul.f32 %v7821_v12, %v2048_v45  ;;  %v1729_v15 = vadd.f32 1.4214138, %v1665_v3  ;;  %v6204_v32 = vmul.f32 0.70710677, %v6185_v8  ;;  %v2069_v11 = vmul.f32 %v6073_v22, %v2005_v21  ;;  %7822 = vst [vmem:[#allocation78_spill] sm:$0xff] %v6210_v40 }
 0x2c3   : > { %v1878_v44 = vadd.f32 -0.28449672, %v1814_v46  ;;  %4011 = vpow2.f32 %v2297_v42  ;;  %v1687_v60 = vmul.f32 %v6180_v52, %v1623_v35  ;;  %v2771_v29 = vadd.f32 1.0, %v2643_v10  ;;  %v7824_v21 = vld [vmem:[#allocation126_spill] sm:$0xff] }
 0x2c4   : > { %v2432_v0 = vsub.f32 1.0, %v2368_v1  ;;  %v1793_v51 = vmul.f32 %v7817_v6, %v1729_v15  ;;  %v6214_v26 = vand.u32 2147483647, %v6204_v32  ;;  %v2299_v4 = vmul.f32 1.442695, %v2199_v28 }
 0x2c5   : > { %v1751_v55 = vadd.f32 1.4214138, %v1687_v60  ;;  %v686_v22 = vadd.f32 %v7823_v43, %v7778_v61  ;;  %v1538_v42 = vmul.f32 1.0614054, %v7824_v21  ;;  %v4008_v46 = vpop.eup %4007  ;;  %v2452_v63 = vsub.f32 1.0, %v2388_v24 }
 0x2c6   : > { %vm2516_vm15 = vcmp.ge.f32.partialorder %v5968_v54, 0.0  ;;  %v2560_v45 = vsub.f32 0.0, %v2432_v0  ;;  %v1857_v3 = vadd.f32 -0.28449672, %v1793_v51  ;;  %v1305_v1 = vmul.f32 0.3275911, %v6214_v26 }
 0x2c7   : > { %v6221_v10 = vmul.f32 %v4008_v46, %v2069_v11  ;;  %v1942_v15 = vmul.f32 %v6122_v7, %v1878_v44  ;;  %v1815_v35 = vmul.f32 %v6180_v52, %v1751_v55  ;;  %v1602_v28 = vadd.f32 -1.4531521, %v1538_v42  ;;  %v7826_v42 = vld [vmem:[#allocation87_spill] sm:$0xff] }
 0x2c8   : > { %v2624_v12 = vsel %vm2496_vm14, %v2432_v0, %v2560_v45  ;;  %v1921_v60 = vmul.f32 %v7817_v6, %v1857_v3  ;;  %v1369_v43 = vadd.f32 1.0, %v1305_v1  ;;  %v6230_v24 = vadd.f32 %v5753_v57, %v5177_v39  ;;  %v7827_v57 = vld [vmem:[#allocation101_spill] sm:$0xff] }
 0x2c9   : > { %v1879_v51 = vadd.f32 -0.28449672, %v1815_v35  ;;  %v6233_v23 = vmul.f32 0.5, %v6097_v30  ;;  %v2752_v11 = vadd.f32 1.0, %v2624_v12  ;;  %v1666_v44 = vmul.f32 %v7824_v21, %v1602_v28 }
 0x2ca   : > { %v6236_v46 = vpop.eup %4009  ;;  %v6239_v55 = vmul.f32 %v2771_v29, %v6139_v27  ;;  %v2580_v62 = vsub.f32 0.0, %v2452_v63  ;;  %v1985_v0 = vadd.f32 0.2548296, %v1921_v60  ;;  %4013 = vrcp.f32 %v1369_v43 }
 0x2cb   : > { %vm2497_vm0 = vcmp.ge.f32.partialorder %v7826_v42, 0.0  ;;  %v2006_v45 = vadd.f32 0.2548296, %v1942_v15  ;;  %v2816_v3 = vmul.f32 %v2752_v11, %v7827_v57  ;;  %v1560_v1 = vmul.f32 1.0614054, %v6236_v46 }
 0x2cc   : > { %7825 = vst [vmem:[#allocation117_spill] sm:$0xff] %v6239_v55  ;;  %v1730_v30 = vadd.f32 1.4214138, %v1666_v44  ;;  %v2453_v35 = vsub.f32 1.0, %v6221_v10  ;;  %vm2517_vm1 = vcmp.ge.f32.partialorder %v5987_v19, 0.0  ;;  %4015 = vpow2.f32 %v2299_v4  ;;  %v7828_v44 = vld [vmem:[#allocation128_spill] sm:$0xff] }
 0x2cd   : > { %v2049_v28 = vmul.f32 %v7817_v6, %v1985_v0  ;;  %v6248_v27 = vmul.f32 0.70710677, %v6230_v24  ;;  %v4012_v29 = vpop.eup %4011  ;;  %v1943_v12 = vmul.f32 %v6180_v52, %v1879_v51  ;;  %v2880_v60 = vmul.f32 %v2816_v3, %v686_v22  ;;  %v6265_v3 = vpop.f32.mrb[81].mxu1  ;;  %v7832_v19 = vld [vmem:[#allocation104_spill] sm:$0xff] }
 0x2ce   : > { %v1624_v15 = vadd.f32 -1.4531521, %v1560_v1  ;;  %v1794_v43 = vmul.f32 %v7824_v21, %v1730_v30  ;;  %v2136_v11 = vmul.f32 %v6168_v16, %v6168_v16  ;;  %v6255_v10 = vmul.f32 0.5, %v6145_v17  ;;  %v7829_v16 = vld [vmem:[#allocation115_spill] sm:$0xff] }
 0x2cf   : > { %v2369_v4 = vmul.f32 %v7828_v44, %v2049_v28  ;;  %v6259_v6 = vand.u32 2147483647, %v6248_v27  ;;  %v2644_v0 = vsel %vm2516_vm15, %v2452_v63, %v2580_v62  ;;  %v2070_v51 = vmul.f32 %v6122_v7, %v2006_v45  ;;  %3089 = vmatprep.mubr.f32.mxu0 %v2880_v60  ;;  %v6277_v45 = vpop.f32.mrb[26].mxu0 }
 0x2d0   : > { %v1688_v22 = vmul.f32 %v6236_v46, %v1624_v15  ;;  %v1858_v57 = vadd.f32 -0.28449672, %v1794_v43  ;;  %v690_v17 = vadd.f32 %v7829_v16, %v7764_v56  ;;  %3090 = vmatmul.mubr.f32.gmra.mrb[44].mxu0 %v6198_v50  ;;  %v1539_v28 = vmul.f32 1.0614054, %v5713_v2  ;;  %7830 = vst [vmem:[#allocation86_spill] sm:$0xff] %v6277_v45  ;;  %v7831_v45 = vld [vmem:[#allocation89_spill] sm:$0xff] }
 0x2d1   : > { %v2433_v1 = vsub.f32 1.0, %v2369_v4  ;;  %v1306_v30 = vmul.f32 0.3275911, %v6259_v6  ;;  %v2581_v54 = vsub.f32 0.0, %v2453_v35  ;;  %v2007_v63 = vadd.f32 0.2548296, %v1943_v12 }
 0x2d2   : > { %v1922_v7 = vmul.f32 %v7824_v21, %v1858_v57  ;;  %v6275_v62 = vadd.f32 %v5793_v41, %v5173_v36  ;;  %v2200_v60 = vsub.f32 0.0, %v2136_v11  ;;  %v1603_v44 = vadd.f32 -1.4531521, %v1539_v28 }
 0x2d3   : > { %v2561_v15 = vsub.f32 0.0, %v2433_v1  ;;  %v1370_v43 = vadd.f32 1.0, %v1306_v30  ;;  %v2390_v4 = vmul.f32 %v4012_v29, %v2070_v51  ;;  %v1752_v16 = vadd.f32 1.4214138, %v1688_v22 }
 0x2d4   : > { %v1986_v55 = vadd.f32 0.2548296, %v1922_v7  ;;  %v6280_v50 = vmul.f32 0.70710677, %v6275_v62  ;;  %v6282_v40 = vpop.eup %4013  ;;  %v2772_v12 = vadd.f32 1.0, %v2644_v0  ;;  %v1667_v41 = vmul.f32 %v5713_v2, %v1603_v44 }
 0x2d5   : > { %v2625_v57 = vsel %vm2497_vm0, %v2433_v1, %v2561_v15  ;;  %4017 = vrcp.f32 %v1370_v43  ;;  %vm2498_vm2 = vcmp.ge.f32.partialorder %v7831_v45, 0.0  ;;  %v2645_v11 = vsel %vm2517_vm1, %v2453_v35, %v2581_v54 }
 0x2d6   : > { %v2071_v29 = vmul.f32 %v6180_v52, %v2007_v63  ;;  %v2753_v51 = vadd.f32 1.0, %v2625_v57  ;;  %v1561_v22 = vmul.f32 1.0614054, %v6282_v40  ;;  %v4016_v30 = vpop.eup %4015  ;;  %vm2518_vm3 = vcmp.ge.f32.partialorder %v6050_v53, 0.0  ;;  %v7834_v63 = vld [vmem:[#allocation130_spill] sm:$0xff] }
 0x2d7   : > { %v2301_v0 = vmul.f32 1.442695, %v2200_v60  ;;  %v2050_v42 = vmul.f32 %v7824_v21, %v1986_v55  ;;  %v1731_v1 = vadd.f32 1.4214138, %v1667_v41  ;;  %v6295_v28 = vand.u32 2147483647, %v6280_v50 }
 0x2d8   : > { %v2454_v7 = vsub.f32 1.0, %v2390_v4  ;;  %v1816_v15 = vmul.f32 %v6236_v46, %v1752_v16  ;;  %v2817_v35 = vmul.f32 %v2753_v51, %v7832_v19  ;;  %v1625_v54 = vadd.f32 -1.4531521, %v1561_v22  ;;  %v6317_v19 = vpop.f32.mrb[82].mxu1 }
 0x2d9   : > { %v6300_v52 = vmul.f32 %v2772_v12, %v6160_v47  ;;  %v2370_v43 = vmul.f32 %v7834_v63, %v2050_v42  ;;  %v1795_v44 = vmul.f32 %v5713_v2, %v1731_v1  ;;  %v1307_v60 = vmul.f32 0.3275911, %v6295_v28  ;;  %v7835_v1 = vld [vmem:[#allocation131_spill] sm:$0xff] }
 0x2da   : > { %v6305_v21 = vmul.f32 %v4016_v30, %v2071_v29  ;;  %v6307_v55 = vmul.f32 %v2817_v35, %v690_v17  ;;  %v1689_v4 = vmul.f32 %v6282_v40, %v1625_v54  ;;  %v2137_v16 = vmul.f32 %v6214_v26, %v6214_v26  ;;  %v6319_v35 = vpop.f32.mrb[27].mxu0 }
 0x2db   : > { %7833 = vst [vmem:[#allocation116_spill] sm:$0xff] %v6300_v52  ;;  %v6312_v57 = vadd.f32 1.0, %v2645_v11  ;;  %v2434_v41 = vsub.f32 1.0, %v2370_v43  ;;  %v1859_v47 = vadd.f32 -0.28449672, %v1795_v44  ;;  %v1371_v12 = vadd.f32 1.0, %v1307_v60 }
 0x2dc   : > { %v2582_v51 = vsub.f32 0.0, %v2454_v7  ;;  %v1880_v22 = vadd.f32 -0.28449672, %v1816_v15  ;;  %4019 = vpow2.f32 %v2301_v0  ;;  %v1753_v42 = vadd.f32 1.4214138, %v1689_v4  ;;  %7836 = vst [vmem:[#allocation120_spill] sm:$0xff] %v6319_v35 }
 0x2dd   : > { %v692_v29 = vadd.f32 %v7835_v1, %v7778_v61  ;;  %v2562_v30 = vsub.f32 0.0, %v2434_v41  ;;  %v1923_v17 = vmul.f32 %v5713_v2, %v1859_v47  ;;  %4021 = vrcp.f32 %v1371_v12 }
 0x2de   : > { %v2455_v26 = vsub.f32 1.0, %v6305_v21  ;;  %vm2519_vm4 = vcmp.ge.f32.partialorder %v6105_v14, 0.0  ;;  %v1817_v11 = vmul.f32 %v6282_v40, %v1753_v42  ;;  %v2201_v15 = vsub.f32 0.0, %v2137_v16  ;;  %v7837_v21 = vld [vmem:[#allocation92_spill] sm:$0xff] }
 0x2df   : > { %v2138_v0 = vmul.f32 %v6259_v6, %v6259_v6  ;;  %v6326_v54 = vpop.eup %4017  ;;  %v2626_v63 = vsel %vm2498_vm2, %v2434_v41, %v2562_v30  ;;  %v1987_v43 = vadd.f32 0.2548296, %v1923_v17  ;;  %v1540_v44 = vmul.f32 1.0614054, %v5716_v5 }
 0x2e0   : > { %v6333_v60 = vadd.f32 %v5850_v18, %v5177_v39  ;;  %vm2499_vm5 = vcmp.ge.f32.partialorder %v7837_v21, 0.0  ;;  %v2646_v4 = vsel %vm2518_vm3, %v2454_v7, %v2582_v51  ;;  %v1944_v16 = vmul.f32 %v6236_v46, %v1880_v22  ;;  %v7838_v18 = vld [vmem:[#allocation108_spill] sm:$0xff]  ;;  %v6348_v22 = vpop.f32.mrb[83].mxu1  ;;  %v7840_v21 = vld [vmem:[#allocation109_spill] sm:$0xff] }
 0x2e1   : > { %v2754_v6 = vadd.f32 1.0, %v2626_v63  ;;  %v1562_v47 = vmul.f32 1.0614054, %v6326_v54  ;;  %v1881_v12 = vadd.f32 -0.28449672, %v1817_v11  ;;  %v2051_v45 = vmul.f32 %v5713_v2, %v1987_v43 }
 0x2e2   : > { %v1604_v41 = vadd.f32 -1.4531521, %v1540_v44  ;;  %v6342_v42 = vmul.f32 0.70710677, %v6333_v60  ;;  %v2303_v1 = vmul.f32 1.442695, %v2201_v15 }
 0x2e3   : > { %v2818_v30 = vmul.f32 %v2754_v6, %v7838_v18  ;;  %v1626_v17 = vadd.f32 -1.4531521, %v1562_v47  ;;  %v2202_v52 = vsub.f32 0.0, %v2138_v0  ;;  %v2583_v35 = vsub.f32 0.0, %v2455_v26  ;;  %v6355_v18 = vpop.f32.mrb[28].mxu0 }
 0x2e4   : > { %v2371_v53 = vmul.f32 %v5721_v38, %v2051_v45  ;;  %v1668_v7 = vmul.f32 %v5716_v5, %v1604_v41  ;;  %v1244_v51 = vand.u32 2147483647, %v6342_v42  ;;  %v2008_v11 = vadd.f32 0.2548296, %v1944_v16 }
 0x2e5   : > { %v6351_v2 = vmul.f32 0.5, %v6185_v8  ;;  %v2882_v63 = vmul.f32 %v2818_v30, %v692_v29  ;;  %v1690_v15 = vmul.f32 %v6326_v54, %v1626_v17  ;;  %v1945_v43 = vmul.f32 %v6282_v40, %v1881_v12 }
 0x2e6   : > { %v2435_v44 = vsub.f32 1.0, %v2371_v53  ;;  %v1732_v0 = vadd.f32 1.4214138, %v1668_v7  ;;  %v1308_v6 = vmul.f32 0.3275911, %v1244_v51  ;;  %v4020_v47 = vpop.eup %4019  ;;  %v2774_v38 = vadd.f32 1.0, %v2646_v4 }
 0x2e7   : > { %4023 = vpow2.f32 %v2303_v1  ;;  %v1754_v45 = vadd.f32 1.4214138, %v1690_v15  ;;  %v2305_v41 = vmul.f32 1.442695, %v2202_v52  ;;  %3094 = vmatprep.mubr.f32.mxu0 %v2882_v63  ;;  %v6357_v16 = vpop.eup %4021  ;;  %v2647_v8 = vsel %vm2519_vm4, %v2455_v26, %v2583_v35  ;;  %v7839_v15 = vld [vmem:[#allocation135_spill] sm:$0xff] }
 0x2e8   : > { %v2563_v29 = vsub.f32 0.0, %v2435_v44  ;;  %v1796_v30 = vmul.f32 %v5716_v5, %v1732_v0  ;;  %v1372_v12 = vadd.f32 1.0, %v1308_v6  ;;  %3095 = vmatmul.mubr.f32.gmra.mrb[46].mxu0 %v6307_v55  ;;  %v2072_v17 = vmul.f32 %v6236_v46, %v2008_v11 }
 0x2e9   : > { %v1818_v4 = vmul.f32 %v6326_v54, %v1754_v45  ;;  %v1563_v52 = vmul.f32 1.0614054, %v6357_v16  ;;  %v2139_v1 = vmul.f32 %v6295_v28, %v6295_v28  ;;  %v2009_v53 = vadd.f32 0.2548296, %v1945_v43 }
 0x2ea   : > { %v2627_v14 = vsel %vm2499_vm5, %v2435_v44, %v2563_v29  ;;  %v1860_v35 = vadd.f32 -0.28449672, %v1796_v30  ;;  %4025 = vrcp.f32 %v1372_v12  ;;  %v696_v7 = vadd.f32 %v5768_v9, %v7764_v56  ;;  %v7842_v12 = vld [vmem:[#allocation93_spill] sm:$0xff] }
 0x2eb   : > { %v1882_v26 = vadd.f32 -0.28449672, %v1818_v4  ;;  %v2755_v55 = vadd.f32 1.0, %v2627_v14  ;;  %v1627_v63 = vadd.f32 -1.4531521, %v1563_v52  ;;  %v2775_v46 = vadd.f32 1.0, %v2647_v8 }
 0x2ec   : > { %v1924_v11 = vmul.f32 %v5716_v5, %v1860_v35  ;;  %v1541_v0 = vmul.f32 1.0614054, %v7839_v15  ;;  %v6376_v28 = vadd.f32 %v5911_v20, %v5173_v36  ;;  %v2392_v43 = vmul.f32 %v4020_v47, %v2072_v17 }
 0x2ed   : > { %v2819_v44 = vmul.f32 %v2755_v55, %v7840_v21  ;;  %v1691_v6 = vmul.f32 %v6357_v16, %v1627_v63  ;;  %v2203_v45 = vsub.f32 0.0, %v2139_v1  ;;  %v6382_v9 = vmul.f32 %v6312_v57, %v6163_v25  ;;  %v6407_v63 = vpop.f32.mrb[84].mxu1 }
 0x2ee   : > { %v1988_v29 = vadd.f32 0.2548296, %v1924_v11  ;;  %v1605_v8 = vadd.f32 -1.4531521, %v1541_v0  ;;  %v6385_v30 = vmul.f32 0.70710677, %v6376_v28  ;;  %v2073_v20 = vmul.f32 %v6282_v40, %v2009_v53 }
 0x2ef   : > { %7841 = vst [vmem:[#allocation74_spill] sm:$0xff] %v6382_v9  ;;  %vm2500_vm6 = vcmp.ge.f32.partialorder %v7842_v12, 0.0  ;;  %v1946_v47 = vmul.f32 %v6326_v54, %v1882_v26  ;;  %v6390_v17 = vmul.f32 %v2819_v44, %v696_v7  ;;  %v1755_v4 = vadd.f32 1.4214138, %v1691_v6  ;;  %v6409_v11 = vpop.f32.mrb[29].mxu0  ;;  %v7846_v6 = vld [vmem:[#allocation136_spill] sm:$0xff] }
 0x2f0   : > { %v6393_v52 = vmul.f32 0.5, %v6230_v24  ;;  %v2052_v25 = vmul.f32 %v5716_v5, %v1988_v29  ;;  %v1669_v57 = vmul.f32 %v7839_v15, %v1605_v8  ;;  %v6398_v1 = vand.u32 2147483647, %v6385_v30  ;;  %v7844_v24 = vld [vmem:[#allocation134_spill] sm:$0xff] }
 0x2f1   : > { %v4024_v14 = vpop.eup %4023  ;;  %v2456_v35 = vsub.f32 1.0, %v2392_v43  ;;  %vm2520_vm7 = vcmp.ge.f32.partialorder %v6155_v58, 0.0  ;;  %4027 = vpow2.f32 %v2305_v41  ;;  %v1819_v40 = vmul.f32 %v6357_v16, %v1755_v4 }
 0x2f2   : > { %v2140_v53 = vmul.f32 %v1244_v51, %v1244_v51  ;;  %v6403_v26 = vmul.f32 %v2774_v38, %v6192_v48  ;;  %v2372_v7 = vmul.f32 %v7844_v24, %v2052_v25  ;;  %v1733_v55 = vadd.f32 1.4214138, %v1669_v57 }
 0x2f3   : > { %v1309_v5 = vmul.f32 0.3275911, %v6398_v1  ;;  %v6412_v0 = vmul.f32 %v2775_v46, %v6233_v23  ;;  %v2393_v43 = vmul.f32 %v4024_v14, %v2073_v20  ;;  %v2010_v41 = vadd.f32 0.2548296, %v1946_v47 }
 0x2f4   : > { %7843 = vst [vmem:[#allocation82_spill] sm:$0xff] %v6403_v26  ;;  %v2307_v21 = vmul.f32 1.442695, %v2203_v45  ;;  %v6414_v44 = vpop.eup %4025  ;;  %v2436_v51 = vsub.f32 1.0, %v2372_v7  ;;  %v1797_v48 = vmul.f32 %v7839_v15, %v1733_v55  ;;  %v1542_v29 = vmul.f32 1.0614054, %v7846_v6 }
 0x2f5   : > { %7845 = vst [vmem:[#allocation90_spill] sm:$0xff] %v6412_v0  ;;  %v1373_v38 = vadd.f32 1.0, %v1309_v5  ;;  %v2584_v8 = vsub.f32 0.0, %v2456_v35  ;;  %v1883_v4 = vadd.f32 -0.28449672, %v1819_v40  ;;  %v2204_v57 = vsub.f32 0.0, %v2140_v53 }
 0x2f6   : > { %v1564_v25 = vmul.f32 1.0614054, %v6414_v44  ;;  %vm2521_vm8 = vcmp.ge.f32.partialorder %v6204_v32, 0.0  ;;  %v2564_v23 = vsub.f32 0.0, %v2436_v51  ;;  %v1861_v46 = vadd.f32 -0.28449672, %v1797_v48 }
 0x2f7   : > { %4029 = vrcp.f32 %v1373_v38  ;;  %v1606_v20 = vadd.f32 -1.4531521, %v1542_v29  ;;  %v2457_v45 = vsub.f32 1.0, %v2393_v43  ;;  %v698_v47 = vadd.f32 %v5795_v33, %v7778_v61 }
 0x2f8   : > { %v1628_v14 = vadd.f32 -1.4531521, %v1564_v25  ;;  %v6424_v24 = vadd.f32 %v5952_v34, %v5177_v39  ;;  %v2074_v40 = vmul.f32 %v6326_v54, %v2010_v41  ;;  %v2628_v53 = vsel %vm2500_vm6, %v2436_v51, %v2564_v23  ;;  %v7847_v41 = vld [vmem:[#allocation99_spill] sm:$0xff]  ;;  %v7848_v51 = vld [vmem:[#allocation112_spill] sm:$0xff] }
 0x2f9   : > { %v1925_v7 = vmul.f32 %v7839_v15, %v1861_v46  ;;  %v1670_v55 = vmul.f32 %v7846_v6, %v1606_v20  ;;  %v1947_v5 = vmul.f32 %v6357_v16, %v1883_v4  ;;  %4031 = vpow2.f32 %v2307_v21 }
 0x2fa   : > { %v2756_v43 = vadd.f32 1.0, %v2628_v53  ;;  %v1692_v33 = vmul.f32 %v6414_v44, %v1628_v14  ;;  %v2648_v48 = vsel %vm2520_vm7, %v2456_v35, %v2584_v8  ;;  %v2309_v34 = vmul.f32 1.442695, %v2204_v57 }
 0x2fb   : > { %v1989_v38 = vadd.f32 0.2548296, %v1925_v7  ;;  %v1734_v29 = vadd.f32 1.4214138, %v1670_v55  ;;  %v4028_v54 = vpop.eup %4027  ;;  %vm2501_vm9 = vcmp.ge.f32.partialorder %v7847_v41, 0.0  ;;  %v2585_v12 = vsub.f32 0.0, %v2457_v45 }
 0x2fc   : > { %v2820_v25 = vmul.f32 %v2756_v43, %v7848_v51  ;;  %v1756_v23 = vadd.f32 1.4214138, %v1692_v33  ;;  %v6438_v46 = vmul.f32 0.70710677, %v6424_v24  ;;  %v6440_v21 = vmul.f32 %v4028_v54, %v2074_v40  ;;  %v7849_v40 = vld [vmem:[#allocation138_spill] sm:$0xff]  ;;  %v6468_v54 = vpop.f32.mrb[85].mxu1 }
 0x2fd   : > { %v6443_v4 = vmul.f32 0.5, %v6275_v62  ;;  %v2053_v58 = vmul.f32 %v7839_v15, %v1989_v38  ;;  %v1798_v35 = vmul.f32 %v7846_v6, %v1734_v29  ;;  %v2011_v8 = vadd.f32 0.2548296, %v1947_v5 }
 0x2fe   : > { %v2884_v57 = vmul.f32 %v2820_v25, %v698_v47  ;;  %v1820_v20 = vmul.f32 %v6414_v44, %v1756_v23  ;;  %v6449_v14 = vand.u32 2147483647, %v6438_v46  ;;  %v2776_v53 = vadd.f32 1.0, %v2648_v48  ;;  %v7850_v23 = vld [vmem:[#allocation105_spill] sm:$0xff] }
 0x2ff   : > { %v6452_v7 = vmul.f32 0.5, %v6333_v60  ;;  %v2373_v55 = vmul.f32 %v7849_v40, %v2053_v58  ;;  %v1862_v43 = vadd.f32 -0.28449672, %v1798_v35  ;;  %v2649_v62 = vsel %vm2521_vm8, %v2457_v45, %v2585_v12  ;;  %v6482_v40 = vpop.f32.mrb[30].mxu0 }
 0x300   : > { %v1884_v15 = vadd.f32 -0.28449672, %v1820_v20  ;;  %4033 = vpow2.f32 %v2309_v34  ;;  %v1310_v5 = vmul.f32 0.3275911, %v6449_v14  ;;  %3099 = vmatprep.mubr.f32.mxu0 %v2884_v57  ;;  %v2141_v48 = vmul.f32 %v6398_v1, %v6398_v1 }
 0x301   : > { %v6458_v47 = vpop.eup %4029  ;;  %v2437_v33 = vsub.f32 1.0, %v2373_v55  ;;  %v1926_v60 = vmul.f32 %v7846_v6, %v1862_v43  ;;  %3100 = vmatmul.mubr.f32.gmra.mrb[48].mxu0 %v6390_v17  ;;  %v1543_v38 = vmul.f32 1.0614054, %v5773_v13  ;;  %v2458_v32 = vsub.f32 1.0, %v6440_v21 }
 0x302   : > { %v2075_v45 = vmul.f32 %v6357_v16, %v2011_v8  ;;  %v1565_v34 = vmul.f32 1.0614054, %v6458_v47  ;;  %v1374_v29 = vadd.f32 1.0, %v1310_v5  ;;  %vm2522_vm10 = vcmp.ge.f32.partialorder %v6248_v27, 0.0 }
 0x303   : > { %v1948_v12 = vmul.f32 %v6414_v44, %v1884_v15  ;;  %v2565_v1 = vsub.f32 0.0, %v2437_v33  ;;  %v1990_v51 = vadd.f32 0.2548296, %v1926_v60  ;;  %v6474_v17 = vadd.f32 %v6020_v37, %v5173_v36  ;;  %v4032_v25 = vpop.eup %4031  ;;  %v7851_v60 = vld [vmem:[#allocation139_spill] sm:$0xff] }
 0x304   : > { %vm2502_vm11 = vcmp.ge.f32.partialorder %v7850_v23, 0.0  ;;  %v702_v16 = vadd.f32 %v5862_v49, %v7764_v56  ;;  %v1629_v21 = vadd.f32 -1.4531521, %v1565_v34  ;;  %4035 = vrcp.f32 %v1374_v29  ;;  %v6496_v29 = vpop.f32.mrb[31].mxu0 }
 0x305   : > { %v1607_v58 = vadd.f32 -1.4531521, %v1543_v38  ;;  %v2777_v35 = vadd.f32 1.0, %v2649_v62  ;;  %v2629_v8 = vsel %vm2501_vm9, %v2437_v33, %v2565_v1  ;;  %v2205_v57 = vsub.f32 0.0, %v2141_v48  ;;  %v7853_v33 = vld [vmem:[#allocation113_spill] sm:$0xff] }
 0x306   : > { %v2054_v20 = vmul.f32 %v7846_v6, %v1990_v51  ;;  %v2395_v37 = vmul.f32 %v4032_v25, %v2075_v45  ;;  %v2757_v55 = vadd.f32 1.0, %v2629_v8  ;;  %v1693_v43 = vmul.f32 %v6458_v47, %v1629_v21  ;;  %v6494_v45 = vpop.f32.mrb[86].mxu1 }
 0x307   : > { %v1671_v15 = vmul.f32 %v5773_v13, %v1607_v58  ;;  %v2586_v5 = vsub.f32 0.0, %v2458_v32  ;;  %v2012_v49 = vadd.f32 0.2548296, %v1948_v12  ;;  %v6488_v62 = vmul.f32 0.70710677, %v6474_v17 }
 0x308   : > { %v2374_v34 = vmul.f32 %v7851_v60, %v2054_v20  ;;  %v6491_v41 = vmul.f32 %v2776_v53, %v6255_v10  ;;  %v2821_v6 = vmul.f32 %v2757_v55, %v7853_v33  ;;  %v1757_v48 = vadd.f32 1.4214138, %v1693_v43  ;;  %v7854_v20 = vld [vmem:[#allocation65_spill] sm:$0xff] }
 0x309   : > { %v1735_v38 = vadd.f32 1.4214138, %v1671_v15  ;;  %vm2523_vm12 = vcmp.ge.f32.partialorder %v6280_v50, 0.0  ;;  %v2311_v1 = vmul.f32 1.442695, %v2205_v57  ;;  %v6500_v12 = vmul.f32 0.5, %v6376_v28 }
 0x30a   : > { %7852 = vst [vmem:[#allocation121_spill] sm:$0xff] %v6491_v41  ;;  %v2438_v51 = vsub.f32 1.0, %v2374_v34  ;;  %v6503_v25 = vand.u32 2147483647, %v6488_v62  ;;  %v4034_v10 = vpop.eup %4033  ;;  %v2459_v53 = vsub.f32 1.0, %v2395_v37  ;;  %v2885_v21 = vmul.f32 %v2821_v6, %v702_v16  ;;  %v7855_v15 = vld [vmem:[#allocation141_spill] sm:$0xff] }
 0x30b   : > { %v1821_v58 = vmul.f32 %v6458_v47, %v1757_v48  ;;  %v1799_v8 = vmul.f32 %v5773_v13, %v1735_v38  ;;  %v704_v55 = vadd.f32 %v7854_v20, %v7778_v61  ;;  %v1544_v28 = vmul.f32 1.0614054, %v7855_v15  ;;  %v7856_v38 = vld [vmem:[#allocation102_spill] sm:$0xff] }
 0x30c   : > { %v2566_v43 = vsub.f32 0.0, %v2438_v51  ;;  %v1311_v57 = vmul.f32 0.3275911, %v6503_v25  ;;  %v2650_v60 = vsel %vm2522_vm10, %v2458_v32, %v2586_v5  ;;  %v2076_v34 = vmul.f32 %v6414_v44, %v2012_v49  ;;  %v7857_v49 = vld [vmem:[#allocation118_spill] sm:$0xff] }
 0x30d   : > { %v1885_v33 = vadd.f32 -0.28449672, %v1821_v58  ;;  %v1863_v37 = vadd.f32 -0.28449672, %v1799_v8  ;;  %v1608_v48 = vadd.f32 -1.4531521, %v1544_v28  ;;  %v6518_v20 = vadd.f32 %v7856_v38, %v5177_v39 }
 0x30e   : > { %v2630_v16 = vsel %vm2502_vm11, %v2438_v51, %v2566_v43  ;;  %v1375_v6 = vadd.f32 1.0, %v1311_v57  ;;  %v6520_v0 = vpop.eup %4035  ;;  %v2587_v41 = vsub.f32 0.0, %v2459_v53  ;;  %4037 = vpow2.f32 %v2311_v1  ;;  %v7858_v43 = vld [vmem:[#allocation110_spill] sm:$0xff] }
 0x30f   : > { %v2758_v9 = vadd.f32 1.0, %v2630_v16  ;;  %v1927_v27 = vmul.f32 %v5773_v13, %v1863_v37  ;;  %v1949_v44 = vmul.f32 %v6458_v47, %v1885_v33  ;;  %v1566_v32 = vmul.f32 1.0614054, %v6520_v0 }
 0x310   : > { %v2142_v23 = vmul.f32 %v6449_v14, %v6449_v14  ;;  %4039 = vrcp.f32 %v1375_v6  ;;  %v6527_v5 = vmul.f32 %v4034_v10, %v2076_v34  ;;  %v1672_v8 = vmul.f32 %v7855_v15, %v1608_v48 }
 0x311   : > { %v2822_v51 = vmul.f32 %v2758_v9, %v7857_v49  ;;  %v1991_v58 = vadd.f32 0.2548296, %v1927_v27  ;;  %vm2503_vm13 = vcmp.ge.f32.partialorder %v7858_v43, 0.0  ;;  %v6533_v1 = vmul.f32 %v2777_v35, %v6351_v2  ;;  %v7862_v27 = vld [vmem:[#allocation145_spill] sm:$0xff] }
 0x312   : > { %v2778_v57 = vadd.f32 1.0, %v2650_v60  ;;  %v1630_v28 = vadd.f32 -1.4531521, %v1566_v32  ;;  %v6536_v33 = vmul.f32 0.70710677, %v6518_v20  ;;  %v2651_v14 = vsel %vm2523_vm12, %v2459_v53, %v2587_v41  ;;  %v7860_v60 = vld [vmem:[#allocation143_spill] sm:$0xff] }
 0x313   : > { %7859 = vst [vmem:[#allocation119_spill] sm:$0xff] %v6533_v1  ;;  %v2886_v10 = vmul.f32 %v2822_v51, %v704_v55  ;;  %v2055_v34 = vmul.f32 %v5773_v13, %v1991_v58  ;;  %v1736_v9 = vadd.f32 1.4214138, %v1672_v8  ;;  %v2013_v37 = vadd.f32 0.2548296, %v1949_v44  ;;  %v6550_v13 = vpop.f32.mrb[87].mxu1 }
 0x314   : > { %v1694_v16 = vmul.f32 %v6520_v0, %v1630_v28  ;;  %v2206_v6 = vsub.f32 0.0, %v2142_v23  ;;  %v1248_v48 = vand.u32 2147483647, %v6536_v33  ;;  %v2460_v2 = vsub.f32 1.0, %v6527_v5 }
 0x315   : > { %vm2524_vm14 = vcmp.ge.f32.partialorder %v6342_v42, 0.0  ;;  %v6546_v35 = vmul.f32 0.5, %v6424_v24  ;;  %v2375_v50 = vmul.f32 %v7860_v60, %v2055_v34  ;;  %v1800_v41 = vmul.f32 %v7855_v15, %v1736_v9  ;;  %3104 = vmatprep.mubr.f32.mxu0 %v2886_v10  ;;  %v7863_v24 = vld [vmem:[#allocation81_spill] sm:$0xff]  ;;  %v6561_v10 = vpop.f32.mrb[88].mxu1 }
 0x316   : > { %v6553_v53 = vmul.f32 %v2778_v57, %v6393_v52  ;;  %v1758_v55 = vadd.f32 1.4214138, %v1694_v16  ;;  %v1312_v38 = vmul.f32 0.3275911, %v1248_v48  ;;  %3105 = vmatmul.mubr.f32.gmra.mrb[50].mxu0 %v2885_v21  ;;  %v1545_v44 = vmul.f32 1.0614054, %v7862_v27 }
 0x317   : > { %v2779_v32 = vadd.f32 1.0, %v2651_v14  ;;  %v2439_v23 = vsub.f32 1.0, %v2375_v50  ;;  %v1864_v5 = vadd.f32 -0.28449672, %v1800_v41  ;;  %v6558_v49 = vadd.f32 %v7863_v24, %v5173_v36  ;;  %v6569_v9 = vpop.f32.mrb[89].mxu1  ;;  %v7864_v60 = vld [vmem:[#allocation69_spill] sm:$0xff] }
 0x318   : > { %7861 = vst [vmem:[#allocation85_spill] sm:$0xff] %v6553_v53  ;;  %v2077_v51 = vmul.f32 %v6458_v47, %v2013_v37  ;;  %v2313_v58 = vmul.f32 1.442695, %v2206_v6  ;;  %v1376_v8 = vadd.f32 1.0, %v1312_v38  ;;  %v1609_v28 = vadd.f32 -1.4531521, %v1545_v44  ;;  %v4038_v52 = vpop.eup %4037 }
 0x319   : > { %v2567_v57 = vsub.f32 0.0, %v2439_v23  ;;  %v2143_v21 = vmul.f32 %v6503_v25, %v6503_v25  ;;  %v1928_v14 = vmul.f32 %v7855_v15, %v1864_v5  ;;  %v6567_v34 = vmul.f32 0.70710677, %v6558_v49  ;;  %v7865_v44 = vld [vmem:[#allocation114_spill] sm:$0xff] }
 0x31a   : > { %v6571_v16 = vpop.eup %4039  ;;  %v2588_v47 = vsub.f32 0.0, %v2460_v2  ;;  %v1822_v37 = vmul.f32 %v6520_v0, %v1758_v55  ;;  %4041 = vrcp.f32 %v1376_v8  ;;  %v1673_v6 = vmul.f32 %v7862_v27, %v1609_v28  ;;  %v6584_v8 = vpop.f32.mrb[90].mxu1 }
 0x31b   : > { %v708_v50 = vadd.f32 %v7864_v60, %v7764_v56  ;;  %v2631_v25 = vsel %vm2503_vm13, %v2439_v23, %v2567_v57  ;;  %v1567_v41 = vmul.f32 1.0614054, %v6571_v16  ;;  %v1992_v38 = vadd.f32 0.2548296, %v1928_v14  ;;  %v7867_v14 = vld [vmem:[#allocation123_spill] sm:$0xff] }
 0x31c   : > { %vm2504_vm15 = vcmp.ge.f32.partialorder %v7865_v44, 0.0  ;;  %v6582_v5 = vmul.f32 %v2779_v32, %v6443_v4  ;;  %v2397_v24 = vmul.f32 %v4038_v52, %v2077_v51  ;;  %4043 = vpow2.f32 %v2313_v58  ;;  %v6591_v4 = vpop.f32.mrb[91].mxu1  ;;  %v7869_v51 = vld [vmem:[#allocation144_spill] sm:$0xff] }
 0x31d   : > { %v2759_v55 = vadd.f32 1.0, %v2631_v25  ;;  %v1631_v28 = vadd.f32 -1.4531521, %v1567_v41  ;;  %v2056_v1 = vmul.f32 %v7855_v15, %v1992_v38  ;;  %v1737_v60 = vadd.f32 1.4214138, %v1673_v6  ;;  %7868 = vst [vmem:[#allocation83_spill] sm:$0xff] %v6591_v4 }
 0x31e   : > { %7866 = vst [vmem:[#allocation124_spill] sm:$0xff] %v6582_v5  ;;  %v1249_v43 = vand.u32 2147483647, %v6567_v34  ;;  %v2652_v23 = vsel %vm2524_vm14, %v2460_v2, %v2588_v47  ;;  %v1886_v57 = vadd.f32 -0.28449672, %v1822_v37  ;;  %v2207_v26 = vsub.f32 0.0, %v2143_v21 }
 0x31f   : > { %v2823_v53 = vmul.f32 %v2759_v55, %v7867_v14  ;;  %v1695_v32 = vmul.f32 %v6571_v16, %v1631_v28  ;;  %v2376_v58 = vmul.f32 %v7869_v51, %v2056_v1  ;;  %v1801_v52 = vmul.f32 %v7862_v27, %v1737_v60  ;;  %v7870_v1 = vld [vmem:[#allocation147_spill] sm:$0xff] }
 0x320   : > { %v1313_v25 = vmul.f32 0.3275911, %v1249_v43  ;;  %v2461_v15 = vsub.f32 1.0, %v2397_v24  ;;  %vm2525_vm0 = vcmp.ge.f32.partialorder %v6385_v30, 0.0  ;;  %v6598_v42 = vmul.f32 0.5, %v6474_v17 }
 0x321   : > { %v2887_v6 = vmul.f32 %v2823_v53, %v708_v50  ;;  %v2144_v2 = vmul.f32 %v1248_v48, %v1248_v48  ;;  %v1759_v47 = vadd.f32 1.4214138, %v1695_v32  ;;  %v2440_v37 = vsub.f32 1.0, %v2376_v58  ;;  %v6604_v53 = vpop.f32.mrb[92].mxu1 }
 0x322   : > { %v1865_v21 = vadd.f32 -0.28449672, %v1801_v52  ;;  %v1377_v41 = vadd.f32 1.0, %v1313_v25  ;;  %v2780_v38 = vadd.f32 1.0, %v2652_v23  ;;  %v1950_v55 = vmul.f32 %v6520_v0, %v1886_v57  ;;  %7871 = vst [vmem:[#allocation95_spill] sm:$0xff] %v6604_v53 }
 0x323   : > { %v2315_v28 = vmul.f32 1.442695, %v2207_v26  ;;  %v1546_v14 = vmul.f32 1.0614054, %v7870_v1  ;;  %v1823_v60 = vmul.f32 %v6571_v16, %v1759_v47  ;;  %v2568_v24 = vsub.f32 0.0, %v2440_v37  ;;  %v6612_v26 = vpop.f32.mrb[93].mxu1 }
 0x324   : > { %v1929_v51 = vmul.f32 %v7862_v27, %v1865_v21  ;;  %4045 = vrcp.f32 %v1377_v41  ;;  %v6606_v17 = vpop.eup %4041  ;;  %v2589_v48 = vsub.f32 0.0, %v2461_v15  ;;  %v2208_v50 = vsub.f32 0.0, %v2144_v2  ;;  %7872 = vst [vmem:[#allocation122_spill] sm:$0xff] %v6612_v26  ;;  %v7873_v21 = vld [vmem:[#allocation125_spill] sm:$0xff]  ;;  %v7874_v2 = vld [vmem:[#allocation71_spill] sm:$0xff] }
 0x325   : > { %v1610_v32 = vadd.f32 -1.4531521, %v1546_v14  ;;  %v6610_v23 = vadd.f32 %v6157_v59, %v5177_v39  ;;  %v1887_v57 = vadd.f32 -0.28449672, %v1823_v60  ;;  %v2632_v58 = vsel %vm2504_vm15, %v2440_v37, %v2568_v24  ;;  %v7876_v24 = vld [vmem:[#allocation129_spill] sm:$0xff] }
 0x326   : > { %v1568_v52 = vmul.f32 1.0614054, %v6606_v17  ;;  %v1993_v25 = vadd.f32 0.2548296, %v1929_v51  ;;  %v4044_v47 = vpop.eup %4043  ;;  %vm2505_vm1 = vcmp.ge.f32.partialorder %v7873_v21, 0.0  ;;  %v710_v14 = vadd.f32 %v7874_v2, %v7778_v61 }
 0x327   : > { %v2014_v41 = vadd.f32 0.2548296, %v1950_v55  ;;  %v2760_v5 = vadd.f32 1.0, %v2632_v58  ;;  %v1674_v59 = vmul.f32 %v7870_v1, %v1610_v32  ;;  %v6622_v53 = vmul.f32 %v2780_v38, %v6452_v7  ;;  %v7877_v7 = vld [vmem:[#allocation148_spill] sm:$0xff] }
 0x328   : > { %v1632_v60 = vadd.f32 -1.4531521, %v1568_v52  ;;  %v2057_v44 = vmul.f32 %v7862_v27, %v1993_v25  ;;  %v6626_v37 = vmul.f32 0.70710677, %v6610_v23  ;;  %4047 = vpow2.f32 %v2315_v28 }
 0x329   : > { %7875 = vst [vmem:[#allocation97_spill] sm:$0xff] %v6622_v53  ;;  %v2824_v51 = vmul.f32 %v2760_v5, %v7876_v24  ;;  %v2317_v26 = vmul.f32 1.442695, %v2208_v50  ;;  %v1738_v55 = vadd.f32 1.4214138, %v1674_v59  ;;  %v2653_v2 = vsel %vm2525_vm0, %v2461_v15, %v2589_v48  ;;  %v7878_v5 = vld [vmem:[#allocation59_spill] sm:$0xff] }
 0x32a   : > { %v1951_v58 = vmul.f32 %v6571_v16, %v1887_v57  ;;  %v1696_v32 = vmul.f32 %v6606_v17, %v1632_v60  ;;  %v2377_v38 = vmul.f32 %v7877_v7, %v2057_v44  ;;  %v2078_v52 = vmul.f32 %v6520_v0, %v2014_v41 }
 0x32b   : > { %v2888_v27 = vmul.f32 %v2824_v51, %v710_v14  ;;  %v1802_v25 = vmul.f32 %v7870_v1, %v1738_v55  ;;  %v1250_v28 = vand.u32 2147483647, %v6626_v37  ;;  %v714_v50 = vadd.f32 %v7878_v5, %v7764_v56  ;;  %v7879_v14 = vld [vmem:[#allocation70_spill] sm:$0xff] }
 0x32c   : > { %v1760_v53 = vadd.f32 1.4214138, %v1696_v32  ;;  %v2441_v59 = vsub.f32 1.0, %v2377_v38  ;;  %v2145_v30 = vmul.f32 %v1249_v43, %v1249_v43  ;;  %v2781_v15 = vadd.f32 1.0, %v2653_v2 }
 0x32d   : > { %4049 = vpow2.f32 %v2317_v26  ;;  %v1866_v48 = vadd.f32 -0.28449672, %v1802_v25  ;;  %v1314_v57 = vmul.f32 0.3275911, %v1250_v28  ;;  %3109 = vmatprep.mubr.f32.mxu0 %v2888_v27  ;;  %v2015_v44 = vadd.f32 0.2548296, %v1951_v58 }
 0x32e   : > { %v6639_v60 = vpop.eup %4045  ;;  %v1824_v0 = vmul.f32 %v6606_v17, %v1760_v53  ;;  %v2569_v41 = vsub.f32 0.0, %v2441_v59  ;;  %3110 = vmatmul.mubr.f32.gmra.mrb[52].mxu0 %v2887_v6  ;;  %v1547_v24 = vmul.f32 1.0614054, %v7879_v14  ;;  %v2398_v51 = vmul.f32 %v4044_v47, %v2078_v52  ;;  %v7880_v53 = vld [vmem:[#allocation127_spill] sm:$0xff] }
 0x32f   : > { %v1569_v55 = vmul.f32 1.0614054, %v6639_v60  ;;  %v1930_v32 = vmul.f32 %v7870_v1, %v1866_v48  ;;  %v1378_v43 = vadd.f32 1.0, %v1314_v57  ;;  %v2209_v7 = vsub.f32 0.0, %v2145_v30  ;;  %v6654_v48 = vpop.f32.mrb[94].mxu1 }
 0x330   : > { %v1888_v2 = vadd.f32 -0.28449672, %v1824_v0  ;;  %v2633_v26 = vsel %vm2505_vm1, %v2441_v59, %v2569_v41  ;;  %v1611_v38 = vadd.f32 -1.4531521, %v1547_v24  ;;  %vm2506_vm2 = vcmp.ge.f32.partialorder %v7880_v53, 0.0  ;;  %7881 = vst [vmem:[#allocation126_spill] sm:$0xff] %v6654_v48 }
 0x331   : > { %v2761_v27 = vadd.f32 1.0, %v2633_v26  ;;  %v1633_v58 = vadd.f32 -1.4531521, %v1569_v55  ;;  %v1994_v25 = vadd.f32 0.2548296, %v1930_v32  ;;  %4051 = vrcp.f32 %v1378_v43  ;;  %v7882_v59 = vld [vmem:[#allocation132_spill] sm:$0xff] }
 0x332   : > { %v2079_v6 = vmul.f32 %v6571_v16, %v2015_v44  ;;  %v1952_v47 = vmul.f32 %v6606_v17, %v1888_v2  ;;  %v6651_v52 = vmul.f32 0.5, %v6518_v20  ;;  %v1675_v5 = vmul.f32 %v7879_v14, %v1611_v38  ;;  %v4048_v21 = vpop.eup %4047  ;;  %v6664_v44 = vpop.f32.mrb[95].mxu1  ;;  %v7885_v26 = vld [vmem:[#allocation150_spill] sm:$0xff] }
 0x333   : > { %vm2526_vm3 = vcmp.ge.f32.partialorder %v6438_v46, 0.0  ;;  %v2825_v30 = vmul.f32 %v2761_v27, %v7882_v59  ;;  %v1697_v57 = vmul.f32 %v6639_v60, %v1633_v58  ;;  %v2058_v0 = vmul.f32 %v7870_v1, %v1994_v25  ;;  %7883 = vst [vmem:[#allocation87_spill] sm:$0xff] %v6664_v44 }
 0x334   : > { %v6662_v16 = vadd.f32 %v6208_v31, %v5173_v36  ;;  %v6667_v20 = vmul.f32 %v2781_v15, %v6500_v12  ;;  %v2462_v41 = vsub.f32 1.0, %v2398_v51  ;;  %v2016_v24 = vadd.f32 0.2548296, %v1952_v47  ;;  %v7886_v15 = vld [vmem:[#allocation111_spill] sm:$0xff] }
 0x335   : > { %v1739_v55 = vadd.f32 1.4214138, %v1675_v5  ;;  %v6669_v32 = vmul.f32 %v2825_v30, %v714_v50  ;;  %v1761_v43 = vadd.f32 1.4214138, %v1697_v57  ;;  %v2319_v2 = vmul.f32 1.442695, %v2209_v7 }
 0x336   : > { %7884 = vst [vmem:[#allocation101_spill] sm:$0xff] %v6667_v20  ;;  %v2378_v38 = vmul.f32 %v7885_v26, %v2058_v0  ;;  %v2399_v27 = vmul.f32 %v4048_v21, %v2079_v6  ;;  %v2080_v1 = vmul.f32 %v6606_v17, %v2016_v24  ;;  %v6675_v58 = vmul.f32 0.70710677, %v6662_v16  ;;  %v7887_v30 = vld [vmem:[#allocation94_spill] sm:$0xff] }
 0x337   : > { %v1803_v31 = vmul.f32 %v7879_v14, %v1739_v55  ;;  %v4050_v25 = vpop.eup %4049  ;;  %v1825_v12 = vmul.f32 %v6639_v60, %v1761_v43  ;;  %v716_v51 = vadd.f32 %v7886_v15, %v7778_v61  ;;  %v2146_v47 = vmul.f32 %v1250_v28, %v1250_v28 }
 0x338   : > { %v2442_v50 = vsub.f32 1.0, %v2378_v38  ;;  %v2590_v5 = vsub.f32 0.0, %v2462_v41  ;;  %v2400_v7 = vmul.f32 %v4050_v25, %v2080_v1  ;;  %v1251_v6 = vand.u32 2147483647, %v6675_v58 }
 0x339   : > { %v1867_v59 = vadd.f32 -0.28449672, %v1803_v31  ;;  %vm2527_vm4 = vcmp.ge.f32.partialorder %v6488_v62, 0.0  ;;  %v1889_v17 = vadd.f32 -0.28449672, %v1825_v12  ;;  %v6685_v0 = vadd.f32 %v6265_v3, %v5177_v39  ;;  %v7888_v12 = vld [vmem:[#allocation137_spill] sm:$0xff] }
 0x33a   : > { %v2570_v21 = vsub.f32 0.0, %v2442_v50  ;;  %v1548_v57 = vmul.f32 1.0614054, %v7887_v30  ;;  %v2463_v24 = vsub.f32 1.0, %v2399_v27  ;;  %4053 = vpow2.f32 %v2319_v2 }
 0x33b   : > { %v1931_v55 = vmul.f32 %v7879_v14, %v1867_v59  ;;  %v1315_v28 = vmul.f32 0.3275911, %v1251_v6  ;;  %v6688_v43 = vpop.eup %4051  ;;  %v1953_v26 = vmul.f32 %v6639_v60, %v1889_v17  ;;  %v2210_v1 = vsub.f32 0.0, %v2146_v47  ;;  %v7889_v47 = vld [vmem:[#allocation133_spill] sm:$0xff] }
 0x33c   : > { %v2634_v38 = vsel %vm2506_vm2, %v2442_v50, %v2570_v21  ;;  %v1612_v31 = vadd.f32 -1.4531521, %v1548_v57  ;;  %v2654_v25 = vsel %vm2526_vm3, %v2462_v41, %v2590_v5  ;;  %vm2528_vm5 = vcmp.ge.f32.partialorder %v6536_v33, 0.0 }
 0x33d   : > { %v2762_v3 = vadd.f32 1.0, %v2634_v38  ;;  %v1570_v2 = vmul.f32 1.0614054, %v6688_v43  ;;  %v1995_v27 = vadd.f32 0.2548296, %v1931_v55  ;;  %vm2507_vm6 = vcmp.ge.f32.partialorder %v7888_v12, 0.0 }
 0x33e   : > { %v2464_v15 = vsub.f32 1.0, %v2400_v7  ;;  %v1379_v59 = vadd.f32 1.0, %v1315_v28  ;;  %v1676_v17 = vmul.f32 %v7887_v30, %v1612_v31  ;;  %v6700_v53 = vmul.f32 0.70710677, %v6685_v0  ;;  %v7890_v7 = vld [vmem:[#allocation75_spill] sm:$0xff]  ;;  %v7893_v12 = vld [vmem:[#allocation140_spill] sm:$0xff] }
 0x33f   : > { %v2591_v50 = vsub.f32 0.0, %v2463_v24  ;;  %v2826_v21 = vmul.f32 %v2762_v3, %v7889_v47  ;;  %v1634_v46 = vadd.f32 -1.4531521, %v1570_v2  ;;  %v2059_v41 = vmul.f32 %v7879_v14, %v1995_v27 }
 0x340   : > { %v2782_v5 = vadd.f32 1.0, %v2654_v25  ;;  %v2017_v57 = vadd.f32 0.2548296, %v1953_v26  ;;  %v2321_v38 = vmul.f32 1.442695, %v2210_v1  ;;  %4055 = vrcp.f32 %v1379_v59 }
 0x341   : > { %v2890_v55 = vmul.f32 %v2826_v21, %v716_v51  ;;  %v1698_v20 = vmul.f32 %v6688_v43, %v1634_v46  ;;  %v2379_v28 = vmul.f32 %v7890_v7, %v2059_v41  ;;  %v1740_v44 = vadd.f32 1.4214138, %v1676_v17  ;;  %v7892_v21 = vld [vmem:[#allocation84_spill] sm:$0xff] }
 0x342   : > { %v2592_v31 = vsub.f32 0.0, %v2464_v15  ;;  %v6707_v48 = vmul.f32 0.5, %v6558_v49  ;;  %v6710_v4 = vmul.f32 0.5, %v6610_v23  ;;  %v1252_v3 = vand.u32 2147483647, %v6700_v53 }
 0x343   : > { %v2655_v14 = vsel %vm2527_vm4, %v2463_v24, %v2591_v50  ;;  %v1762_v26 = vadd.f32 1.4214138, %v1698_v20  ;;  %v2443_v1 = vsub.f32 1.0, %v2379_v28  ;;  %v1804_v51 = vmul.f32 %v7887_v30, %v1740_v44  ;;  %3114 = vmatprep.mubr.f32.mxu0 %v2890_v55  ;;  %v7891_v50 = vld [vmem:[#allocation67_spill] sm:$0xff]  ;;  %v7894_v28 = vld [vmem:[#allocation149_spill] sm:$0xff] }
 0x344   : > { %v6717_v25 = vmul.f32 %v2782_v5, %v6546_v35  ;;  %4057 = vpow2.f32 %v2321_v38  ;;  %v2147_v2 = vmul.f32 %v1251_v6, %v1251_v6  ;;  %v1316_v49 = vmul.f32 0.3275911, %v1252_v3  ;;  %3115 = vmatmul.mubr.f32.gmra.mrb[54].mxu0 %v6669_v32  ;;  %v4054_v23 = vpop.eup %4053 }
 0x345   : > { %v2081_v27 = vmul.f32 %v6639_v60, %v2017_v57  ;;  %v1826_v59 = vmul.f32 %v6688_v43, %v1762_v26  ;;  %v2571_v62 = vsub.f32 0.0, %v2443_v1  ;;  %v1868_v24 = vadd.f32 -0.28449672, %v1804_v51 }
 0x346   : > { %v2783_v20 = vadd.f32 1.0, %v2655_v14  ;;  %v2656_v44 = vsel %vm2528_vm5, %v2464_v15, %v2592_v31  ;;  %v1380_v17 = vadd.f32 1.0, %v1316_v49  ;;  %v1549_v35 = vmul.f32 1.0614054, %v7891_v50 }
 0x347   : > { %v1890_v47 = vadd.f32 -0.28449672, %v1826_v59  ;;  %v2635_v6 = vsel %vm2507_vm6, %v2443_v1, %v2571_v62  ;;  %v1932_v32 = vmul.f32 %v7887_v30, %v1868_v24  ;;  %v6730_v60 = vadd.f32 %v6317_v19, %v5173_v36 }
 0x348   : > { %v720_v46 = vadd.f32 %v7892_v21, %v7764_v56  ;;  %v2763_v41 = vadd.f32 1.0, %v2635_v6  ;;  %v2211_v5 = vsub.f32 0.0, %v2147_v2  ;;  %4059 = vrcp.f32 %v1380_v17  ;;  %v7897_v6 = vld [vmem:[#allocation29_spill] sm:$0xff] }
 0x349   : > { %v2401_v33 = vmul.f32 %v4054_v23, %v2081_v27  ;;  %v1954_v15 = vmul.f32 %v6688_v43, %v1890_v47  ;;  %v1996_v57 = vadd.f32 0.2548296, %v1932_v32  ;;  %v1613_v38 = vadd.f32 -1.4531521, %v1549_v35  ;;  %v7895_v23 = vld [vmem:[#allocation78_spill] sm:$0xff] }
 0x34a   : > { %v6735_v55 = vpop.eup %4055  ;;  %vm2508_vm7 = vcmp.ge.f32.partialorder %v7893_v12, 0.0  ;;  %v2784_v7 = vadd.f32 1.0, %v2656_v44  ;;  %v2827_v31 = vmul.f32 %v2763_v41, %v7894_v28  ;;  %v6740_v19 = vmul.f32 0.5, %v6662_v16 }
 0x34b   : > { %v6743_v14 = vmul.f32 0.70710677, %v6730_v60  ;;  %v6746_v26 = vmul.f32 %v2783_v20, %v6598_v42  ;;  %v2018_v1 = vadd.f32 0.2548296, %v1954_v15  ;;  %v1571_v51 = vmul.f32 1.0614054, %v6735_v55 }
 0x34c   : > { %v2060_v2 = vmul.f32 %v7887_v30, %v1996_v57  ;;  %v6750_v49 = vmul.f32 %v2827_v31, %v720_v46  ;;  %v722_v27 = vadd.f32 %v7895_v23, %v7778_v61  ;;  %v1677_v59 = vmul.f32 %v7891_v50, %v1613_v38  ;;  %v7896_v20 = vld [vmem:[#allocation103_spill] sm:$0xff] }
 0x34d   : > { %v1253_v16 = vand.u32 2147483647, %v6743_v14  ;;  %v2465_v62 = vsub.f32 1.0, %v2401_v33  ;;  %vm2529_vm8 = vcmp.ge.f32.partialorder %v6567_v34, 0.0  ;;  %v1635_v24 = vadd.f32 -1.4531521, %v1571_v51 }
 0x34e   : > { %v2323_v42 = vmul.f32 1.442695, %v2211_v5  ;;  %v2380_v44 = vmul.f32 %v7896_v20, %v2060_v2  ;;  %v4058_v17 = vpop.eup %4057  ;;  %v6759_v35 = vmul.f32 %v2784_v7, %v6651_v52  ;;  %v1741_v30 = vadd.f32 1.4214138, %v1677_v59 }
 0x34f   : > { %v1317_v47 = vmul.f32 0.3275911, %v1253_v16  ;;  %v1550_v32 = vmul.f32 1.0614054, %v7897_v6  ;;  %v2082_v21 = vmul.f32 %v6688_v43, %v2018_v1  ;;  %v1699_v46 = vmul.f32 %v6735_v55, %v1635_v24 }
 0x350   : > { %v2444_v41 = vsub.f32 1.0, %v2380_v44  ;;  %v6766_v33 = vadd.f32 %v6348_v22, %v5177_v39  ;;  %v2148_v5 = vmul.f32 %v1252_v3, %v1252_v3  ;;  %v1805_v15 = vmul.f32 %v7891_v50, %v1741_v30 }
 0x351   : > { %v1381_v57 = vadd.f32 1.0, %v1317_v47  ;;  %v1614_v38 = vadd.f32 -1.4531521, %v1550_v32  ;;  %v1763_v52 = vadd.f32 1.4214138, %v1699_v46  ;;  %4061 = vpow2.f32 %v2323_v42 }
 0x352   : > { %v2572_v7 = vsub.f32 0.0, %v2444_v41  ;;  %v6770_v28 = vmul.f32 0.70710677, %v6766_v33  ;;  %v6772_v31 = vpop.eup %4059  ;;  %v2593_v43 = vsub.f32 0.0, %v2465_v62  ;;  %v1869_v1 = vadd.f32 -0.28449672, %v1805_v15 }
 0x353   : > { %4063 = vrcp.f32 %v1381_v57  ;;  %v1678_v51 = vmul.f32 %v7897_v6, %v1614_v38  ;;  %v2402_v22 = vmul.f32 %v4058_v17, %v2082_v21  ;;  %v1827_v3 = vmul.f32 %v6735_v55, %v1763_v52  ;;  %v7898_v21 = vld [vmem:[#allocation151_spill] sm:$0xff]  ;;  %v7899_v15 = vld [vmem:[#allocation142_spill] sm:$0xff] }
 0x354   : > { %v2636_v2 = vsel %vm2508_vm7, %v2444_v41, %v2572_v7  ;;  %v1572_v23 = vmul.f32 1.0614054, %v6772_v31  ;;  %v2212_v24 = vsub.f32 0.0, %v2148_v5  ;;  %v1933_v42 = vmul.f32 %v7891_v50, %v1869_v1 }
 0x355   : > { %v2764_v59 = vadd.f32 1.0, %v2636_v2  ;;  %v1742_v20 = vadd.f32 1.4214138, %v1678_v51  ;;  %v1891_v44 = vadd.f32 -0.28449672, %v1827_v3  ;;  %v2149_v47 = vmul.f32 %v1253_v16, %v1253_v16 }
 0x356   : > { %v1636_v30 = vadd.f32 -1.4531521, %v1572_v23  ;;  %v1254_v32 = vand.u32 2147483647, %v6770_v28  ;;  %v2657_v17 = vsel %vm2529_vm8, %v2465_v62, %v2593_v43  ;;  %vm2530_vm9 = vcmp.ge.f32.partialorder %v6626_v37, 0.0  ;;  %v7900_v23 = vld [vmem:[#allocation86_spill] sm:$0xff] }
 0x357   : > { %v2828_v12 = vmul.f32 %v2764_v59, %v7898_v21  ;;  %v1997_v46 = vadd.f32 0.2548296, %v1933_v42  ;;  %v1806_v41 = vmul.f32 %v7897_v6, %v1742_v20  ;;  %vm2509_vm10 = vcmp.ge.f32.partialorder %v7899_v15, 0.0  ;;  %v7901_v59 = vld [vmem:[#allocation91_spill] sm:$0xff]  ;;  %v7902_v21 = vld [vmem:[#allocation66_spill] sm:$0xff] }
 0x358   : > { %v2466_v5 = vsub.f32 1.0, %v2402_v22  ;;  %v1955_v57 = vmul.f32 %v6735_v55, %v1891_v44  ;;  %v1700_v38 = vmul.f32 %v6772_v31, %v1636_v30  ;;  %v1318_v16 = vmul.f32 0.3275911, %v1254_v32 }
 0x359   : > { %v2892_v52 = vmul.f32 %v2828_v12, %v722_v27  ;;  %v2325_v7 = vmul.f32 1.442695, %v2212_v24  ;;  %v2061_v34 = vmul.f32 %v7891_v50, %v1997_v46  ;;  %v1870_v62 = vadd.f32 -0.28449672, %v1806_v41  ;;  %v7903_v46 = vld [vmem:[#allocation146_spill] sm:$0xff] }
 0x35a   : > { %v2019_v43 = vadd.f32 0.2548296, %v1955_v57  ;;  %v1764_v1 = vadd.f32 1.4214138, %v1700_v38  ;;  %v2213_v51 = vsub.f32 0.0, %v2149_v47  ;;  %v1382_v3 = vadd.f32 1.0, %v1318_v16 }
 0x35b   : > { %v6791_v2 = vmul.f32 0.5, %v6685_v0  ;;  %v726_v22 = vadd.f32 %v7900_v23, %v7764_v56  ;;  %v2381_v42 = vmul.f32 %v7901_v59, %v2061_v34  ;;  %v1934_v20 = vmul.f32 %v7897_v6, %v1870_v62  ;;  %3119 = vmatprep.mubr.f32.mxu0 %v2892_v52  ;;  %v4062_v27 = vpop.eup %4061 }
 0x35c   : > { %v2785_v24 = vadd.f32 1.0, %v2657_v17  ;;  %v2594_v44 = vsub.f32 0.0, %v2466_v5  ;;  %v1828_v50 = vmul.f32 %v6772_v31, %v1764_v1  ;;  %4065 = vrcp.f32 %v1382_v3  ;;  %3120 = vmatmul.mubr.f32.gmra.mrb[56].mxu0 %v6750_v49 }
 0x35d   : > { %v6799_v30 = vpop.eup %4063  ;;  %4067 = vpow2.f32 %v2325_v7  ;;  %v2445_v0 = vsub.f32 1.0, %v2381_v42  ;;  %v1998_v47 = vadd.f32 0.2548296, %v1934_v20  ;;  %v1551_v12 = vmul.f32 1.0614054, %v7902_v21 }
 0x35e   : > { %vm2510_vm11 = vcmp.ge.f32.partialorder %v7903_v46, 0.0  ;;  %v2083_v41 = vmul.f32 %v6735_v55, %v2019_v43  ;;  %v1892_v57 = vadd.f32 -0.28449672, %v1828_v50  ;;  %v1573_v17 = vmul.f32 1.0614054, %v6799_v30  ;;  %v7904_v43 = vld [vmem:[#allocation79_spill] sm:$0xff] }
 0x35f   : > { %v2327_v38 = vmul.f32 1.442695, %v2213_v51  ;;  %v2573_v16 = vsub.f32 0.0, %v2445_v0  ;;  %v2062_v52 = vmul.f32 %v7897_v6, %v1998_v47  ;;  %v1615_v34 = vadd.f32 -1.4531521, %v1551_v12  ;;  %v7905_v50 = vld [vmem:[#allocation152_spill] sm:$0xff] }
 0x360   : > { %v6808_v49 = vadd.f32 %v6407_v63, %v5173_v36  ;;  %v2658_v7 = vsel %vm2530_vm9, %v2466_v5, %v2594_v44  ;;  %v1956_v62 = vmul.f32 %v6772_v31, %v1892_v57  ;;  %v1637_v1 = vadd.f32 -1.4531521, %v1573_v17 }
 0x361   : > { %v2150_v3 = vmul.f32 %v1254_v32, %v1254_v32  ;;  %v2637_v55 = vsel %vm2509_vm10, %v2445_v0, %v2573_v16  ;;  %v2382_v51 = vmul.f32 %v7904_v43, %v2062_v52  ;;  %v1679_v23 = vmul.f32 %v7902_v21, %v1615_v34  ;;  %v7906_v43 = vld [vmem:[#allocation120_spill] sm:$0xff] }
 0x362   : > { %v6818_v6 = vmul.f32 0.70710677, %v6808_v49  ;;  %v2403_v59 = vmul.f32 %v4062_v27, %v2083_v41  ;;  %v2020_v63 = vadd.f32 0.2548296, %v1956_v62  ;;  %v2765_v42 = vadd.f32 1.0, %v2637_v55 }
 0x363   : > { %v1701_v37 = vmul.f32 %v6799_v30, %v1637_v1  ;;  %v6822_v5 = vmul.f32 0.5, %v6730_v60  ;;  %v2446_v20 = vsub.f32 1.0, %v2382_v51  ;;  %v1743_v32 = vadd.f32 1.4214138, %v1679_v23 }
 0x364   : > { %v1255_v15 = vand.u32 2147483647, %v6818_v6  ;;  %v2786_v44 = vadd.f32 1.0, %v2658_v7  ;;  %v2829_v0 = vmul.f32 %v2765_v42, %v7905_v50  ;;  %4069 = vpow2.f32 %v2327_v38 }
 0x365   : > { %v1765_v47 = vadd.f32 1.4214138, %v1701_v37  ;;  %v2574_v12 = vsub.f32 0.0, %v2446_v20  ;;  %v2214_v57 = vsub.f32 0.0, %v2150_v3  ;;  %v1807_v27 = vmul.f32 %v7902_v21, %v1743_v32 }
 0x366   : > { %v1319_v41 = vmul.f32 0.3275911, %v1255_v15  ;;  %v6827_v17 = vpop.eup %4065  ;;  %v6830_v16 = vmul.f32 %v2785_v24, %v6707_v48  ;;  %v2467_v60 = vsub.f32 1.0, %v2403_v59  ;;  %vm2531_vm12 = vcmp.ge.f32.partialorder %v6675_v58, 0.0  ;;  %v7911_v58 = vld [vmem:[#allocation73_spill] sm:$0xff] }
 0x367   : > { %v2893_v52 = vmul.f32 %v2829_v0, %v726_v22  ;;  %v1829_v34 = vmul.f32 %v6799_v30, %v1765_v47  ;;  %v4068_v7 = vpop.eup %4067  ;;  %v2084_v62 = vmul.f32 %v6772_v31, %v2020_v63  ;;  %v2638_v38 = vsel %vm2510_vm11, %v2446_v20, %v2574_v12  ;;  %v7907_v63 = vld [vmem:[#allocation54_spill] sm:$0xff]  ;;  %v7909_v12 = vld [vmem:[#allocation88_spill] sm:$0xff] }
 0x368   : > { %v1574_v1 = vmul.f32 1.0614054, %v6827_v17  ;;  %v1871_v3 = vadd.f32 -0.28449672, %v1807_v27  ;;  %v728_v48 = vadd.f32 %v7906_v43, %v7778_v61  ;;  %v2766_v24 = vadd.f32 1.0, %v2638_v38  ;;  %v7908_v0 = vld [vmem:[#allocation30_spill] sm:$0xff] }
 0x369   : > { %v1893_v55 = vadd.f32 -0.28449672, %v1829_v34  ;;  %v1383_v51 = vadd.f32 1.0, %v1319_v41  ;;  %v6841_v23 = vmul.f32 %v2786_v44, %v6710_v4  ;;  %v2329_v59 = vmul.f32 1.442695, %v2214_v57 }
 0x36a   : > { %v1638_v22 = vadd.f32 -1.4531521, %v1574_v1  ;;  %v1935_v42 = vmul.f32 %v7902_v21, %v1871_v3  ;;  %v2595_v31 = vsub.f32 0.0, %v2467_v60  ;;  %v2830_v37 = vmul.f32 %v2766_v24, %v7907_v63 }
 0x36b   : > { %v1957_v46 = vmul.f32 %v6799_v30, %v1893_v55  ;;  %4071 = vrcp.f32 %v1383_v51  ;;  %v2404_v20 = vmul.f32 %v4068_v7, %v2084_v62  ;;  %v1552_v47 = vmul.f32 1.0614054, %v7908_v0 }
 0x36c   : > { %v1702_v32 = vmul.f32 %v6827_v17, %v1638_v22  ;;  %v1999_v50 = vadd.f32 0.2548296, %v1935_v42  ;;  %vm2511_vm13 = vcmp.ge.f32.partialorder %v7909_v12, 0.0  ;;  %v2894_v44 = vmul.f32 %v2830_v37, %v728_v48 }
 0x36d   : > { %v2021_v4 = vadd.f32 0.2548296, %v1957_v46  ;;  %v6850_v57 = vmul.f32 0.5, %v6766_v33  ;;  %v6854_v27 = vadd.f32 %v6468_v54, %v5177_v39  ;;  %4073 = vpow2.f32 %v2329_v59 }
 0x36e   : > { %v1766_v41 = vadd.f32 1.4214138, %v1702_v32  ;;  %v732_v34 = vadd.f32 %v6355_v18, %v7764_v56  ;;  %v2063_v7 = vmul.f32 %v7902_v21, %v1999_v50  ;;  %v4070_v62 = vpop.eup %4069  ;;  %vm2532_vm14 = vcmp.ge.f32.partialorder %v6700_v53, 0.0  ;;  %3124 = vmatprep.mubr.f32.mxu0 %v2894_v44  ;;  %v7910_v18 = vld [vmem:[#allocation98_spill] sm:$0xff] }
 0x36f   : > { %v2085_v38 = vmul.f32 %v6799_v30, %v2021_v4  ;;  %v2151_v1 = vmul.f32 %v1255_v15, %v1255_v15  ;;  %v1616_v3 = vadd.f32 -1.4531521, %v1552_v47  ;;  %v6862_v33 = vmul.f32 0.70710677, %v6854_v27  ;;  %3125 = vmatmul.mubr.f32.gmra.mrb[58].mxu0 %v2893_v52 }
 0x370   : > { %v2659_v54 = vsel %vm2531_vm12, %v2467_v60, %v2595_v31  ;;  %v2468_v55 = vsub.f32 1.0, %v2404_v20  ;;  %v1830_v43 = vmul.f32 %v6827_v17, %v1766_v41  ;;  %v2383_v48 = vmul.f32 %v7910_v18, %v2063_v7 }
 0x371   : > { %v6868_v21 = vmul.f32 %v4070_v62, %v2085_v38  ;;  %v6872_v30 = vadd.f32 %v6409_v11, %v7778_v61  ;;  %v1680_v15 = vmul.f32 %v7908_v0, %v1616_v3  ;;  %v1256_v24 = vand.u32 2147483647, %v6862_v33  ;;  %v6894_v38 = vpop.f32.mrb[32].mxu0 }
 0x372   : > { %v1894_v51 = vadd.f32 -0.28449672, %v1830_v43  ;;  %v2447_v22 = vsub.f32 1.0, %v2383_v48  ;;  %v1553_v60 = vmul.f32 1.0614054, %v7911_v58  ;;  %v6879_v59 = vadd.f32 %v6494_v45, %v5173_v36  ;;  %v3063_v43 = vpop.f32.mrb[33].mxu0 }
 0x373   : > { %v2787_v42 = vadd.f32 1.0, %v2659_v54  ;;  %v2215_v52 = vsub.f32 0.0, %v2151_v1  ;;  %v1744_v31 = vadd.f32 1.4214138, %v1680_v15  ;;  %v1320_v46 = vmul.f32 0.3275911, %v1256_v24 }
 0x374   : > { %v2596_v63 = vsub.f32 0.0, %v2468_v55  ;;  %v1958_v11 = vmul.f32 %v6827_v17, %v1894_v51  ;;  %v2575_v37 = vsub.f32 0.0, %v2447_v22  ;;  %v1617_v20 = vadd.f32 -1.4531521, %v1553_v60  ;;  %v6899_v51 = vpop.f32.mrb[34].mxu0 }
 0x375   : > { %v6882_v32 = vpop.eup %4071  ;;  %v2469_v50 = vsub.f32 1.0, %v6868_v21  ;;  %vm2533_vm15 = vcmp.ge.f32.partialorder %v6743_v14, 0.0  ;;  %v1808_v47 = vmul.f32 %v7908_v0, %v1744_v31  ;;  %v1384_v4 = vadd.f32 1.0, %v1320_v46 }
 0x376   : > { %v6888_v45 = vmul.f32 0.70710677, %v6879_v59  ;;  %v2022_v44 = vadd.f32 0.2548296, %v1958_v11  ;;  %v2639_v41 = vsel %vm2511_vm13, %v2447_v22, %v2575_v37  ;;  %v1575_v7 = vmul.f32 1.0614054, %v6882_v32 }
 0x377   : > { %v1681_v62 = vmul.f32 %v7911_v58, %v1617_v20  ;;  %v2767_v1 = vadd.f32 1.0, %v2639_v41  ;;  %v2331_v3 = vmul.f32 1.442695, %v2215_v52  ;;  %v1872_v54 = vadd.f32 -0.28449672, %v1808_v47  ;;  %v4074_v18 = vpop.eup %4073  ;;  %v7912_v22 = vld [vmem:[#allocation100_spill] sm:$0xff] }
 0x378   : > { %4075 = vrcp.f32 %v1384_v4  ;;  %v2660_v48 = vsel %vm2532_vm14, %v2468_v55, %v2596_v63  ;;  %v2086_v21 = vmul.f32 %v6827_v17, %v2022_v44  ;;  %v1639_v15 = vadd.f32 -1.4531521, %v1575_v7  ;;  %v3068_v11 = vpop.f32.mrb[35].mxu0  ;;  %v7913_v41 = vld [vmem:[#allocation64_spill] sm:$0xff] }
 0x379   : > { %v2152_v12 = vmul.f32 %v1256_v24, %v1256_v24  ;;  %v2831_v60 = vmul.f32 %v2767_v1, %v7912_v22  ;;  %v1936_v31 = vmul.f32 %v7908_v0, %v1872_v54  ;;  %v1745_v46 = vadd.f32 1.4214138, %v1681_v62  ;;  %v6910_v55 = vpop.f32.mrb[36].mxu0 }
 0x37a   : > { %v1257_v52 = vand.u32 2147483647, %v6888_v45  ;;  %v6905_v37 = vmul.f32 %v2787_v42, %v6740_v19  ;;  %v2597_v20 = vsub.f32 0.0, %v2469_v50  ;;  %v6907_v53 = vmul.f32 %v4074_v18, %v2086_v21  ;;  %v3073_v44 = vpop.f32.mrb[37].mxu0 }
 0x37b   : > { %v1703_v17 = vmul.f32 %v6882_v32, %v1639_v15  ;;  %v6912_v24 = vmul.f32 %v2831_v60, %v732_v34  ;;  %v2000_v63 = vadd.f32 0.2548296, %v1936_v31  ;;  %v1809_v47 = vmul.f32 %v7911_v58, %v1745_v46  ;;  %v6919_v1 = vpop.f32.mrb[38].mxu0 }
 0x37c   : > { %v1321_v4 = vmul.f32 0.3275911, %v1257_v52  ;;  %vm2512_vm0 = vcmp.ge.f32.partialorder %v7913_v41, 0.0  ;;  %v2788_v7 = vadd.f32 1.0, %v2660_v48  ;;  %v6917_v19 = vmul.f32 0.5, %v6808_v49  ;;  %v3078_v18 = vpop.f32.mrb[39].mxu0 }
 0x37d   : > { %v1767_v62 = vadd.f32 1.4214138, %v1703_v17  ;;  %v2216_v42 = vsub.f32 0.0, %v2152_v12  ;;  %4077 = vpow2.f32 %v2331_v3  ;;  %v2064_v54 = vmul.f32 %v7908_v0, %v2000_v63  ;;  %v7914_v49 = vld [vmem:[#allocation80_spill] sm:$0xff]  ;;  %v7915_v3 = vld [vmem:[#allocation61_spill] sm:$0xff] }
 0x37e   : > { %v1873_v34 = vadd.f32 -0.28449672, %v1809_v47  ;;  %v1385_v43 = vadd.f32 1.0, %v1321_v4  ;;  %v2661_v21 = vsel %vm2533_vm15, %v2469_v50, %v2597_v20  ;;  %v2470_v15 = vsub.f32 1.0, %v6907_v53  ;;  %v7916_v63 = vld [vmem:[#allocation96_spill] sm:$0xff] }
 0x37f   : > { %v1831_v48 = vmul.f32 %v6882_v32, %v1767_v62  ;;  %v6927_v22 = vmul.f32 0.5, %v6854_v27  ;;  %v2384_v12 = vmul.f32 %v7914_v49, %v2064_v54  ;;  %v1554_v0 = vmul.f32 1.0614054, %v7915_v3 }
 0x380   : > { %v1937_v60 = vmul.f32 %v7911_v58, %v1873_v34  ;;  %4079 = vrcp.f32 %v1385_v43  ;;  %v6933_v31 = vmul.f32 %v2788_v7, %v6791_v2  ;;  %v2333_v14 = vmul.f32 1.442695, %v2216_v42 }
 0x381   : > { %v1895_v46 = vadd.f32 -0.28449672, %v1831_v48  ;;  %v6937_v50 = vadd.f32 %v6550_v13, %v5177_v39  ;;  %v2789_v27 = vadd.f32 1.0, %v2661_v21  ;;  %vm2534_vm1 = vcmp.ge.f32.partialorder %v6770_v28, 0.0 }
 0x382   : > { %v6939_v11 = vpop.eup %4075  ;;  %v2448_v20 = vsub.f32 1.0, %v2384_v12  ;;  %v2001_v53 = vadd.f32 0.2548296, %v1937_v60  ;;  %v1618_v17 = vadd.f32 -1.4531521, %v1554_v0  ;;  %vm2513_vm2 = vcmp.ge.f32.partialorder %v7916_v63, 0.0 }
 0x383   : > { %v1959_v47 = vmul.f32 %v6882_v32, %v1895_v46  ;;  %v1576_v2 = vmul.f32 1.0614054, %v6939_v11  ;;  %v2153_v4 = vmul.f32 %v1257_v52, %v1257_v52  ;;  %v6946_v44 = vmul.f32 0.70710677, %v6937_v50  ;;  %v7917_v52 = vld [vmem:[#allocation77_spill] sm:$0xff]  ;;  %v7919_v63 = vld [vmem:[#allocation106_spill] sm:$0xff] }
 0x384   : > { %v2598_v13 = vsub.f32 0.0, %v2470_v15  ;;  %v2576_v7 = vsub.f32 0.0, %v2448_v20  ;;  %v2065_v62 = vmul.f32 %v7911_v58, %v2001_v53  ;;  %v1682_v42 = vmul.f32 %v7915_v3, %v1618_v17  ;;  %v6960_v58 = vpop.f32.mrb[40].mxu0 }
 0x385   : > { %v2023_v54 = vadd.f32 0.2548296, %v1959_v47  ;;  %v1640_v34 = vadd.f32 -1.4531521, %v1576_v2  ;;  %v738_v43 = vadd.f32 %v6482_v40, %v7764_v56  ;;  %v1258_v18 = vand.u32 2147483647, %v6946_v44 }
 0x386   : > { %v2640_v21 = vsel %vm2512_vm0, %v2448_v20, %v2576_v7  ;;  %v2385_v48 = vmul.f32 %v7917_v52, %v2065_v62  ;;  %v1746_v49 = vadd.f32 1.4214138, %v1682_v42  ;;  %v6958_v12 = vadd.f32 %v6561_v10, %v5173_v36  ;;  %v3083_v53 = vpop.f32.mrb[41].mxu0  ;;  %v7918_v7 = vld [vmem:[#allocation76_spill] sm:$0xff] }
 0x387   : > { %v2087_v60 = vmul.f32 %v6882_v32, %v2023_v54  ;;  %v2768_v0 = vadd.f32 1.0, %v2640_v21  ;;  %v1704_v46 = vmul.f32 %v6939_v11, %v1640_v34  ;;  %v1322_v40 = vmul.f32 0.3275911, %v1258_v18  ;;  %v4078_v17 = vpop.eup %4077 }
 0x388   : > { %4081 = vpow2.f32 %v2333_v14  ;;  %v2449_v41 = vsub.f32 1.0, %v2385_v48  ;;  %v2217_v20 = vsub.f32 0.0, %v2153_v4  ;;  %v1810_v47 = vmul.f32 %v7915_v3, %v1746_v49 }
 0x389   : > { %v2407_v2 = vmul.f32 %v4078_v17, %v2087_v60  ;;  %v2832_v62 = vmul.f32 %v2768_v0, %v7918_v7  ;;  %v1768_v10 = vadd.f32 1.4214138, %v1704_v46  ;;  %v1386_v42 = vadd.f32 1.0, %v1322_v40  ;;  %v7920_v17 = vld [vmem:[#allocation32_spill] sm:$0xff] }
 0x38a   : > { %v6966_v52 = vpop.eup %4079  ;;  %v2577_v56 = vsub.f32 0.0, %v2449_v41  ;;  %v1874_v32 = vadd.f32 -0.28449672, %v1810_v47  ;;  %v2154_v54 = vmul.f32 %v1258_v18, %v1258_v18  ;;  %v6969_v34 = vmul.f32 0.70710677, %v6958_v12 }
 0x38b   : > { %v2662_v14 = vsel %vm2534_vm1, %v2470_v15, %v2598_v13  ;;  %v2896_v4 = vmul.f32 %v2832_v62, %v6872_v30  ;;  %v1832_v21 = vmul.f32 %v6939_v11, %v1768_v10  ;;  %v1577_v48 = vmul.f32 1.0614054, %v6966_v52 }
 0x38c   : > { %vm2535_vm3 = vcmp.ge.f32.partialorder %v6818_v6, 0.0  ;;  %v2641_v49 = vsel %vm2513_vm2, %v2449_v41, %v2577_v56  ;;  %v2335_v60 = vmul.f32 1.442695, %v2217_v20  ;;  %v1938_v18 = vmul.f32 %v7915_v3, %v1874_v32 }
 0x38d   : > { %4083 = vrcp.f32 %v1386_v42  ;;  %v2471_v0 = vsub.f32 1.0, %v2407_v2  ;;  %v1896_v46 = vadd.f32 -0.28449672, %v1832_v21  ;;  %v2769_v40 = vadd.f32 1.0, %v2641_v49  ;;  %3129 = vmatprep.mubr.f32.mxu0 %v2896_v4 }
 0x38e   : > { %v1641_v28 = vadd.f32 -1.4531521, %v1577_v48  ;;  %v6981_v30 = vmul.f32 %v2789_v27, %v6822_v5  ;;  %v2002_v15 = vadd.f32 0.2548296, %v1938_v18  ;;  %v2218_v13 = vsub.f32 0.0, %v2154_v54  ;;  %3130 = vmatmul.mubr.f32.gmra.mrb[60].mxu0 %v6912_v24  ;;  %v7921_v54 = vld [vmem:[#allocation72_spill] sm:$0xff] }
 0x38f   : > { %v1259_v53 = vand.u32 2147483647, %v6969_v34  ;;  %vm2514_vm4 = vcmp.ge.f32.partialorder %v7919_v63, 0.0  ;;  %v1960_v56 = vmul.f32 %v6939_v11, %v1896_v46  ;;  %v2833_v41 = vmul.f32 %v2769_v40, %v7920_v17  ;;  %v7923_v63 = vld [vmem:[#allocation107_spill] sm:$0xff] }
 0x390   : > { %v1705_v20 = vmul.f32 %v6966_v52, %v1641_v28  ;;  %v6990_v47 = vmul.f32 0.5, %v6879_v59  ;;  %v2790_v2 = vadd.f32 1.0, %v2662_v14  ;;  %v740_v5 = vadd.f32 %v6496_v29, %v7778_v61 }
 0x391   : > { %v2066_v27 = vmul.f32 %v7915_v3, %v2002_v15  ;;  %v1323_v24 = vmul.f32 0.3275911, %v1259_v53  ;;  %v2599_v7 = vsub.f32 0.0, %v2471_v0  ;;  %v2024_v62 = vadd.f32 0.2548296, %v1960_v56 }
 0x392   : > { %v6995_v10 = vmul.f32 %v2833_v41, %v738_v43  ;;  %v1769_v42 = vadd.f32 1.4214138, %v1705_v20  ;;  %v4082_v32 = vpop.eup %4081  ;;  %4085 = vpow2.f32 %v2335_v60  ;;  %v2337_v21 = vmul.f32 1.442695, %v2218_v13 }
 0x393   : > { %v2386_v4 = vmul.f32 %v7921_v54, %v2066_v27  ;;  %v1387_v48 = vadd.f32 1.0, %v1323_v24  ;;  %v2088_v59 = vmul.f32 %v6939_v11, %v2024_v62  ;;  %v1119_v29 = vadd.f32 %v6569_v9, %v5177_v39  ;;  %v7014_v9 = vpop.f32.mrb[42].mxu0 }
 0x394   : > { %v1833_v14 = vmul.f32 %v6966_v52, %v1769_v42  ;;  %v7004_v3 = vadd.f32 %v6584_v8, %v5173_v36  ;;  %v7007_v43 = vmul.f32 %v2790_v2, %v6850_v57  ;;  %v2155_v60 = vmul.f32 %v1259_v53, %v1259_v53  ;;  %v3088_v6 = vpop.f32.mrb[43].mxu0 }
 0x395   : > { %v2450_v49 = vsub.f32 1.0, %v2386_v4  ;;  %4087 = vrcp.f32 %v1387_v48  ;;  %v2663_v18 = vsel %vm2535_vm3, %v2471_v0, %v2599_v7  ;;  %v2408_v46 = vmul.f32 %v4082_v32, %v2088_v59  ;;  %v7922_v7 = vld [vmem:[#allocation83_spill] sm:$0xff] }
 0x396   : > { %vm2536_vm5 = vcmp.ge.f32.partialorder %v6862_v33, 0.0  ;;  %v1897_v11 = vadd.f32 -0.28449672, %v1833_v14  ;;  %v7012_v40 = vmul.f32 0.70710677, %v1119_v29  ;;  %4089 = vpow2.f32 %v2337_v21 }
 0x397   : > { %v7016_v28 = vpop.eup %4083  ;;  %v2578_v8 = vsub.f32 0.0, %v2450_v49  ;;  %v7019_v57 = vmul.f32 0.5, %v6937_v50  ;;  %v7022_v15 = vmul.f32 0.70710677, %v7004_v3  ;;  %v2472_v0 = vsub.f32 1.0, %v2408_v46 }
 0x398   : > { %v1961_v13 = vmul.f32 %v6966_v52, %v1897_v11  ;;  %v1578_v53 = vmul.f32 1.0614054, %v7016_v28  ;;  %v1260_v56 = vand.u32 2147483647, %v7012_v40  ;;  %v2791_v17 = vadd.f32 1.0, %v2663_v18 }
 0x399   : > { %v2642_v41 = vsel %vm2514_vm4, %v2450_v49, %v2578_v8  ;;  %v2219_v20 = vsub.f32 0.0, %v2155_v60  ;;  %v1261_v2 = vand.u32 2147483647, %v7022_v15  ;;  %v7032_v62 = vadd.f32 %v7922_v7, %v5177_v39 }
 0x39a   : > { %v2025_v50 = vadd.f32 0.2548296, %v1961_v13  ;;  %v2770_v27 = vadd.f32 1.0, %v2642_v41  ;;  %v1642_v24 = vadd.f32 -1.4531521, %v1578_v53  ;;  %v2600_v42 = vsub.f32 0.0, %v2472_v0 }
 0x39b   : > { %vm2537_vm6 = vcmp.ge.f32.partialorder %v6888_v45, 0.0  ;;  %v1324_v32 = vmul.f32 0.3275911, %v1260_v56  ;;  %v2156_v54 = vmul.f32 %v1260_v56, %v1260_v56  ;;  %v1325_v4 = vmul.f32 0.3275911, %v1261_v2  ;;  %v7929_v45 = vld [vmem:[#allocation122_spill] sm:$0xff] }
 0x39c   : > { %v2089_v21 = vmul.f32 %v6966_v52, %v2025_v50  ;;  %v2834_v48 = vmul.f32 %v2770_v27, %v7923_v63  ;;  %v1706_v59 = vmul.f32 %v7016_v28, %v1642_v24  ;;  %v7039_v14 = vmul.f32 0.5, %v6958_v12  ;;  %v4086_v49 = vpop.eup %4085 }
 0x39d   : > { %v2339_v60 = vmul.f32 1.442695, %v2219_v20  ;;  %v1388_v18 = vadd.f32 1.0, %v1324_v32  ;;  %v1389_v46 = vadd.f32 1.0, %v1325_v4  ;;  %v2157_v11 = vmul.f32 %v1261_v2, %v1261_v2  ;;  %v7924_v4 = vld [vmem:[#allocation34_spill] sm:$0xff] }
 0x39e   : > { %v7042_v8 = vmul.f32 %v2791_v17, %v6917_v19  ;;  %v2409_v6 = vmul.f32 %v4086_v49, %v2089_v21  ;;  %v2898_v13 = vmul.f32 %v2834_v48, %v740_v5  ;;  %v1770_v53 = vadd.f32 1.4214138, %v1706_v59  ;;  %v7925_v21 = vld [vmem:[#allocation116_spill] sm:$0xff]  ;;  %v7926_v59 = vld [vmem:[#allocation33_spill] sm:$0xff] }
 0x39f   : > { %v7044_v56 = vpop.eup %4087  ;;  %v2664_v52 = vsel %vm2536_vm5, %v2472_v0, %v2600_v42  ;;  %4091 = vrcp.f32 %v1388_v18  ;;  %v2220_v41 = vsub.f32 0.0, %v2156_v54  ;;  %v7049_v12 = vmul.f32 0.70710677, %v7032_v62  ;;  %v7927_v49 = vld [vmem:[#allocation117_spill] sm:$0xff] }
 0x3a0   : > { %v2473_v20 = vsub.f32 1.0, %v2409_v6  ;;  %v1834_v50 = vmul.f32 %v7016_v28, %v1770_v53  ;;  %v1579_v2 = vmul.f32 1.0614054, %v7044_v56  ;;  %3134 = vmatprep.mubr.f32.mxu0 %v2898_v13  ;;  %4093 = vrcp.f32 %v1389_v46  ;;  %v4090_v19 = vpop.eup %4089 }
 0x3a1   : > { %4095 = vpow2.f32 %v2339_v60  ;;  %v7053_v5 = vmul.f32 0.5, %v1119_v29  ;;  %3135 = vmatmul.mubr.f32.gmra.mrb[62].mxu0 %v6995_v10  ;;  %v2221_v33 = vsub.f32 0.0, %v2157_v11  ;;  %v1262_v0 = vand.u32 2147483647, %v7049_v12  ;;  %v7928_v11 = vld [vmem:[#allocation95_spill] sm:$0xff] }
 0x3a2   : > { %v2601_v17 = vsub.f32 0.0, %v2473_v20  ;;  %v1898_v27 = vadd.f32 -0.28449672, %v1834_v50  ;;  %v1643_v24 = vadd.f32 -1.4531521, %v1579_v2  ;;  %v7058_v7 = vmul.f32 0.5, %v7004_v3 }
 0x3a3   : > { %v2792_v42 = vadd.f32 1.0, %v2664_v52  ;;  %v2341_v32 = vmul.f32 1.442695, %v2220_v41  ;;  %v1326_v54 = vmul.f32 0.3275911, %v1262_v0  ;;  %v2900_v63 = vmul.f32 %v7925_v21, %v7924_v4  ;;  %v7930_v41 = vld [vmem:[#allocation36_spill] sm:$0xff] }
 0x3a4   : > { %v2665_v29 = vsel %vm2537_vm6, %v2473_v20, %v2601_v17  ;;  %v1962_v10 = vmul.f32 %v7016_v28, %v1898_v27  ;;  %v1707_v48 = vmul.f32 %v7044_v56, %v1643_v24  ;;  %v2899_v60 = vmul.f32 %v7927_v49, %v7926_v59  ;;  %v7931_v20 = vld [vmem:[#allocation82_spill] sm:$0xff] }
 0x3a5   : > { %v2343_v18 = vmul.f32 1.442695, %v2221_v33  ;;  %v1390_v46 = vadd.f32 1.0, %v1326_v54  ;;  %v2158_v3 = vmul.f32 %v1262_v0, %v1262_v0  ;;  %3139 = vmatprep.mubr.f32.mxu0 %v2900_v63  ;;  %v1129_v6 = vadd.f32 %v7928_v11, %v5173_v36 }
 0x3a6   : > { %v2026_v13 = vadd.f32 0.2548296, %v1962_v10  ;;  %v1771_v53 = vadd.f32 1.4214138, %v1707_v48  ;;  %3140 = vmatmul.mubr.f32.gmra.mrb[64].mxu0 %v2899_v60  ;;  %v1131_v52 = vadd.f32 %v7929_v45, %v5177_v39  ;;  %v2902_v50 = vmul.f32 %v7931_v20, %v7930_v41  ;;  %v7099_v45 = vpop.f32.mrb[44].mxu0 }
 0x3a7   : > { %v7075_v2 = vmul.f32 %v2792_v42, %v6927_v22  ;;  %v2793_v17 = vadd.f32 1.0, %v2665_v29  ;;  %vm2538_vm7 = vcmp.ge.f32.partialorder %v6946_v44, 0.0  ;;  %4097 = vrcp.f32 %v1390_v46  ;;  %v7933_v44 = vld [vmem:[#allocation74_spill] sm:$0xff] }
 0x3a8   : > { %v7078_v33 = vmul.f32 0.70710677, %v1129_v6  ;;  %v2090_v0 = vmul.f32 %v7016_v28, %v2026_v13  ;;  %v1835_v27 = vmul.f32 %v7044_v56, %v1771_v53  ;;  %4099 = vpow2.f32 %v2341_v32  ;;  %3144 = vmatprep.mubr.f32.mxu0 %v2902_v50 }
 0x3a9   : > { %v7082_v24 = vmul.f32 0.70710677, %v1131_v52  ;;  %v7084_v54 = vpop.eup %4091  ;;  %4101 = vpow2.f32 %v2343_v18  ;;  %v2222_v4 = vsub.f32 0.0, %v2158_v3  ;;  %v7087_v22 = vmul.f32 0.5, %v7032_v62 }
 0x3aa   : > { %v1263_v42 = vand.u32 2147483647, %v7078_v33  ;;  %v7090_v21 = vpop.eup %4093  ;;  %v2410_v63 = vmul.f32 %v4090_v19, %v2090_v0  ;;  %v1899_v29 = vadd.f32 -0.28449672, %v1835_v27  ;;  %v1580_v28 = vmul.f32 1.0614054, %v7084_v54 }
 0x3ab   : > { %v1264_v32 = vand.u32 2147483647, %v7082_v24  ;;  %v4096_v10 = vpop.eup %4095  ;;  %v7095_v48 = vmul.f32 %v2793_v17, %v6990_v47  ;;  %v1581_v59 = vmul.f32 1.0614054, %v7090_v21  ;;  %v2345_v19 = vmul.f32 1.442695, %v2222_v4 }
 0x3ac   : > { %v1327_v49 = vmul.f32 0.3275911, %v1263_v42  ;;  %v2159_v60 = vmul.f32 %v1263_v42, %v1263_v42  ;;  %v2474_v62 = vsub.f32 1.0, %v2410_v63  ;;  %v1963_v18 = vmul.f32 %v7044_v56, %v1899_v29  ;;  %v3093_v17 = vpop.f32.mrb[45].mxu0 }
 0x3ad   : > { %v1644_v46 = vadd.f32 -1.4531521, %v1580_v28  ;;  %v1328_v3 = vmul.f32 0.3275911, %v1264_v32  ;;  %v1645_v11 = vadd.f32 -1.4531521, %v1581_v59  ;;  %v2160_v53 = vmul.f32 %v1264_v32, %v1264_v32 }
 0x3ae   : > { %v1391_v13 = vadd.f32 1.0, %v1327_v49  ;;  %v2602_v41 = vsub.f32 0.0, %v2474_v62  ;;  %v2027_v20 = vadd.f32 0.2548296, %v1963_v18  ;;  %vm2539_vm8 = vcmp.ge.f32.partialorder %v6969_v34, 0.0 }
 0x3af   : > { %v1708_v47 = vmul.f32 %v7084_v54, %v1644_v46  ;;  %v1392_v50 = vadd.f32 1.0, %v1328_v3  ;;  %v1709_v0 = vmul.f32 %v7090_v21, %v1645_v11  ;;  %v2223_v27 = vsub.f32 0.0, %v2159_v60  ;;  %v7932_v3 = vld [vmem:[#allocation35_spill] sm:$0xff] }
 0x3b0   : > { %4103 = vrcp.f32 %v1391_v13  ;;  %v7104_v42 = vmul.f32 0.5, %v1129_v6  ;;  %v2666_v4 = vsel %vm2538_vm7, %v2474_v62, %v2602_v41  ;;  %v2091_v63 = vmul.f32 %v7044_v56, %v2027_v20  ;;  %v7934_v20 = vld [vmem:[#allocation126_spill] sm:$0xff] }
 0x3b1   : > { %v1772_v29 = vadd.f32 1.4214138, %v1708_v47  ;;  %4105 = vrcp.f32 %v1392_v50  ;;  %v7109_v28 = vpop.eup %4097  ;;  %v1773_v32 = vadd.f32 1.4214138, %v1709_v0  ;;  %v2224_v59 = vsub.f32 0.0, %v2160_v53 }
 0x3b2   : > { %4107 = vpow2.f32 %v2345_v19  ;;  %v7111_v49 = vmul.f32 0.5, %v1131_v52  ;;  %v4100_v18 = vpop.eup %4099  ;;  %v2411_v46 = vmul.f32 %v4096_v10, %v2091_v63  ;;  %v1582_v6 = vmul.f32 1.0614054, %v7109_v28  ;;  %v7936_v10 = vld [vmem:[#allocation87_spill] sm:$0xff] }
 0x3b3   : > { %v1836_v60 = vmul.f32 %v7084_v54, %v1772_v29  ;;  %v2901_v62 = vmul.f32 %v7933_v44, %v7932_v3  ;;  %v4102_v11 = vpop.eup %4101  ;;  %v2794_v56 = vadd.f32 1.0, %v2666_v4  ;;  %v1837_v13 = vmul.f32 %v7090_v21, %v1773_v32  ;;  %v7938_v4 = vld [vmem:[#allocation38_spill] sm:$0xff]  ;;  %v7939_v29 = vld [vmem:[#allocation121_spill] sm:$0xff] }
 0x3b4   : > { %v2347_v41 = vmul.f32 1.442695, %v2223_v27  ;;  %v7120_v19 = vadd.f32 %v7934_v20, %v5173_v36  ;;  %v2475_v52 = vsub.f32 1.0, %v2411_v46  ;;  %v1646_v47 = vadd.f32 -1.4531521, %v1582_v6 }
 0x3b5   : > { %v1900_v53 = vadd.f32 -0.28449672, %v1836_v60  ;;  %3145 = vmatmul.mubr.f32.gmra.mrb[66].mxu0 %v2901_v62  ;;  %v7124_v50 = vadd.f32 %v7936_v10, %v5177_v39  ;;  %v1901_v17 = vadd.f32 -0.28449672, %v1837_v13  ;;  %v2349_v0 = vmul.f32 1.442695, %v2224_v59 }
 0x3b6   : > { %7935 = vst [vmem:[#allocation128_spill] sm:$0xff] %v7120_v19  ;;  %v7127_v63 = vmul.f32 0.70710677, %v7120_v19  ;;  %v2904_v27 = vmul.f32 %v7939_v29, %v7938_v4  ;;  %v2603_v32 = vsub.f32 0.0, %v2475_v52  ;;  %v1710_v46 = vmul.f32 %v7109_v28, %v1646_v47 }
 0x3b7   : > { %7937 = vst [vmem:[#allocation115_spill] sm:$0xff] %v7124_v50  ;;  %v1964_v36 = vmul.f32 %v7084_v54, %v1900_v53  ;;  %v7134_v60 = vmul.f32 0.70710677, %v7124_v50  ;;  %v7137_v6 = vmul.f32 %v2794_v56, %v7019_v57  ;;  %v1965_v39 = vmul.f32 %v7090_v21, %v1901_v17 }
 0x3b8   : > { %4109 = vpow2.f32 %v2347_v41  ;;  %v1265_v59 = vand.u32 2147483647, %v7127_v63  ;;  %3149 = vmatprep.mubr.f32.mxu0 %v2904_v27  ;;  %v2667_v3 = vsel %vm2539_vm8, %v2475_v52, %v2603_v32  ;;  %v1774_v62 = vadd.f32 1.4214138, %v1710_v46 }
 0x3b9   : > { %7940 = vst [vmem:[#allocation89_spill] sm:$0xff] %v7134_v60  ;;  %v2028_v44 = vadd.f32 0.2548296, %v1964_v36  ;;  %v1266_v13 = vand.u32 2147483647, %v7134_v60  ;;  %vm2540_vm9 = vcmp.ge.f32.partialorder %v7012_v40, 0.0  ;;  %4111 = vpow2.f32 %v2349_v0 }
 0x3ba   : > { %v7144_v20 = vpop.eup %4103  ;;  %v2029_v53 = vadd.f32 0.2548296, %v1965_v39  ;;  %v1329_v57 = vmul.f32 0.3275911, %v1265_v59  ;;  %v2161_v56 = vmul.f32 %v1265_v59, %v1265_v59  ;;  %vm2541_vm10 = vcmp.ge.f32.partialorder %v7022_v15, 0.0  ;;  %v7946_v15 = vld [vmem:[#allocation119_spill] sm:$0xff] }
 0x3bb   : > { %v7147_v47 = vpop.eup %4105  ;;  %v2092_v41 = vmul.f32 %v7084_v54, %v2028_v44  ;;  %v1838_v34 = vmul.f32 %v7109_v28, %v1774_v62  ;;  %v1583_v52 = vmul.f32 1.0614054, %v7144_v20  ;;  %v1330_v10 = vmul.f32 0.3275911, %v1266_v13 }
 0x3bc   : > { %v4108_v17 = vpop.eup %4107  ;;  %v2795_v4 = vadd.f32 1.0, %v2667_v3  ;;  %v2093_v29 = vmul.f32 %v7090_v21, %v2029_v53  ;;  %v1584_v27 = vmul.f32 1.0614054, %v7147_v47  ;;  %v1393_v0 = vadd.f32 1.0, %v1329_v57 }
 0x3bd   : > { %v2412_v32 = vmul.f32 %v4100_v18, %v2092_v41  ;;  %v1902_v36 = vadd.f32 -0.28449672, %v1838_v34  ;;  %v1647_v46 = vadd.f32 -1.4531521, %v1583_v52  ;;  %v2225_v39 = vsub.f32 0.0, %v2161_v56 }
 0x3be   : > { %v2413_v59 = vmul.f32 %v4102_v11, %v2093_v29  ;;  %v1648_v54 = vadd.f32 -1.4531521, %v1584_v27  ;;  %4113 = vrcp.f32 %v1393_v0  ;;  %v1394_v44 = vadd.f32 1.0, %v1330_v10  ;;  %v7941_v0 = vld [vmem:[#allocation37_spill] sm:$0xff] }
 0x3bf   : > { %v2476_v50 = vsub.f32 1.0, %v2412_v32  ;;  %v1966_v62 = vmul.f32 %v7109_v28, %v1902_v36  ;;  %v1711_v60 = vmul.f32 %v7144_v20, %v1647_v46  ;;  %v2351_v19 = vmul.f32 1.442695, %v2225_v39 }
 0x3c0   : > { %v2477_v3 = vsub.f32 1.0, %v2413_v59  ;;  %v1712_v21 = vmul.f32 %v7147_v47, %v1648_v54  ;;  %4115 = vrcp.f32 %v1394_v44  ;;  %v2162_v53 = vmul.f32 %v1266_v13, %v1266_v13  ;;  %v7944_v54 = vld [vmem:[#allocation85_spill] sm:$0xff] }
 0x3c1   : > { %v7159_v18 = vmul.f32 %v2795_v4, %v7039_v14  ;;  %v2604_v57 = vsub.f32 0.0, %v2476_v50  ;;  %v2030_v56 = vadd.f32 0.2548296, %v1966_v62  ;;  %v1775_v11 = vadd.f32 1.4214138, %v1711_v60  ;;  %v7942_v14 = vld [vmem:[#allocation90_spill] sm:$0xff] }
 0x3c2   : > { %v4110_v41 = vpop.eup %4109  ;;  %v2605_v34 = vsub.f32 0.0, %v2477_v3  ;;  %vm2542_vm11 = vcmp.ge.f32.partialorder %v7049_v12, 0.0  ;;  %v1776_v52 = vadd.f32 1.4214138, %v1712_v21  ;;  %4117 = vpow2.f32 %v2351_v19  ;;  %v7171_v19 = vpop.f32.mrb[46].mxu0 }
 0x3c3   : > { %v2226_v10 = vsub.f32 0.0, %v2162_v53  ;;  %v2668_v29 = vsel %vm2540_vm9, %v2476_v50, %v2604_v57  ;;  %v2094_v27 = vmul.f32 %v7109_v28, %v2030_v56  ;;  %v1839_v13 = vmul.f32 %v7144_v20, %v1775_v11  ;;  %v4112_v32 = vpop.eup %4111  ;;  %v7943_v28 = vld [vmem:[#allocation40_spill] sm:$0xff]  ;;  %v3098_v62 = vpop.f32.mrb[47].mxu0  ;;  %v7945_v57 = vld [vmem:[#allocation39_spill] sm:$0xff] }
 0x3c4   : > { %v2903_v4 = vmul.f32 %v7942_v14, %v7941_v0  ;;  %v2796_v36 = vadd.f32 1.0, %v2668_v29  ;;  %v2669_v60 = vsel %vm2541_vm10, %v2477_v3, %v2605_v34  ;;  %v1840_v46 = vmul.f32 %v7147_v47, %v1776_v52  ;;  %v7948_v52 = vld [vmem:[#allocation97_spill] sm:$0xff]  ;;  %v7951_v14 = vld [vmem:[#allocation44_spill] sm:$0xff] }
 0x3c5   : > { %v2353_v39 = vmul.f32 1.442695, %v2226_v10  ;;  %v2797_v59 = vadd.f32 1.0, %v2669_v60  ;;  %v2414_v40 = vmul.f32 %v4108_v17, %v2094_v27  ;;  %v1903_v50 = vadd.f32 -0.28449672, %v1839_v13  ;;  %v7947_v17 = vld [vmem:[#allocation42_spill] sm:$0xff] }
 0x3c6   : > { %3150 = vmatmul.mubr.f32.gmra.mrb[68].mxu0 %v2903_v4  ;;  %v2906_v44 = vmul.f32 %v7944_v54, %v7943_v28  ;;  %v2860_v21 = vmul.f32 %v2796_v36, %v7053_v5  ;;  %v1904_v53 = vadd.f32 -0.28449672, %v1840_v46  ;;  %v2905_v3 = vmul.f32 %v7946_v15, %v7945_v57  ;;  %v7949_v5 = vld [vmem:[#allocation41_spill] sm:$0xff]  ;;  %v7950_v13 = vld [vmem:[#allocation124_spill] sm:$0xff]  ;;  %v7952_v36 = vld [vmem:[#allocation43_spill] sm:$0xff] }
 0x3c7   : > { %4119 = vpow2.f32 %v2353_v39  ;;  %v7179_v56 = vmul.f32 %v2797_v59, %v7058_v7  ;;  %v2478_v11 = vsub.f32 1.0, %v2414_v40  ;;  %v1967_v34 = vmul.f32 %v7144_v20, %v1903_v50  ;;  %v7953_v7 = vld [vmem:[#allocation101_spill] sm:$0xff]  ;;  %v7954_v40 = vld [vmem:[#allocation46_spill] sm:$0xff]  ;;  %v7956_v62 = vld [vmem:[#allocation48_spill] sm:$0xff] }
 0x3c8   : > { %3154 = vmatprep.mubr.f32.mxu0 %v2906_v44  ;;  %v2908_v10 = vmul.f32 %v7948_v52, %v7947_v17  ;;  %v7184_v29 = vpop.eup %4113  ;;  %v1968_v27 = vmul.f32 %v7147_v47, %v1904_v53  ;;  %v2907_v0 = vmul.f32 %v7950_v13, %v7949_v5  ;;  %v2910_v4 = vmul.f32 %v6717_v25, %v7951_v14  ;;  %v7955_v44 = vld [vmem:[#allocation45_spill] sm:$0xff]  ;;  %v7957_v57 = vld [vmem:[#allocation47_spill] sm:$0xff]  ;;  %v7960_v13 = vld [vmem:[#allocation52_spill] sm:$0xff] }
 0x3c9   : > { %v2909_v60 = vmul.f32 %v7953_v7, %v7952_v36  ;;  %v2606_v46 = vsub.f32 0.0, %v2478_v11  ;;  %v2031_v39 = vadd.f32 0.2548296, %v1967_v34  ;;  %v1585_v59 = vmul.f32 1.0614054, %v7184_v29  ;;  %v7961_v7 = vld [vmem:[#allocation51_spill] sm:$0xff] }
 0x3ca   : > { %3155 = vmatmul.mubr.f32.gmra.mrb[70].mxu0 %v2905_v3  ;;  %v2912_v50 = vmul.f32 %v6759_v35, %v7954_v40  ;;  %v7196_v28 = vpop.eup %4115  ;;  %vm2543_vm12 = vcmp.ge.f32.partialorder %v7078_v33, 0.0  ;;  %v2032_v54 = vadd.f32 0.2548296, %v1968_v27  ;;  %v2911_v25 = vmul.f32 %v6746_v26, %v7955_v44  ;;  %v2931_v40 = vld [vmem:[#allocation2] sm:$0xff]  ;;  %v7966_v44 = vld [vmem:[#allocation60_spill] sm:$0xff] }
 0x3cb   : > { %3159 = vmatprep.mubr.f32.mxu0 %v2908_v10  ;;  %v7203_v53 = vmul.f32 %v6841_v23, %v7956_v62  ;;  %v7207_v15 = vmul.f32 %v6830_v16, %v7957_v57  ;;  %v2670_v35 = vsel %vm2542_vm11, %v2478_v11, %v2606_v46  ;;  %v2095_v3 = vmul.f32 %v7144_v20, %v2031_v39  ;;  %v7958_v10 = vld [vmem:[#allocation50_spill] sm:$0xff]  ;;  %v7959_v16 = vld [vmem:[#allocation49_spill] sm:$0xff]  ;;  %v7962_v46 = vld [vmem:[#allocation55_spill] sm:$0xff] }
 0x3cc   : > { %vm2544_vm13 = vcmp.ge.f32.partialorder %v7082_v24, 0.0  ;;  %v1649_v34 = vadd.f32 -1.4531521, %v1585_v59  ;;  %v1586_v17 = vmul.f32 1.0614054, %v7196_v28  ;;  %v7214_v52 = vpop.eup %4117  ;;  %v2798_v26 = vadd.f32 1.0, %v2670_v35 }
 0x3cd   : > { %v2096_v23 = vmul.f32 %v7147_v47, %v2032_v54  ;;  %v7219_v27 = vmul.f32 %v6933_v31, %v7958_v10  ;;  %v7223_v12 = vmul.f32 %v6905_v37, %v7959_v16  ;;  %v2415_v11 = vmul.f32 %v4110_v41, %v2095_v3  ;;  %v7963_v59 = vld [vmem:[#allocation53_spill] sm:$0xff]  ;;  %v7965_v54 = vld [vmem:[#allocation56_spill] sm:$0xff]  ;;  %v2932_v57 = vld [vmem:[#allocation2 + $0x8] sm:$0xff] }
 0x3ce   : > { %v1713_v20 = vmul.f32 %v7184_v29, %v1649_v34  ;;  %v1650_v5 = vadd.f32 -1.4531521, %v1586_v17  ;;  %3160 = vmatmul.mubr.f32.gmra.mrb[72].mxu0 %v2907_v0  ;;  %v7228_v14 = vmul.f32 %v7007_v43, %v7960_v13  ;;  %v2862_v36 = vmul.f32 %v2798_v26, %v7087_v22  ;;  %v7967_v34 = vld [vmem:[#allocation58_spill] sm:$0xff]  ;;  %v2933_v26 = vld [vmem:[#allocation2 + $0x10] sm:$0xff]  ;;  %v7968_v10 = vld [vmem:[#allocation63_spill] sm:$0xff] }
 0x3cf   : > { %v2416_v47 = vmul.f32 %v4112_v32, %v2096_v23  ;;  %3164 = vmatprep.mubr.f32.mxu0 %v2910_v4  ;;  %v7233_v31 = vmul.f32 %v6981_v30, %v7961_v7  ;;  %v7237_v37 = vmul.f32 %v7075_v2, %v7962_v46  ;;  %v2479_v41 = vsub.f32 1.0, %v2415_v11  ;;  %v7964_v4 = vld [vmem:[#allocation57_spill] sm:$0xff]  ;;  %v7969_v16 = vld [vmem:[#allocation62_spill] sm:$0xff] }
 0x3d0   : > { %v1777_v39 = vadd.f32 1.4214138, %v1713_v20  ;;  %v1714_v0 = vmul.f32 %v7196_v28, %v1650_v5  ;;  %v7242_v43 = vmul.f32 %v7042_v8, %v7963_v59  ;;  %v7248_v30 = vmul.f32 %v7137_v6, %v7964_v4  ;;  %v2934_v6 = vld [vmem:[#allocation2 + $0x18] sm:$0xff]  ;;  %v2935_v20 = vld [vmem:[#allocation2 + $0x20] sm:$0xff] }
 0x3d1   : > { %v7244_v22 = vpop.eup %4119  ;;  %v2480_v32 = vsub.f32 1.0, %v2416_v47  ;;  %v7252_v2 = vmul.f32 %v7095_v48, %v7965_v54  ;;  %v7255_v62 = vmul.f32 %v2860_v21, %v7966_v44  ;;  %v2607_v35 = vsub.f32 0.0, %v2479_v41  ;;  %v2936_v47 = vld [vmem:[#allocation2 + $0x28] sm:$0xff]  ;;  %v2938_v7 = vld [vmem:[#allocation2 + $0x38] sm:$0xff]  ;;  %v7970_v59 = vld [vmem:[#allocation26_spill] sm:$0xff] }
 0x3d2   : > { %v1841_v8 = vmul.f32 %v7184_v29, %v1777_v39  ;;  %v1778_v3 = vadd.f32 1.4214138, %v1714_v0  ;;  %3165 = vmatmul.mubr.f32.gmra.mrb[74].mxu0 %v2909_v60  ;;  %v7260_v17 = vmul.f32 %v7159_v18, %v7967_v34  ;;  %v7263_v48 = vmul.f32 %v2862_v36, %v7968_v10 }
 0x3d3   : > { %v2608_v23 = vsub.f32 0.0, %v2480_v32  ;;  %3169 = vmatprep.mubr.f32.mxu0 %v2912_v50  ;;  %v7267_v21 = vmul.f32 %v7179_v56, %v7969_v16  ;;  %v3220_v11 = vadd.f32 %v6894_v38, %v2931_v40  ;;  %v2671_v60 = vsel %vm2543_vm12, %v2479_v41, %v2607_v35  ;;  %v2937_v50 = vld [vmem:[#allocation2 + $0x30] sm:$0xff]  ;;  %v7976_v16 = vld [vmem:[#allocation115_spill] sm:$0xff] }
 0x3d4   : > { %v1905_v5 = vadd.f32 -0.28449672, %v1841_v8  ;;  %v1842_v18 = vmul.f32 %v7196_v28, %v1778_v3  ;;  %v3221_v13 = vadd.f32 %v6899_v51, %v2932_v57  ;;  %v2799_v36 = vadd.f32 1.0, %v2671_v60  ;;  %v3101_v44 = vpop.f32.mrb[48].mxu0 }
 0x3d5   : > { %v2672_v46 = vsel %vm2544_vm13, %v2480_v32, %v2608_v23  ;;  %3252 = vst [vmem:[#allocation2] sm:$0xff] %v3220_v11  ;;  %v3222_v56 = vadd.f32 %v6910_v55, %v2933_v26  ;;  %v3223_v38 = vadd.f32 %v6919_v1, %v2934_v6  ;;  %v3224_v51 = vadd.f32 %v6960_v58, %v2935_v20  ;;  %v3103_v3 = vpop.f32.mrb[49].mxu0  ;;  %v7973_v6 = vld [vmem:[#allocation89_spill] sm:$0xff]  ;;  %v7975_v23 = vld [vmem:[#allocation27_spill] sm:$0xff] }
 0x3d6   : > { %v2800_v39 = vadd.f32 1.0, %v2672_v46  ;;  %v1969_v33 = vmul.f32 %v7184_v29, %v1905_v5  ;;  %v1906_v41 = vadd.f32 -0.28449672, %v1842_v18  ;;  %3170 = vmatmul.mubr.f32.gmra.mrb[76].mxu0 %v2911_v25  ;;  %3253 = vst [vmem:[#allocation2 + $0x8] sm:$0xff] %v3221_v13  ;;  %v2863_v0 = vmul.f32 %v2799_v36, %v7104_v42  ;;  %v7971_v42 = vld [vmem:[#allocation68_spill] sm:$0xff]  ;;  %v2943_v36 = vld [vmem:[#allocation2 + $0x60] sm:$0xff] }
 0x3d7   : > { %3174 = vmatprep.mubr.f32.mxu0 %v7203_v53  ;;  %3254 = vst [vmem:[#allocation2 + $0x10] sm:$0xff] %v3222_v56  ;;  %3255 = vst [vmem:[#allocation2 + $0x18] sm:$0xff] %v3223_v38  ;;  %v3225_v24 = vadd.f32 %v7014_v9, %v2936_v47  ;;  %v3226_v55 = vadd.f32 %v7099_v45, %v2937_v50  ;;  %v3227_v1 = vadd.f32 %v7171_v19, %v2938_v7  ;;  %v2939_v19 = vld [vmem:[#allocation2 + $0x40] sm:$0xff]  ;;  %v2944_v38 = vld [vmem:[#allocation2 + $0x68] sm:$0xff] }
 0x3d8   : > { %v830_v40 = vadd.f32 %v7970_v59, %v7778_v61  ;;  %v2864_v25 = vmul.f32 %v2800_v39, %v7111_v49  ;;  %v2033_v32 = vadd.f32 0.2548296, %v1969_v33  ;;  %v1970_v58 = vmul.f32 %v7196_v28, %v1906_v41  ;;  %3256 = vst [vmem:[#allocation2 + $0x20] sm:$0xff] %v3224_v51  ;;  %v2945_v51 = vld [vmem:[#allocation2 + $0x70] sm:$0xff] }
 0x3d9   : > { %v2927_v4 = vmul.f32 %v2863_v0, %v7971_v42  ;;  %3257 = vst [vmem:[#allocation2 + $0x28] sm:$0xff] %v3225_v24  ;;  %3258 = vst [vmem:[#allocation2 + $0x30] sm:$0xff] %v3226_v55  ;;  %v3228_v8 = vadd.f32 %v3101_v44, %v2939_v19  ;;  %vm2545_vm14 = vcmp.ge.f32.partialorder %v7127_v63, 0.0  ;;  %vm2546_vm15 = vcmp.ge.f32.partialorder %v7973_v6, 0.0  ;;  %v7977_v63 = vld [vmem:[#allocation28_spill] sm:$0xff] }
 0x3da   : > { %3259 = vst [vmem:[#allocation2 + $0x38] sm:$0xff] %v3227_v1  ;;  %v2097_v9 = vmul.f32 %v7184_v29, %v2033_v32  ;;  %v2034_v53 = vadd.f32 0.2548296, %v1970_v58  ;;  %3175 = vmatmul.mubr.f32.gmra.mrb[78].mxu0 %v7207_v15  ;;  %v2928_v45 = vmul.f32 %v2864_v25, %v830_v40  ;;  %v2738_v11 = vmul.f32 0.5, %v7976_v16  ;;  %v2946_v1 = vld [vmem:[#allocation2 + $0x78] sm:$0xff]  ;;  %v2947_v32 = vld [vmem:[#allocation2 + $0x80] sm:$0xff] }
 0x3db   : > { %3179 = vmatprep.mubr.f32.mxu0 %v7219_v27  ;;  %3260 = vst [vmem:[#allocation2 + $0x40] sm:$0xff] %v3228_v8  ;;  %v2954_v16 = vld [vmem:[#allocation2 + $0xb8] sm:$0xff] }
 0x3dc   : > { %v2417_v49 = vmul.f32 %v7214_v52, %v2097_v9  ;;  %v2098_v54 = vmul.f32 %v7196_v28, %v2034_v53  ;;  %v7972_v28 = vld [vmem:[#allocation128_spill] sm:$0xff]  ;;  %v2948_v9 = vld [vmem:[#allocation2 + $0x88] sm:$0xff] }
 0x3dd   : > { %v2737_v52 = vmul.f32 0.5, %v7972_v28 }
 0x3de   : > { %v2481_v57 = vsub.f32 1.0, %v2417_v49  ;;  %v2418_v35 = vmul.f32 %v7244_v22, %v2098_v54  ;;  %3180 = vmatmul.mubr.f32.gmra.mrb[80].mxu0 %v7223_v12  ;;  %v7974_v22 = vld [vmem:[#allocation31_spill] sm:$0xff]  ;;  %v2949_v49 = vld [vmem:[#allocation2 + $0x90] sm:$0xff] }
 0x3df   : > { %3184 = vmatprep.mubr.f32.mxu0 %v7228_v14  ;;  %v834_v14 = vadd.f32 %v7975_v23, %v7974_v22  ;;  %v2953_v22 = vld [vmem:[#allocation2 + $0xb0] sm:$0xff] }
 0x3e0   : > { %v2609_v29 = vsub.f32 0.0, %v2481_v57  ;;  %v2482_v15 = vsub.f32 1.0, %v2418_v35  ;;  %v2950_v35 = vld [vmem:[#allocation2 + $0x98] sm:$0xff] }
 0x3e2   : > { %v2673_v27 = vsel %vm2545_vm14, %v2481_v57, %v2609_v29  ;;  %v2610_v34 = vsub.f32 0.0, %v2482_v15  ;;  %3185 = vmatmul.mubr.f32.gmra.mrb[82].mxu0 %v7233_v31  ;;  %v836_v31 = vadd.f32 %v7977_v63, %v7778_v61  ;;  %v2941_v61 = vld [vmem:[#allocation2 + $0x50] sm:$0xff] }
 0x3e3   : > { %v2801_v26 = vadd.f32 1.0, %v2673_v27  ;;  %3189 = vmatprep.mubr.f32.mxu0 %v7237_v37  ;;  %v2940_v37 = vld [vmem:[#allocation2 + $0x48] sm:$0xff] }
 0x3e4   : > { %v2674_v12 = vsel %vm2546_vm15, %v2482_v15, %v2610_v34  ;;  %v2951_v15 = vld [vmem:[#allocation2 + $0xa0] sm:$0xff] }
 0x3e5   : > { %v2865_v10 = vmul.f32 %v2801_v26, %v2737_v52  ;;  %v2802_v20 = vadd.f32 1.0, %v2674_v12  ;;  %v2952_v52 = vld [vmem:[#allocation2 + $0xa8] sm:$0xff] }
 0x3e6   : > { %3190 = vmatmul.mubr.f32.gmra.mrb[84].mxu0 %v7242_v43 }
 0x3e7   : > { %v2866_v60 = vmul.f32 %v2802_v20, %v2738_v11  ;;  %3194 = vmatprep.mubr.f32.mxu0 %v7248_v30  ;;  %v2929_v5 = vmul.f32 %v2865_v10, %v834_v14 }
 0x3e9   : > { %v2930_v18 = vmul.f32 %v2866_v60, %v836_v31  ;;  %v3106_v13 = vpop.f32.mrb[50].mxu0  ;;  %v2955_v31 = vld [vmem:[#allocation2 + $0xc0] sm:$0xff] }
 0x3ea   : > { %3195 = vmatmul.mubr.f32.gmra.mrb[86].mxu0 %v7252_v2  ;;  %v3229_v43 = vadd.f32 %v3106_v13, %v2940_v37  ;;  %v3108_v47 = vpop.f32.mrb[51].mxu0  ;;  %v2956_v37 = vld [vmem:[#allocation2 + $0xc8] sm:$0xff] }
 0x3eb   : > { %3199 = vmatprep.mubr.f32.mxu0 %v7255_v62  ;;  %v2942_v62 = vld [vmem:[#allocation2 + $0x58] sm:$0xff] }
 0x3ec   : > { %3261 = vst [vmem:[#allocation2 + $0x48] sm:$0xff] %v3229_v43 }
 0x3ee   : > { %3200 = vmatmul.mubr.f32.gmra.mrb[88].mxu0 %v7260_v17 }
 0x3ef   : > { %3204 = vmatprep.mubr.f32.mxu0 %v7263_v48 }
 0x3f2   : > { %3205 = vmatmul.mubr.f32.gmra.mrb[90].mxu0 %v7267_v21 }
 0x3f3   : > { %3209 = vmatprep.mubr.f32.mxu0 %v2928_v45 }
 0x3f6   : > { %3210 = vmatmul.mubr.f32.gmra.mrb[92].mxu0 %v2927_v4 }
 0x3f7   : > { %3214 = vmatprep.mubr.f32.mxu0 %v2930_v18 }
 0x3fa   : > { %3215 = vmatmul.mubr.f32.gmra.mrb[94].mxu0 %v2929_v5 }
 0x401   : > { %v3111_v30 = vpop.f32.mrb[52].mxu0 }
 0x402   : > { %v3230_v2 = vadd.f32 %v3111_v30, %v2941_v61  ;;  %v3113_v50 = vpop.f32.mrb[53].mxu0  ;;  %v2957_v61 = vld [vmem:[#allocation2 + $0xd0] sm:$0xff] }
 0x404   : > { %3262 = vst [vmem:[#allocation2 + $0x50] sm:$0xff] %v3230_v2 }
 0x417   : > { %v3116_v17 = vpop.f32.mrb[54].mxu0 }
 0x418   : > { %v3231_v7 = vadd.f32 %v3116_v17, %v2942_v62  ;;  %v3118_v48 = vpop.f32.mrb[55].mxu0  ;;  %v2958_v62 = vld [vmem:[#allocation2 + $0xd8] sm:$0xff] }
 0x41a   : > { %3263 = vst [vmem:[#allocation2 + $0x58] sm:$0xff] %v3231_v7 }
 0x42f   : > { %v3121_v46 = vpop.f32.mrb[56].mxu0 }
 0x430   : > { %v3232_v21 = vadd.f32 %v3121_v46, %v2943_v36  ;;  %v3123_v56 = vpop.f32.mrb[57].mxu0  ;;  %v2959_v36 = vld [vmem:[#allocation2 + $0xe0] sm:$0xff] }
 0x432   : > { %3264 = vst [vmem:[#allocation2 + $0x60] sm:$0xff] %v3232_v21 }
 0x442   : > { %v3126_v39 = vpop.f32.mrb[58].mxu0 }
 0x443   : > { %v3233_v33 = vadd.f32 %v3126_v39, %v2944_v38  ;;  %v3128_v41 = vpop.f32.mrb[59].mxu0  ;;  %v2960_v38 = vld [vmem:[#allocation2 + $0xe8] sm:$0xff] }
 0x445   : > { %3265 = vst [vmem:[#allocation2 + $0x68] sm:$0xff] %v3233_v33 }
 0x461   : > { %v3131_v0 = vpop.f32.mrb[60].mxu0 }
 0x462   : > { %v3234_v24 = vadd.f32 %v3131_v0, %v2945_v51  ;;  %v3133_v55 = vpop.f32.mrb[61].mxu0  ;;  %v2961_v51 = vld [vmem:[#allocation2 + $0xf0] sm:$0xff] }
 0x464   : > { %3266 = vst [vmem:[#allocation2 + $0x70] sm:$0xff] %v3234_v24 }
 0x474   : > { %v3136_v59 = vpop.f32.mrb[62].mxu0 }
 0x475   : > { %v3235_v40 = vadd.f32 %v3136_v59, %v2946_v1  ;;  %v3138_v25 = vpop.f32.mrb[63].mxu0  ;;  %v2962_v1 = vld [vmem:[#allocation2 + $0xf8] sm:$0xff] }
 0x477   : > { %3267 = vst [vmem:[#allocation2 + $0x78] sm:$0xff] %v3235_v40 }
 0x479   : > { %v3141_v58 = vpop.f32.mrb[64].mxu0 }
 0x47a   : > { %v3236_v42 = vadd.f32 %v3141_v58, %v2947_v32  ;;  %v3143_v4 = vpop.f32.mrb[65].mxu0  ;;  %v3288_v32 = vld [vmem:[#allocation2] sm:$0xff] (!%p3598_p6) }
 0x47b   : > { %v7319_v58 = vld [vmem:[%s7979_s13] ss:$0 sm:$0xff] (!%p3598_p6) }
 0x47c   : > { %3268 = vst [vmem:[#allocation2 + $0x80] sm:$0xff] %v3236_v42  ;;  %v3289_v42 = vld [vmem:[#allocation2 + $0x8] sm:$0xff] (!%p3598_p6)  ;;  %v3327_v4 = vadd.f32 (!%p3598_p6), %v7319_v58, %v3288_v32 }
 0x47e   : > { %3359 = vst [vmem:[%s4780_s18] sm:$0xff] (!%p3598_p6), %v3327_v4 }
 0x488   : > { %v3146_v53 = vpop.f32.mrb[66].mxu0 }
 0x489   : > { %v3237_v45 = vadd.f32 %v3146_v53, %v2948_v9  ;;  %v3148_v19 = vpop.f32.mrb[67].mxu0  ;;  %v3328_v9 = vadd.f32 (!%p3598_p6), %v7319_v58, %v3289_v42  ;;  %v3290_v53 = vld [vmem:[#allocation2 + $0x10] sm:$0xff] (!%p3598_p6) }
 0x48a   : > { %v3292_v19 = vld [vmem:[#allocation2 + $0x20] sm:$0xff] (!%p3598_p6) }
 0x48b   : > { %3269 = vst [vmem:[#allocation2 + $0x88] sm:$0xff] %v3237_v45  ;;  %v3291_v45 = vld [vmem:[#allocation2 + $0x18] sm:$0xff] (!%p3598_p6)  ;;  %3360 = vst [vmem:[%s4780_s18 + $0x8] sm:$0xff] (!%p3598_p6), %v3328_v9 }
 0x499   : > { %v3151_v54 = vpop.f32.mrb[68].mxu0 }
 0x49a   : > { %v3238_v44 = vadd.f32 %v3151_v54, %v2949_v49  ;;  %v3153_v57 = vpop.f32.mrb[69].mxu0  ;;  %v3329_v49 = vadd.f32 (!%p3598_p6), %v7319_v58, %v3290_v53  ;;  %v3330_v54 = vadd.f32 (!%p3598_p6), %v7319_v58, %v3291_v45 }
 0x49b   : > { %v3293_v57 = vld [vmem:[#allocation2 + $0x28] sm:$0xff] (!%p3598_p6) }
 0x49c   : > { %3270 = vst [vmem:[#allocation2 + $0x90] sm:$0xff] %v3238_v44  ;;  %v3331_v44 = vadd.f32 (!%p3598_p6), %v7319_v58, %v3292_v19  ;;  %3361 = vst [vmem:[%s4780_s18 + $0x10] sm:$0xff] (!%p3598_p6), %v3329_v49 }
 0x49d   : > { %v3156_v8 = vpop.f32.mrb[70].mxu0  ;;  %3362 = vst [vmem:[%s4780_s18 + $0x18] sm:$0xff] (!%p3598_p6), %v3330_v54 }
 0x49e   : > { %v3239_v3 = vadd.f32 %v3156_v8, %v2950_v35  ;;  %v3158_v29 = vpop.f32.mrb[71].mxu0  ;;  %v3294_v35 = vld [vmem:[#allocation2 + $0x30] sm:$0xff] (!%p3598_p6)  ;;  %v3295_v8 = vld [vmem:[#allocation2 + $0x38] sm:$0xff] (!%p3598_p6)  ;;  %3363 = vst [vmem:[%s4780_s18 + $0x20] sm:$0xff] (!%p3598_p6), %v3331_v44 }
 0x49f   : > { %v3333_v29 = vadd.f32 (!%p3598_p6), %v7319_v58, %v3294_v35 }
 0x4a0   : > { %3271 = vst [vmem:[#allocation2 + $0x98] sm:$0xff] %v3239_v3  ;;  %v3332_v3 = vadd.f32 (!%p3598_p6), %v7319_v58, %v3293_v57 }
 0x4a1   : > { %v3161_v27 = vpop.f32.mrb[72].mxu0  ;;  %3365 = vst [vmem:[%s4780_s18 + $0x30] sm:$0xff] (!%p3598_p6), %v3333_v29 }
 0x4a2   : > { %v3240_v34 = vadd.f32 %v3161_v27, %v2951_v15  ;;  %v3163_v28 = vpop.f32.mrb[73].mxu0  ;;  %v3334_v15 = vadd.f32 (!%p3598_p6), %v7319_v58, %v3295_v8  ;;  %v3296_v27 = vld [vmem:[#allocation2 + $0x40] sm:$0xff] (!%p3598_p6)  ;;  %3364 = vst [vmem:[%s4780_s18 + $0x28] sm:$0xff] (!%p3598_p6), %v3332_v3 }
 0x4a3   : > { %v3298_v28 = vld [vmem:[#allocation2 + $0x50] sm:$0xff] (!%p3598_p6) }
 0x4a4   : > { %3272 = vst [vmem:[#allocation2 + $0xa0] sm:$0xff] %v3240_v34  ;;  %v3297_v34 = vld [vmem:[#allocation2 + $0x48] sm:$0xff] (!%p3598_p6)  ;;  %3366 = vst [vmem:[%s4780_s18 + $0x38] sm:$0xff] (!%p3598_p6), %v3334_v15 }
 0x4a5   : > { %v3166_v26 = vpop.f32.mrb[74].mxu0 }
 0x4a6   : > { %v3241_v6 = vadd.f32 %v3166_v26, %v2952_v52  ;;  %v3168_v12 = vpop.f32.mrb[75].mxu0  ;;  %v3335_v52 = vadd.f32 (!%p3598_p6), %v7319_v58, %v3296_v27  ;;  %v3336_v26 = vadd.f32 (!%p3598_p6), %v7319_v58, %v3297_v34 }
 0x4a7   : > { %v3299_v12 = vld [vmem:[#allocation2 + $0x58] sm:$0xff] (!%p3598_p6) }
 0x4a8   : > { %3273 = vst [vmem:[#allocation2 + $0xa8] sm:$0xff] %v3241_v6  ;;  %v3337_v6 = vadd.f32 (!%p3598_p6), %v7319_v58, %v3298_v28  ;;  %3367 = vst [vmem:[%s4780_s18 + $0x40] sm:$0xff] (!%p3598_p6), %v3335_v52 }
 0x4a9   : > { %v3171_v23 = vpop.f32.mrb[76].mxu0  ;;  %3368 = vst [vmem:[%s4780_s18 + $0x48] sm:$0xff] (!%p3598_p6), %v3336_v26 }
 0x4aa   : > { %v3242_v14 = vadd.f32 %v3171_v23, %v2953_v22  ;;  %v3173_v10 = vpop.f32.mrb[77].mxu0  ;;  %v3300_v22 = vld [vmem:[#allocation2 + $0x60] sm:$0xff] (!%p3598_p6)  ;;  %v3301_v23 = vld [vmem:[#allocation2 + $0x68] sm:$0xff] (!%p3598_p6)  ;;  %3369 = vst [vmem:[%s4780_s18 + $0x50] sm:$0xff] (!%p3598_p6), %v3337_v6 }
 0x4ab   : > { %v3339_v10 = vadd.f32 (!%p3598_p6), %v7319_v58, %v3300_v22 }
 0x4ac   : > { %3274 = vst [vmem:[#allocation2 + $0xb0] sm:$0xff] %v3242_v14  ;;  %v3338_v14 = vadd.f32 (!%p3598_p6), %v7319_v58, %v3299_v12 }
 0x4ad   : > { %v3176_v11 = vpop.f32.mrb[78].mxu0  ;;  %3371 = vst [vmem:[%s4780_s18 + $0x60] sm:$0xff] (!%p3598_p6), %v3339_v10 }
 0x4ae   : > { %v3243_v20 = vadd.f32 %v3176_v11, %v2954_v16  ;;  %v3178_v63 = vpop.f32.mrb[79].mxu0  ;;  %v3340_v16 = vadd.f32 (!%p3598_p6), %v7319_v58, %v3301_v23  ;;  %v3302_v11 = vld [vmem:[#allocation2 + $0x70] sm:$0xff] (!%p3598_p6)  ;;  %3370 = vst [vmem:[%s4780_s18 + $0x58] sm:$0xff] (!%p3598_p6), %v3338_v14 }
 0x4af   : > { %v3304_v63 = vld [vmem:[#allocation2 + $0x80] sm:$0xff] (!%p3598_p6) }
 0x4b0   : > { %3275 = vst [vmem:[#allocation2 + $0xb8] sm:$0xff] %v3243_v20  ;;  %v3303_v20 = vld [vmem:[#allocation2 + $0x78] sm:$0xff] (!%p3598_p6)  ;;  %3372 = vst [vmem:[%s4780_s18 + $0x68] sm:$0xff] (!%p3598_p6), %v3340_v16 }
 0x4b1   : > { %v3181_v60 = vpop.f32.mrb[80].mxu0 }
 0x4b2   : > { %v3244_v5 = vadd.f32 %v3181_v60, %v2955_v31  ;;  %v3183_v18 = vpop.f32.mrb[81].mxu0  ;;  %v3341_v31 = vadd.f32 (!%p3598_p6), %v7319_v58, %v3302_v11  ;;  %v3342_v60 = vadd.f32 (!%p3598_p6), %v7319_v58, %v3303_v20 }
 0x4b3   : > { %v3305_v18 = vld [vmem:[#allocation2 + $0x88] sm:$0xff] (!%p3598_p6) }
 0x4b4   : > { %3276 = vst [vmem:[#allocation2 + $0xc0] sm:$0xff] %v3244_v5  ;;  %v3343_v5 = vadd.f32 (!%p3598_p6), %v7319_v58, %v3304_v63  ;;  %3373 = vst [vmem:[%s4780_s18 + $0x70] sm:$0xff] (!%p3598_p6), %v3341_v31 }
 0x4b5   : > { %v3186_v13 = vpop.f32.mrb[82].mxu0  ;;  %3374 = vst [vmem:[%s4780_s18 + $0x78] sm:$0xff] (!%p3598_p6), %v3342_v60 }
 0x4b6   : > { %v3245_v43 = vadd.f32 %v3186_v13, %v2956_v37  ;;  %v3188_v47 = vpop.f32.mrb[83].mxu0  ;;  %v3306_v37 = vld [vmem:[#allocation2 + $0x90] sm:$0xff] (!%p3598_p6)  ;;  %v3307_v13 = vld [vmem:[#allocation2 + $0x98] sm:$0xff] (!%p3598_p6)  ;;  %3375 = vst [vmem:[%s4780_s18 + $0x80] sm:$0xff] (!%p3598_p6), %v3343_v5 }
 0x4b7   : > { %v3345_v47 = vadd.f32 (!%p3598_p6), %v7319_v58, %v3306_v37 }
 0x4b8   : > { %3277 = vst [vmem:[#allocation2 + $0xc8] sm:$0xff] %v3245_v43  ;;  %v3344_v43 = vadd.f32 (!%p3598_p6), %v7319_v58, %v3305_v18 }
 0x4b9   : > { %v3191_v30 = vpop.f32.mrb[84].mxu0  ;;  %3377 = vst [vmem:[%s4780_s18 + $0x90] sm:$0xff] (!%p3598_p6), %v3345_v47 }
 0x4ba   : > { %v3246_v2 = vadd.f32 %v3191_v30, %v2957_v61  ;;  %v3193_v50 = vpop.f32.mrb[85].mxu0  ;;  %v3346_v61 = vadd.f32 (!%p3598_p6), %v7319_v58, %v3307_v13  ;;  %v3308_v30 = vld [vmem:[#allocation2 + $0xa0] sm:$0xff] (!%p3598_p6)  ;;  %3376 = vst [vmem:[%s4780_s18 + $0x88] sm:$0xff] (!%p3598_p6), %v3344_v43 }
 0x4bb   : > { %v3310_v50 = vld [vmem:[#allocation2 + $0xb0] sm:$0xff] (!%p3598_p6) }
 0x4bc   : > { %3278 = vst [vmem:[#allocation2 + $0xd0] sm:$0xff] %v3246_v2  ;;  %v3309_v2 = vld [vmem:[#allocation2 + $0xa8] sm:$0xff] (!%p3598_p6)  ;;  %3378 = vst [vmem:[%s4780_s18 + $0x98] sm:$0xff] (!%p3598_p6), %v3346_v61 }
 0x4bd   : > { %v3196_v17 = vpop.f32.mrb[86].mxu0 }
 0x4be   : > { %v3247_v7 = vadd.f32 %v3196_v17, %v2958_v62  ;;  %v3198_v48 = vpop.f32.mrb[87].mxu0  ;;  %v3347_v62 = vadd.f32 (!%p3598_p6), %v7319_v58, %v3308_v30  ;;  %v3348_v17 = vadd.f32 (!%p3598_p6), %v7319_v58, %v3309_v2 }
 0x4bf   : > { %v3311_v48 = vld [vmem:[#allocation2 + $0xb8] sm:$0xff] (!%p3598_p6) }
 0x4c0   : > { %3279 = vst [vmem:[#allocation2 + $0xd8] sm:$0xff] %v3247_v7  ;;  %v3349_v7 = vadd.f32 (!%p3598_p6), %v7319_v58, %v3310_v50  ;;  %3379 = vst [vmem:[%s4780_s18 + $0xa0] sm:$0xff] (!%p3598_p6), %v3347_v62 }
 0x4c1   : > { %v3201_v46 = vpop.f32.mrb[88].mxu0  ;;  %3380 = vst [vmem:[%s4780_s18 + $0xa8] sm:$0xff] (!%p3598_p6), %v3348_v17 }
 0x4c2   : > { %v3248_v21 = vadd.f32 %v3201_v46, %v2959_v36  ;;  %v3203_v56 = vpop.f32.mrb[89].mxu0  ;;  %v3312_v36 = vld [vmem:[#allocation2 + $0xc0] sm:$0xff] (!%p3598_p6)  ;;  %v3313_v46 = vld [vmem:[#allocation2 + $0xc8] sm:$0xff] (!%p3598_p6)  ;;  %3381 = vst [vmem:[%s4780_s18 + $0xb0] sm:$0xff] (!%p3598_p6), %v3349_v7 }
 0x4c3   : > { %v3351_v56 = vadd.f32 (!%p3598_p6), %v7319_v58, %v3312_v36 }
 0x4c4   : > { %3280 = vst [vmem:[#allocation2 + $0xe0] sm:$0xff] %v3248_v21  ;;  %v3350_v21 = vadd.f32 (!%p3598_p6), %v7319_v58, %v3311_v48 }
 0x4c5   : > { %v3206_v39 = vpop.f32.mrb[90].mxu0  ;;  %3383 = vst [vmem:[%s4780_s18 + $0xc0] sm:$0xff] (!%p3598_p6), %v3351_v56 }
 0x4c6   : > { %v3249_v33 = vadd.f32 %v3206_v39, %v2960_v38  ;;  %v3208_v41 = vpop.f32.mrb[91].mxu0  ;;  %v3352_v38 = vadd.f32 (!%p3598_p6), %v7319_v58, %v3313_v46  ;;  %v3314_v39 = vld [vmem:[#allocation2 + $0xd0] sm:$0xff] (!%p3598_p6)  ;;  %3382 = vst [vmem:[%s4780_s18 + $0xb8] sm:$0xff] (!%p3598_p6), %v3350_v21 }
 0x4c8   : > { %3281 = vst [vmem:[#allocation2 + $0xe8] sm:$0xff] %v3249_v33  ;;  %v3315_v33 = vld [vmem:[#allocation2 + $0xd8] sm:$0xff] (!%p3598_p6)  ;;  %3384 = vst [vmem:[%s4780_s18 + $0xc8] sm:$0xff] (!%p3598_p6), %v3352_v38 }
 0x4c9   : > { %v3211_v0 = vpop.f32.mrb[92].mxu0 }
 0x4ca   : > { %v3250_v24 = vadd.f32 %v3211_v0, %v2961_v51  ;;  %v3213_v55 = vpop.f32.mrb[93].mxu0  ;;  %3287 = sbr.rel (%p3598_p6) target bundleno = 1243 (0x4db), region = 72  ;;  %v3353_v51 = vadd.f32 (!%p3598_p6), %v7319_v58, %v3314_v39  ;;  %v3354_v0 = vadd.f32 (!%p3598_p6), %v7319_v58, %v3315_v33 }
 0x4cb   : > { %v3316_v41 = vld [vmem:[#allocation2 + $0xe0] sm:$0xff] (!%p3598_p6) }
 0x4cc   : > { %3282 = vst [vmem:[#allocation2 + $0xf0] sm:$0xff] %v3250_v24  ;;  %v3355_v24 = vadd.f32 (!%p3598_p6), %v7319_v58, %v3316_v41  ;;  %3385 = vst [vmem:[%s4780_s18 + $0xd0] sm:$0xff] (!%p3598_p6), %v3353_v51 }
 0x4cd   : > { %v3216_v59 = vpop.f32.mrb[94].mxu0  ;;  %3386 = vst [vmem:[%s4780_s18 + $0xd8] sm:$0xff] (!%p3598_p6), %v3354_v0 }
 0x4ce   : > { %v3251_v40 = vadd.f32 %v3216_v59, %v2962_v1  ;;  %v3218_v25 = vpop.f32.mrb[95].mxu0  ;;  %3387 = vst [vmem:[%s4780_s18 + $0xe0] sm:$0xff] (!%p3598_p6), %v3355_v24 }
 0x4cf   : > { %v3317_v55 = vld [vmem:[#allocation2 + $0xe8] sm:$0xff] (!%p3598_p6) }
 0x4d0   : > { %3283 = vst [vmem:[#allocation2 + $0xf8] sm:$0xff] %v3251_v40  ;;  %v3356_v40 = vadd.f32 (!%p3598_p6), %v7319_v58, %v3317_v55 }
 0x4d2   : > { %3388 = vst [vmem:[%s4780_s18 + $0xe8] sm:$0xff] %v3356_v40 }
 0x4d3   : > { %v3318_v1 = vld [vmem:[#allocation2 + $0xf0] sm:$0xff] }
 0x4d4   : > { %v3357_v25 = vadd.f32 %v7319_v58, %v3318_v1 }
 0x4d6   : > { %3389 = vst [vmem:[%s4780_s18 + $0xf0] sm:$0xff] %v3357_v25 }
 0x4d7   : > { %v3319_v59 = vld [vmem:[#allocation2 + $0xf8] sm:$0xff] }
 0x4d8   : > { %v3358_v32 = vadd.f32 %v7319_v58, %v3319_v59 }
 0x4da   : > { %3390 = vst [vmem:[%s4780_s18 + $0xf8] sm:$0xff] %v3358_v32 }
 0x4db PF: > { %s7980_s16 = sld [smem:[#allocation19_spill]]  ;;  %s7981_s6 = sld [smem:[#allocation158_spill]] }
 0x4dc   : > { %s3405_s15 = sshll.u32 %s4780_s18, 4  ;;  %s3392_s25 = scalar_lea.sflag [#allocation5], %s4743_s12  ;;  %s7392_s15 = int_to_ptr.vmem [resolvable:$true] %s3405_s15 }
 0x4dd   : > { %s4241_s10 = scalar_lea.vmem %s7392_s15, 4096  ;;  %p7982_p7 = scmp.ne.s32.totalorder %s7591_s7, 0 }
 0x4de   : > { %p4242_p2 = scmp.ne.s32.totalorder %s7392_s15, %s4241_s10  ;;  %s4385_s14 = smov [#allocation11]  }
 0x4df   : > { %s4245_s24 = sshll.u32 %s4385_s14, 4  ;;  %s4246_s24 = int_to_ptr.vmem [resolvable:$false] %s4245_s24 }
 0x4e0   : > { %p4243_p3 = pnand %p4242_p2, %p7982_p7  ;;  %s4247_s8 = scalar_lea.vmem %s4246_s24, 8192 }
 0x4e1   : > { %s3609_s30 = sshll.u32 %s7980_s16, 12  ;;  %p4248_p13 = scmp.lt.s32.totalorder %s7392_s15, %s4246_s24 }
 0x4e2   : > { %s7389_s4 = scalar_lea.hbm %s7981_s6, %s3609_s30  ;;  %p4244_p0 = pneg %p4243_p3 }
 0x4e3   : > { %p4249_p10 = scmp.lt.s32.totalorder %s4247_s8, %s4241_s10 }
 0x4e5   : > { %p4250_p11 = por %p4249_p10, %p4248_p13 }
 0x4e7   : > { %p4251_p4 = pnand %p4250_p11, %p4244_p0 }
 0x4e9   : > { %4254 = shalt.err (!%p4251_p4)
}
 0x4ea   : > { %s4255_s18 = scalar_lea.hbm %s7389_s4, 4096  ;;  %s4259_s0 = scalar_lea.hbm %s7981_s6, 8192 }
 0x4eb   : > { %p4256_p9 = scmp.ne.s32.totalorder %s7389_s4, %s4255_s18  ;;  %p4260_p1 = scmp.lt.u32.totalorder %s7389_s4, %s7981_s6 }
 0x4ec   : > { %p4261_p8 = scmp.lt.u32.totalorder %s4259_s0, %s4255_s18  ;;  %p4263_p2 = scmp.lt.u32.totalorder %s4255_s18, %s7389_s4 }
 0x4ed   : > { %p4257_p5 = pnand %p4256_p9, %p7982_p7 }
 0x4ee   : > { %p4262_p6 = por %p4261_p8, %p4260_p1 }
 0x4ef   : > { %p4258_p12 = pneg %p4257_p5 }
 0x4f0   : > { %p4264_p3 = por %p4263_p2, %p4262_p6 }
 0x4f2   : > { %p4265_p0 = pnand %p4264_p3, %p4258_p12 }
 0x4f4   : > { %4268 = shalt.err (!%p4265_p0)
}
 0x4f5   : > { %s4386_s22 = smov 128   ;;  %s4387_s17 = smov 8  }
 0x4f6   : > { %3746 = dma.vmem_to_hbm [thread:$0]  (%p7982_p7), %s7392_s15, 4096, %s7389_s4, %s3392_s25, %s4386_s22, %s4386_s22, %s4387_s17  }
 0x4f7 PF: > { %p3766_p13 = scmp.ge.s32.totalorder %s4371_s11, 2  ;;  %s3420_s13 = sand.u32 1, %s4343_s27  }
 0x4f8   : > { %p7983_p10 = scmp.ne.s32.totalorder %s7593_s3, 0  ;;  %s3421_s16 = scalar_lea.sflag [#allocation5], %s3420_s13 }
 0x4fa   : > { %p3762_p11 = pnand %p3766_p13, %p7983_p10 }
 0x4fc   : > { %4326 = dma.done.wait (!%p3762_p11), %s3421_s16, 4096  }
 0x4fd   : > { %4328 = vsyncadd (!%p3762_p11), %s3421_s16, 4294963200  ;;  %s29_s11 = sadd.s32 1, %s4371_s11   ;;  %s7984_s24 = sld [smem:[#allocation16_spill]] }
 0x4fe   : > { %p26_p4 = scmp.ge.s32.totalorder %s29_s11, 6   ;;  %s7985_s30 = sld [smem:[#allocation22_spill]] }
 0x4ff   : > { %s7986_s7 = sld [smem:[#allocation17_spill]]  ;;  %s7987_s29 = sld [smem:[#allocation25_spill]] }
 0x500   : > { %s7988_s8 = sld [smem:[#allocation20_spill]]  ;;  %s7989_s12 = sld [smem:[#allocation21_spill]] }
 0x501   : > { %s7990_s10 = sld [smem:[#allocation23_spill]]  ;;  %s7991_s25 = smov %s4339_s26 }
 0x502   : > { %s7993_s27 = smov %s4347_s28  ;;  %28 = sbr.rel (!%p26_p4) target bundleno = 20 (0x14), region = 144 }
 0x504   : > { %s7992_s26 = smov %s7985_s30  ;;  %s7995_s30 = smov %s4363_s9 }
 0x505   : > { %s7994_s28 = smov %s7986_s7 }
 0x506   : > { %s7996_s9 = smov %s7989_s12 }
 0x509   :  { %3426 = vsyncpa [#allocation4], 1 }
 0x50a   :  { %3428 = vsyncpa [#allocation4 + $0x1], 1 }
 0x50b   :  { %3429 = vsyncpa [#allocation7], 1 }
 0x50c   :  { %3431 = vsyncpa [#allocation7 + $0x1], 1 }
 0x50d   :  { %3432 = vsyncpa [#allocation10], 1 }
 0x50e   :  { %3434 = vsyncpa [#allocation10 + $0x1], 1 }
 0x50f   :  { %3435 = vsyncpa [#allocation5], 1 }
 0x510   :  { %3437 = vsyncpa [#allocation5 + $0x1], 1 }

</bundles_post_ra>
